<compile_context>
chip_gen: v7x
topology: tpu7x:2x2x1
jax: 0.10.0
libtpu: 0.0.40
codegen_flags: <defaults>
</compile_context>

<pallas_src>
import math
import jax
import jax.numpy as jnp
from jax.experimental import pallas as pl
from jax.experimental.pallas import tpu as pltpu


def _make_encoder_kernel(num_heads, head_dim, eps=1e-5):
    H, Dh = num_heads, head_dim

    def kernel(x_ref, wqkv_ref, bqkv_ref, wo_ref, bo_ref,
               w1_ref, b1_ref, w2_ref, b2_ref,
               g1_ref, bt1_ref, g2_ref, bt2_ref, o_ref):
        x = x_ref[0]                                   # (S, E) f32
        S, E = x.shape
        x16 = x.astype(jnp.bfloat16)

        # Hoist parameter reads (JAX does not CSE broadcast_in_dim).
        bqkv = bqkv_ref[...]                           # (1, 3E) f32 (Q third pre-scaled)
        bo, b1, b2 = bo_ref[...], b1_ref[...], b2_ref[...]
        g1, bt1 = g1_ref[...], bt1_ref[...]
        g2, bt2 = g2_ref[...], bt2_ref[...]

        # ---- Fused QKV projection: one lane-dense (S,E)@(E,3E) GEMM ----
        # Columns are [Q heads | K heads | V heads], head-major within each
        # third, so per-head slices below are static lane-block selections.
        qkv = jnp.dot(x16, wqkv_ref[...],
                      preferred_element_type=jnp.float32) + bqkv      # (S, 3E) f32

        # ---- Per-head attention (2-D ops only; no 3-D relayouts) ----
        # Softmax statistics / exp stay in f32 (v5e has no bf16 VPU/EUP path).
        ctx_heads = []
        for h in range(H):
            q_h = qkv[:, h * Dh:(h + 1) * Dh].astype(jnp.bfloat16)          # (S, Dh)
            k_h = qkv[:, E + h * Dh:E + (h + 1) * Dh].astype(jnp.bfloat16)
            v_h = qkv[:, 2 * E + h * Dh:2 * E + (h + 1) * Dh].astype(jnp.bfloat16)

            # scores = q @ k^T  (contract minor dims; scale already folded in)
            s = jax.lax.dot_general(q_h, k_h, (((1,), (1,)), ((), ())),
                                    preferred_element_type=jnp.float32)     # (S, S)
            s = s - jnp.max(s, axis=-1, keepdims=True)
            p = jnp.exp(s)                                                   # f32 (EUP)
            denom = jnp.sum(p, axis=-1, keepdims=True)                       # (S, 1)

            ctx = jnp.dot(p.astype(jnp.bfloat16), v_h,
                          preferred_element_type=jnp.float32)                # (S, Dh)
            # Deferred softmax normalization on the (much smaller) ctx, in f32.
            ctx = ctx * pl.reciprocal(denom, approx=True)
            ctx_heads.append(ctx.astype(jnp.bfloat16))

        ctx_all = ctx_heads[0] if H == 1 else jnp.concatenate(ctx_heads, axis=-1)  # (S, E)

        # ---- Output projection: single lane-dense (S,E)@(E,E) GEMM; the
        #      head contraction happens in the MXU f32 accumulator. ----
        attn = jnp.dot(ctx_all, wo_ref[...],
                       preferred_element_type=jnp.float32) + bo              # (S, E)

        # ---- Residual + LayerNorm 1 (f32) ----
        h1 = x + attn
        mu = jnp.mean(h1, axis=-1, keepdims=True)
        var = jnp.mean((h1 - mu) ** 2, axis=-1, keepdims=True)
        h1n = (h1 - mu) * jax.lax.rsqrt(var + eps) * g1 + bt1

        # ---- Position-wise FFN: Linear -> ReLU -> Linear ----
        f = jnp.dot(h1n.astype(jnp.bfloat16), w1_ref[...],
                    preferred_element_type=jnp.float32) + b1
        f = jnp.maximum(f, 0.0)
        f = jnp.dot(f.astype(jnp.bfloat16), w2_ref[...],
                    preferred_element_type=jnp.float32) + b2

        # ---- Residual + LayerNorm 2 (f32) ----
        h2 = h1n + f
        mu2 = jnp.mean(h2, axis=-1, keepdims=True)
        var2 = jnp.mean((h2 - mu2) ** 2, axis=-1, keepdims=True)
        out = (h2 - mu2) * jax.lax.rsqrt(var2 + eps) * g2 + bt2

        o_ref[0] = out.astype(o_ref.dtype)

    return kernel


def _vmem_limit_bytes():
    # ~75% of physical VMEM: ~48 MiB on v7x (64 MiB/TC), ~96 MiB on v5e/v6e.
    try:
        cap = int(pltpu.get_tpu_info().vmem_capacity_bytes)
    except Exception:
        cap = 64 * 1024 * 1024
    return max(32 * 1024 * 1024, (cap * 3) // 4)


def encoder_layer(x, params, num_heads, *, compute_dtype=jnp.bfloat16):
    B, S, E = x.shape
    F = params["w1"].shape[1]
    assert E % num_heads == 0, "embed_dim must be divisible by num_heads"
    Dh = E // num_heads
    scale = 1.0 / math.sqrt(float(Dh))
    f32 = jnp.float32

    # ---- Host-side packing: fused QKV weight/bias; 1/sqrt(Dh) folded into Q ----
    wqkv = jnp.concatenate(
        [params["wq"] * scale, params["wk"], params["wv"]], axis=1
    ).astype(compute_dtype)                                             # (E, 3E)
    bqkv = jnp.concatenate(
        [params["bq"] * scale, params["bk"], params["bv"]], axis=0
    ).reshape(1, 3 * E).astype(f32)                                     # (1, 3E)

    args = (
        x,
        wqkv, bqkv,
        params["wo"].astype(compute_dtype), params["bo"].reshape(1, E).astype(f32),
        params["w1"].astype(compute_dtype), params["b1"].reshape(1, F).astype(f32),
        params["w2"].astype(compute_dtype), params["b2"].reshape(1, E).astype(f32),
        params["g1"].reshape(1, E).astype(f32), params["bt1"].reshape(1, E).astype(f32),
        params["g2"].reshape(1, E).astype(f32), params["bt2"].reshape(1, E).astype(f32),
    )

    kernel = _make_encoder_kernel(num_heads, Dh)

    def build(single_buffer_consts):
        def const_spec(shape):
            nd = len(shape)
            idx = lambda b, _nd=nd: (0,) * _nd
            if single_buffer_consts:
                # Weights never change block index: single-buffer them to
                # halve their VMEM footprint (matters at realistic E/F on v7x).
                return pl.BlockSpec(shape, idx, pipeline_mode=pl.Buffered(1))
            return pl.BlockSpec(shape, idx)

        in_specs = [
            pl.BlockSpec((1, S, E), lambda b: (b, 0, 0)),   # x, per-batch tile
            const_spec((E, 3 * E)), const_spec((1, 3 * E)), # fused qkv w / b
            const_spec((E, E)), const_spec((1, E)),         # out-proj w / b
            const_spec((E, F)), const_spec((1, F)),         # w1, b1
            const_spec((F, E)), const_spec((1, E)),         # w2, b2
            const_spec((1, E)), const_spec((1, E)),         # ln1 gamma, beta
            const_spec((1, E)), const_spec((1, E)),         # ln2 gamma, beta
        ]

        return pl.pallas_call(
            kernel,
            out_shape=jax.ShapeDtypeStruct((B, S, E), x.dtype),
            grid_spec=pltpu.PrefetchScalarGridSpec(
                num_scalar_prefetch=0,
                grid=(B,),
                in_specs=in_specs,
                out_specs=pl.BlockSpec((1, S, E), lambda b: (b, 0, 0)),
            ),
            compiler_params=pltpu.CompilerParams(
                dimension_semantics=("parallel",),
                vmem_limit_bytes=_vmem_limit_bytes(),
            ),
        )

    try:
        return jax.block_until_ready(build(True)(*args))
    except Exception:
        # Fallback for JAX versions without single-buffer pipeline_mode support.
        return build(False)(*args)


def ref_encoder(x, p, num_heads):
    """Pure-JAX f32 reference (mirrors the PyTorch forward in eval mode)."""
    B, S, E = x.shape
    Dh = E // num_heads
    q = (x @ p["wq"] + p["bq"]).reshape(B, S, num_heads, Dh).transpose(0, 2, 1, 3)
    k = (x @ p["wk"] + p["bk"]).reshape(B, S, num_heads, Dh).transpose(0, 2, 1, 3)
    v = (x @ p["wv"] + p["bv"]).reshape(B, S, num_heads, Dh).transpose(0, 2, 1, 3)
    s = jnp.einsum("bhqd,bhkd->bhqk", q, k) / math.sqrt(float(Dh))
    a = jax.nn.softmax(s, axis=-1)
    attn = jnp.einsum("bhqk,bhkd->bhqd", a, v).transpose(0, 2, 1, 3).reshape(B, S, E)
    attn = attn @ p["wo"] + p["bo"]

    def ln(h, g, b):
        mu = h.mean(-1, keepdims=True)
        var = ((h - mu) ** 2).mean(-1, keepdims=True)
        return (h - mu) / jnp.sqrt(var + 1e-5) * g + b

    h1 = ln(x + attn, p["g1"], p["bt1"])
    f = jnp.maximum(h1 @ p["w1"] + p["b1"], 0.0) @ p["w2"] + p["b2"]
    return ln(h1 + f, p["g2"], p["bt2"])


if __name__ == "__main__":
    # Small but lane-friendly shapes: E, FF multiples of 128; S multiple of 8;
    # Dh = E / H = 128 so every per-head q/k/v/ctx tensor is lane-dense.
    B, S, E, H, FF = 2, 32, 256, 2, 512

    key = jax.random.PRNGKey(0)
    keys = jax.random.split(key, 16)
    w = lambda k, shp: 0.02 * jax.random.normal(k, shp, jnp.float32)

    params = {
        "wq": w(keys[0], (E, E)),  "bq": w(keys[1], (E,)),
        "wk": w(keys[2], (E, E)),  "bk": w(keys[3], (E,)),
        "wv": w(keys[4], (E, E)),  "bv": w(keys[5], (E,)),
        "wo": w(keys[6], (E, E)),  "bo": w(keys[7], (E,)),
        "w1": w(keys[8], (E, FF)), "b1": w(keys[9], (FF,)),
        "w2": w(keys[10], (FF, E)), "b2": w(keys[11], (E,)),
        "g1": jnp.ones((E,), jnp.float32),  "bt1": jnp.zeros((E,), jnp.float32),
        "g2": jnp.ones((E,), jnp.float32),  "bt2": jnp.zeros((E,), jnp.float32),
    }

    x = jax.random.normal(keys[12], (B, S, E), jnp.float32)

    out = jax.block_until_ready(encoder_layer(x, params, num_heads=H))
    ref = ref_encoder(x, params, num_heads=H)

    assert out.shape == (B, S, E)
    # bf16 MXU operands (f32 accumulation) => looser tolerance vs f32 reference.
    assert jnp.allclose(out, ref, rtol=2e-2, atol=2e-2), "mismatch vs JAX reference"

    print("KERNEL_OK")
</pallas_src>

<mosaic_0001>
module attributes {stable_mosaic.version = 11 : i64} {
  func.func @kernel(%arg0: i32, %arg1: memref<1x32x256xf32, #tpu.memory_space<vmem>>, %arg2: memref<256x768xbf16, #tpu.memory_space<vmem>>, %arg3: memref<1x768xf32, #tpu.memory_space<vmem>>, %arg4: memref<256x256xbf16, #tpu.memory_space<vmem>>, %arg5: memref<1x256xf32, #tpu.memory_space<vmem>>, %arg6: memref<256x512xbf16, #tpu.memory_space<vmem>>, %arg7: memref<1x512xf32, #tpu.memory_space<vmem>>, %arg8: memref<512x256xbf16, #tpu.memory_space<vmem>>, %arg9: memref<1x256xf32, #tpu.memory_space<vmem>>, %arg10: memref<1x256xf32, #tpu.memory_space<vmem>>, %arg11: memref<1x256xf32, #tpu.memory_space<vmem>>, %arg12: memref<1x256xf32, #tpu.memory_space<vmem>>, %arg13: memref<1x256xf32, #tpu.memory_space<vmem>>, %arg14: memref<1x32x256xf32, #tpu.memory_space<vmem>>) attributes {dimension_semantics = [#tpu.dimension_semantics<parallel>], iteration_bounds = array<i64: 2>, scalar_prefetch = 0 : i64, scratch_operands = 0 : i64, tpu.core_type = #tpu.core_type<tc>, window_params = [{transform_indices = @transform_0, window_bounds = array<i64: 1, 32, 256>}, {pipeline_mode = #tpu.pipeline_mode<synchronous>, transform_indices = @transform_1, window_bounds = array<i64: 256, 768>}, {pipeline_mode = #tpu.pipeline_mode<synchronous>, transform_indices = @transform_2, window_bounds = array<i64: 1, 768>}, {pipeline_mode = #tpu.pipeline_mode<synchronous>, transform_indices = @transform_3, window_bounds = array<i64: 256, 256>}, {pipeline_mode = #tpu.pipeline_mode<synchronous>, transform_indices = @transform_4, window_bounds = array<i64: 1, 256>}, {pipeline_mode = #tpu.pipeline_mode<synchronous>, transform_indices = @transform_5, window_bounds = array<i64: 256, 512>}, {pipeline_mode = #tpu.pipeline_mode<synchronous>, transform_indices = @transform_6, window_bounds = array<i64: 1, 512>}, {pipeline_mode = #tpu.pipeline_mode<synchronous>, transform_indices = @transform_7, window_bounds = array<i64: 512, 256>}, {pipeline_mode = #tpu.pipeline_mode<synchronous>, transform_indices = @transform_8, window_bounds = array<i64: 1, 256>}, {pipeline_mode = #tpu.pipeline_mode<synchronous>, transform_indices = @transform_9, window_bounds = array<i64: 1, 256>}, {pipeline_mode = #tpu.pipeline_mode<synchronous>, transform_indices = @transform_10, window_bounds = array<i64: 1, 256>}, {pipeline_mode = #tpu.pipeline_mode<synchronous>, transform_indices = @transform_11, window_bounds = array<i64: 1, 256>}, {pipeline_mode = #tpu.pipeline_mode<synchronous>, transform_indices = @transform_12, window_bounds = array<i64: 1, 256>}, {transform_indices = @transform_13, window_bounds = array<i64: 1, 32, 256>}]} {
    %c0 = arith.constant 0 : index
    %c0_0 = arith.constant 0 : index
    %c0_1 = arith.constant 0 : index
    %0 = vector.load %arg1[%c0, %c0_0, %c0_1] : memref<1x32x256xf32, #tpu.memory_space<vmem>>, vector<1x32x256xf32>
    %1 = vector.shape_cast %0 : vector<1x32x256xf32> to vector<32x256xf32>
    %2 = arith.truncf %1 : vector<32x256xf32> to vector<32x256xbf16>
    %c0_2 = arith.constant 0 : index
    %c0_3 = arith.constant 0 : index
    %3 = vector.load %arg3[%c0_2, %c0_3] : memref<1x768xf32, #tpu.memory_space<vmem>>, vector<1x768xf32>
    %c0_4 = arith.constant 0 : index
    %c0_5 = arith.constant 0 : index
    %4 = vector.load %arg5[%c0_4, %c0_5] : memref<1x256xf32, #tpu.memory_space<vmem>>, vector<1x256xf32>
    %c0_6 = arith.constant 0 : index
    %c0_7 = arith.constant 0 : index
    %5 = vector.load %arg7[%c0_6, %c0_7] : memref<1x512xf32, #tpu.memory_space<vmem>>, vector<1x512xf32>
    %c0_8 = arith.constant 0 : index
    %c0_9 = arith.constant 0 : index
    %6 = vector.load %arg9[%c0_8, %c0_9] : memref<1x256xf32, #tpu.memory_space<vmem>>, vector<1x256xf32>
    %c0_10 = arith.constant 0 : index
    %c0_11 = arith.constant 0 : index
    %7 = vector.load %arg10[%c0_10, %c0_11] : memref<1x256xf32, #tpu.memory_space<vmem>>, vector<1x256xf32>
    %c0_12 = arith.constant 0 : index
    %c0_13 = arith.constant 0 : index
    %8 = vector.load %arg11[%c0_12, %c0_13] : memref<1x256xf32, #tpu.memory_space<vmem>>, vector<1x256xf32>
    %c0_14 = arith.constant 0 : index
    %c0_15 = arith.constant 0 : index
    %9 = vector.load %arg12[%c0_14, %c0_15] : memref<1x256xf32, #tpu.memory_space<vmem>>, vector<1x256xf32>
    %c0_16 = arith.constant 0 : index
    %c0_17 = arith.constant 0 : index
    %10 = vector.load %arg13[%c0_16, %c0_17] : memref<1x256xf32, #tpu.memory_space<vmem>>, vector<1x256xf32>
    %c0_18 = arith.constant 0 : index
    %c0_19 = arith.constant 0 : index
    %11 = vector.load %arg2[%c0_18, %c0_19] : memref<256x768xbf16, #tpu.memory_space<vmem>>, vector<256x768xbf16>
    %cst = arith.constant dense<0.000000e+00> : vector<32x768xf32>
    %12 = tpu.matmul %2, %11, %cst {dimension_numbers = #tpu.dot_dimension_numbers<[1], [0], [0], [1], [0, 0, 1, 1], [], []>} : vector<32x256xbf16>, vector<256x768xbf16>, vector<32x768xf32> -> vector<32x768xf32>
    %13 = vector.broadcast %3 : vector<1x768xf32> to vector<32x768xf32>
    %14 = arith.addf %12, %13 : vector<32x768xf32>
    %15 = vector.extract_strided_slice %14 {offsets = [0, 0], sizes = [32, 128], strides = [1, 1]} : vector<32x768xf32> to vector<32x128xf32>
    %16 = arith.truncf %15 : vector<32x128xf32> to vector<32x128xbf16>
    %17 = vector.extract_strided_slice %14 {offsets = [0, 256], sizes = [32, 128], strides = [1, 1]} : vector<32x768xf32> to vector<32x128xf32>
    %18 = arith.truncf %17 : vector<32x128xf32> to vector<32x128xbf16>
    %19 = vector.extract_strided_slice %14 {offsets = [0, 512], sizes = [32, 128], strides = [1, 1]} : vector<32x768xf32> to vector<32x128xf32>
    %20 = arith.truncf %19 : vector<32x128xf32> to vector<32x128xbf16>
    %cst_20 = arith.constant dense<0.000000e+00> : vector<32x32xf32>
    %21 = tpu.matmul %16, %18, %cst_20 {dimension_numbers = #tpu.dot_dimension_numbers<[1], [1], [0], [0], [0, 0, 1, 0], [], []>} : vector<32x128xbf16>, vector<32x128xbf16>, vector<32x32xf32> -> vector<32x32xf32>
    %cst_21 = arith.constant dense<0xFF800000> : vector<32xf32>
    %22 = vector.multi_reduction <maximumf>, %21, %cst_21 [1] : vector<32x32xf32> to vector<32xf32>
    %23 = vector.shape_cast %22 : vector<32xf32> to vector<32x1xf32>
    %24 = vector.broadcast %23 : vector<32x1xf32> to vector<32x32xf32>
    %25 = arith.subf %21, %24 : vector<32x32xf32>
    %26 = math.exp %25 : vector<32x32xf32>
    %cst_22 = arith.constant dense<0.000000e+00> : vector<32xf32>
    %27 = vector.multi_reduction <add>, %26, %cst_22 [1] : vector<32x32xf32> to vector<32xf32>
    %28 = vector.shape_cast %27 : vector<32xf32> to vector<32x1xf32>
    %29 = arith.truncf %26 : vector<32x32xf32> to vector<32x32xbf16>
    %cst_23 = arith.constant dense<0.000000e+00> : vector<32x128xf32>
    %30 = tpu.matmul %29, %20, %cst_23 {dimension_numbers = #tpu.dot_dimension_numbers<[1], [0], [0], [1], [0, 0, 1, 1], [], []>} : vector<32x32xbf16>, vector<32x128xbf16>, vector<32x128xf32> -> vector<32x128xf32>
    %31 = tpu.reciprocal %28 {approx = true} : vector<32x1xf32> -> vector<32x1xf32>
    %32 = vector.broadcast %31 : vector<32x1xf32> to vector<32x128xf32>
    %33 = arith.mulf %30, %32 : vector<32x128xf32>
    %34 = arith.truncf %33 : vector<32x128xf32> to vector<32x128xbf16>
    %35 = vector.extract_strided_slice %14 {offsets = [0, 128], sizes = [32, 128], strides = [1, 1]} : vector<32x768xf32> to vector<32x128xf32>
    %36 = arith.truncf %35 : vector<32x128xf32> to vector<32x128xbf16>
    %37 = vector.extract_strided_slice %14 {offsets = [0, 384], sizes = [32, 128], strides = [1, 1]} : vector<32x768xf32> to vector<32x128xf32>
    %38 = arith.truncf %37 : vector<32x128xf32> to vector<32x128xbf16>
    %39 = vector.extract_strided_slice %14 {offsets = [0, 640], sizes = [32, 128], strides = [1, 1]} : vector<32x768xf32> to vector<32x128xf32>
    %40 = arith.truncf %39 : vector<32x128xf32> to vector<32x128xbf16>
    %cst_24 = arith.constant dense<0.000000e+00> : vector<32x32xf32>
    %41 = tpu.matmul %36, %38, %cst_24 {dimension_numbers = #tpu.dot_dimension_numbers<[1], [1], [0], [0], [0, 0, 1, 0], [], []>} : vector<32x128xbf16>, vector<32x128xbf16>, vector<32x32xf32> -> vector<32x32xf32>
    %cst_25 = arith.constant dense<0xFF800000> : vector<32xf32>
    %42 = vector.multi_reduction <maximumf>, %41, %cst_25 [1] : vector<32x32xf32> to vector<32xf32>
    %43 = vector.shape_cast %42 : vector<32xf32> to vector<32x1xf32>
    %44 = vector.broadcast %43 : vector<32x1xf32> to vector<32x32xf32>
    %45 = arith.subf %41, %44 : vector<32x32xf32>
    %46 = math.exp %45 : vector<32x32xf32>
    %cst_26 = arith.constant dense<0.000000e+00> : vector<32xf32>
    %47 = vector.multi_reduction <add>, %46, %cst_26 [1] : vector<32x32xf32> to vector<32xf32>
    %48 = vector.shape_cast %47 : vector<32xf32> to vector<32x1xf32>
    %49 = arith.truncf %46 : vector<32x32xf32> to vector<32x32xbf16>
    %cst_27 = arith.constant dense<0.000000e+00> : vector<32x128xf32>
    %50 = tpu.matmul %49, %40, %cst_27 {dimension_numbers = #tpu.dot_dimension_numbers<[1], [0], [0], [1], [0, 0, 1, 1], [], []>} : vector<32x32xbf16>, vector<32x128xbf16>, vector<32x128xf32> -> vector<32x128xf32>
    %51 = tpu.reciprocal %48 {approx = true} : vector<32x1xf32> -> vector<32x1xf32>
    %52 = vector.broadcast %51 : vector<32x1xf32> to vector<32x128xf32>
    %53 = arith.mulf %50, %52 : vector<32x128xf32>
    %54 = arith.truncf %53 : vector<32x128xf32> to vector<32x128xbf16>
    %55 = tpu.concatenate %34, %54 in 1 : vector<32x128xbf16>, vector<32x128xbf16> -> vector<32x256xbf16>
    %c0_28 = arith.constant 0 : index
    %c0_29 = arith.constant 0 : index
    %56 = vector.load %arg4[%c0_28, %c0_29] : memref<256x256xbf16, #tpu.memory_space<vmem>>, vector<256x256xbf16>
    %cst_30 = arith.constant dense<0.000000e+00> : vector<32x256xf32>
    %57 = tpu.matmul %55, %56, %cst_30 {dimension_numbers = #tpu.dot_dimension_numbers<[1], [0], [0], [1], [0, 0, 1, 1], [], []>} : vector<32x256xbf16>, vector<256x256xbf16>, vector<32x256xf32> -> vector<32x256xf32>
    %58 = vector.broadcast %4 : vector<1x256xf32> to vector<32x256xf32>
    %59 = arith.addf %57, %58 : vector<32x256xf32>
    %60 = arith.addf %1, %59 : vector<32x256xf32>
    %cst_31 = arith.constant dense<0.000000e+00> : vector<32xf32>
    %61 = vector.multi_reduction <add>, %60, %cst_31 [1] : vector<32x256xf32> to vector<32xf32>
    %62 = vector.shape_cast %61 : vector<32xf32> to vector<32x1xf32>
    %cst_32 = arith.constant 2.560000e+02 : f32
    %63 = vector.broadcast %cst_32 : f32 to vector<32x1xf32>
    %64 = arith.divf %62, %63 : vector<32x1xf32>
    %65 = vector.broadcast %64 : vector<32x1xf32> to vector<32x256xf32>
    %66 = arith.subf %60, %65 : vector<32x256xf32>
    %67 = arith.mulf %66, %66 : vector<32x256xf32>
    %cst_33 = arith.constant dense<0.000000e+00> : vector<32xf32>
    %68 = vector.multi_reduction <add>, %67, %cst_33 [1] : vector<32x256xf32> to vector<32xf32>
    %69 = vector.shape_cast %68 : vector<32xf32> to vector<32x1xf32>
    %cst_34 = arith.constant 2.560000e+02 : f32
    %70 = vector.broadcast %cst_34 : f32 to vector<32x1xf32>
    %71 = arith.divf %69, %70 : vector<32x1xf32>
    %72 = vector.broadcast %64 : vector<32x1xf32> to vector<32x256xf32>
    %73 = arith.subf %60, %72 : vector<32x256xf32>
    %cst_35 = arith.constant 9.99999974E-6 : f32
    %74 = vector.broadcast %cst_35 : f32 to vector<32x1xf32>
    %75 = arith.addf %71, %74 : vector<32x1xf32>
    %76 = math.rsqrt %75 : vector<32x1xf32>
    %77 = vector.broadcast %76 : vector<32x1xf32> to vector<32x256xf32>
    %78 = arith.mulf %73, %77 : vector<32x256xf32>
    %79 = vector.broadcast %7 : vector<1x256xf32> to vector<32x256xf32>
    %80 = arith.mulf %78, %79 : vector<32x256xf32>
    %81 = vector.broadcast %8 : vector<1x256xf32> to vector<32x256xf32>
    %82 = arith.addf %80, %81 : vector<32x256xf32>
    %83 = arith.truncf %82 : vector<32x256xf32> to vector<32x256xbf16>
    %c0_36 = arith.constant 0 : index
    %c0_37 = arith.constant 0 : index
    %84 = vector.load %arg6[%c0_36, %c0_37] : memref<256x512xbf16, #tpu.memory_space<vmem>>, vector<256x512xbf16>
    %cst_38 = arith.constant dense<0.000000e+00> : vector<32x512xf32>
    %85 = tpu.matmul %83, %84, %cst_38 {dimension_numbers = #tpu.dot_dimension_numbers<[1], [0], [0], [1], [0, 0, 1, 1], [], []>} : vector<32x256xbf16>, vector<256x512xbf16>, vector<32x512xf32> -> vector<32x512xf32>
    %86 = vector.broadcast %5 : vector<1x512xf32> to vector<32x512xf32>
    %87 = arith.addf %85, %86 : vector<32x512xf32>
    %cst_39 = arith.constant 0.000000e+00 : f32
    %88 = vector.broadcast %cst_39 : f32 to vector<32x512xf32>
    %89 = arith.maximumf %87, %88 : vector<32x512xf32>
    %90 = arith.truncf %89 : vector<32x512xf32> to vector<32x512xbf16>
    %c0_40 = arith.constant 0 : index
    %c0_41 = arith.constant 0 : index
    %91 = vector.load %arg8[%c0_40, %c0_41] : memref<512x256xbf16, #tpu.memory_space<vmem>>, vector<512x256xbf16>
    %cst_42 = arith.constant dense<0.000000e+00> : vector<32x256xf32>
    %92 = tpu.matmul %90, %91, %cst_42 {dimension_numbers = #tpu.dot_dimension_numbers<[1], [0], [0], [1], [0, 0, 1, 1], [], []>} : vector<32x512xbf16>, vector<512x256xbf16>, vector<32x256xf32> -> vector<32x256xf32>
    %93 = vector.broadcast %6 : vector<1x256xf32> to vector<32x256xf32>
    %94 = arith.addf %92, %93 : vector<32x256xf32>
    %95 = arith.addf %82, %94 : vector<32x256xf32>
    %cst_43 = arith.constant dense<0.000000e+00> : vector<32xf32>
    %96 = vector.multi_reduction <add>, %95, %cst_43 [1] : vector<32x256xf32> to vector<32xf32>
    %97 = vector.shape_cast %96 : vector<32xf32> to vector<32x1xf32>
    %cst_44 = arith.constant 2.560000e+02 : f32
    %98 = vector.broadcast %cst_44 : f32 to vector<32x1xf32>
    %99 = arith.divf %97, %98 : vector<32x1xf32>
    %100 = vector.broadcast %99 : vector<32x1xf32> to vector<32x256xf32>
    %101 = arith.subf %95, %100 : vector<32x256xf32>
    %102 = arith.mulf %101, %101 : vector<32x256xf32>
    %cst_45 = arith.constant dense<0.000000e+00> : vector<32xf32>
    %103 = vector.multi_reduction <add>, %102, %cst_45 [1] : vector<32x256xf32> to vector<32xf32>
    %104 = vector.shape_cast %103 : vector<32xf32> to vector<32x1xf32>
    %cst_46 = arith.constant 2.560000e+02 : f32
    %105 = vector.broadcast %cst_46 : f32 to vector<32x1xf32>
    %106 = arith.divf %104, %105 : vector<32x1xf32>
    %107 = vector.broadcast %99 : vector<32x1xf32> to vector<32x256xf32>
    %108 = arith.subf %95, %107 : vector<32x256xf32>
    %cst_47 = arith.constant 9.99999974E-6 : f32
    %109 = vector.broadcast %cst_47 : f32 to vector<32x1xf32>
    %110 = arith.addf %106, %109 : vector<32x1xf32>
    %111 = math.rsqrt %110 : vector<32x1xf32>
    %112 = vector.broadcast %111 : vector<32x1xf32> to vector<32x256xf32>
    %113 = arith.mulf %108, %112 : vector<32x256xf32>
    %114 = vector.broadcast %9 : vector<1x256xf32> to vector<32x256xf32>
    %115 = arith.mulf %113, %114 : vector<32x256xf32>
    %116 = vector.broadcast %10 : vector<1x256xf32> to vector<32x256xf32>
    %117 = arith.addf %115, %116 : vector<32x256xf32>
    %c0_48 = arith.constant 0 : index
    %c0_49 = arith.constant 0 : index
    %c0_50 = arith.constant 0 : index
    %118 = vector.load %arg14[%c0_48, %c0_49, %c0_50] : memref<1x32x256xf32, #tpu.memory_space<vmem>>, vector<1x32x256xf32>
    %119 = vector.shape_cast %118 : vector<1x32x256xf32> to vector<32x256xf32>
    %120 = vector.shape_cast %117 : vector<32x256xf32> to vector<1x32x256xf32>
    tpu.vector_store %arg14[%c0_48, %c0_49, %c0_50], %120 {strides = array<i32>} : memref<1x32x256xf32, #tpu.memory_space<vmem>>, vector<1x32x256xf32>,
    return
  }
  func.func @transform_0(%arg0: i32) -> (i32, i32, i32) {
    %c0_i32 = arith.constant 0 : i32
    %c0_i32_0 = arith.constant 0 : i32
    %c0_i32_1 = arith.constant 0 : i32
    return %arg0, %c0_i32, %c0_i32_0 : i32, i32, i32
  }
  func.func @transform_1(%arg0: i32) -> (i32, i32) {
    %c0_i32 = arith.constant 0 : i32
    %c0_i32_0 = arith.constant 0 : i32
    %c0_i32_1 = arith.constant 0 : i32
    return %c0_i32, %c0_i32_0 : i32, i32
  }
  func.func @transform_2(%arg0: i32) -> (i32, i32) {
    %c0_i32 = arith.constant 0 : i32
    %c0_i32_0 = arith.constant 0 : i32
    %c0_i32_1 = arith.constant 0 : i32
    return %c0_i32, %c0_i32_0 : i32, i32
  }
  func.func @transform_3(%arg0: i32) -> (i32, i32) {
    %c0_i32 = arith.constant 0 : i32
    %c0_i32_0 = arith.constant 0 : i32
    %c0_i32_1 = arith.constant 0 : i32
    return %c0_i32, %c0_i32_0 : i32, i32
  }
  func.func @transform_4(%arg0: i32) -> (i32, i32) {
    %c0_i32 = arith.constant 0 : i32
    %c0_i32_0 = arith.constant 0 : i32
    %c0_i32_1 = arith.constant 0 : i32
    return %c0_i32, %c0_i32_0 : i32, i32
  }
  func.func @transform_5(%arg0: i32) -> (i32, i32) {
    %c0_i32 = arith.constant 0 : i32
    %c0_i32_0 = arith.constant 0 : i32
    %c0_i32_1 = arith.constant 0 : i32
    return %c0_i32, %c0_i32_0 : i32, i32
  }
  func.func @transform_6(%arg0: i32) -> (i32, i32) {
    %c0_i32 = arith.constant 0 : i32
    %c0_i32_0 = arith.constant 0 : i32
    %c0_i32_1 = arith.constant 0 : i32
    return %c0_i32, %c0_i32_0 : i32, i32
  }
  func.func @transform_7(%arg0: i32) -> (i32, i32) {
    %c0_i32 = arith.constant 0 : i32
    %c0_i32_0 = arith.constant 0 : i32
    %c0_i32_1 = arith.constant 0 : i32
    return %c0_i32, %c0_i32_0 : i32, i32
  }
  func.func @transform_8(%arg0: i32) -> (i32, i32) {
    %c0_i32 = arith.constant 0 : i32
    %c0_i32_0 = arith.constant 0 : i32
    %c0_i32_1 = arith.constant 0 : i32
    return %c0_i32, %c0_i32_0 : i32, i32
  }
  func.func @transform_9(%arg0: i32) -> (i32, i32) {
    %c0_i32 = arith.constant 0 : i32
    %c0_i32_0 = arith.constant 0 : i32
    %c0_i32_1 = arith.constant 0 : i32
    return %c0_i32, %c0_i32_0 : i32, i32
  }
  func.func @transform_10(%arg0: i32) -> (i32, i32) {
    %c0_i32 = arith.constant 0 : i32
    %c0_i32_0 = arith.constant 0 : i32
    %c0_i32_1 = arith.constant 0 : i32
    return %c0_i32, %c0_i32_0 : i32, i32
  }
  func.func @transform_11(%arg0: i32) -> (i32, i32) {
    %c0_i32 = arith.constant 0 : i32
    %c0_i32_0 = arith.constant 0 : i32
    %c0_i32_1 = arith.constant 0 : i32
    return %c0_i32, %c0_i32_0 : i32, i32
  }
  func.func @transform_12(%arg0: i32) -> (i32, i32) {
    %c0_i32 = arith.constant 0 : i32
    %c0_i32_0 = arith.constant 0 : i32
    %c0_i32_1 = arith.constant 0 : i32
    return %c0_i32, %c0_i32_0 : i32, i32
  }
  func.func @transform_13(%arg0: i32) -> (i32, i32, i32) {
    %c0_i32 = arith.constant 0 : i32
    %c0_i32_0 = arith.constant 0 : i32
    %c0_i32_1 = arith.constant 0 : i32
    return %arg0, %c0_i32, %c0_i32_0 : i32, i32, i32
  }
}

module attributes {stable_mosaic.version = 11 : i64} {
  func.func @kernel(%arg0: i32, %arg1: memref<1x32x256xf32, #tpu.memory_space<vmem>>, %arg2: memref<256x768xbf16, #tpu.memory_space<vmem>>, %arg3: memref<1x768xf32, #tpu.memory_space<vmem>>, %arg4: memref<256x256xbf16, #tpu.memory_space<vmem>>, %arg5: memref<1x256xf32, #tpu.memory_space<vmem>>, %arg6: memref<256x512xbf16, #tpu.memory_space<vmem>>, %arg7: memref<1x512xf32, #tpu.memory_space<vmem>>, %arg8: memref<512x256xbf16, #tpu.memory_space<vmem>>, %arg9: memref<1x256xf32, #tpu.memory_space<vmem>>, %arg10: memref<1x256xf32, #tpu.memory_space<vmem>>, %arg11: memref<1x256xf32, #tpu.memory_space<vmem>>, %arg12: memref<1x256xf32, #tpu.memory_space<vmem>>, %arg13: memref<1x256xf32, #tpu.memory_space<vmem>>, %arg14: memref<1x32x256xf32, #tpu.memory_space<vmem>>) attributes {dimension_semantics = [#tpu.dimension_semantics<parallel>], iteration_bounds = array<i64: 2>, scalar_prefetch = 0 : i64, scratch_operands = 0 : i64, tpu.core_type = #tpu.core_type<tc>, window_params = [{transform_indices = @transform_0, window_bounds = array<i64: 1, 32, 256>}, {pipeline_mode = #tpu.pipeline_mode<synchronous>, transform_indices = @transform_1, window_bounds = array<i64: 256, 768>}, {pipeline_mode = #tpu.pipeline_mode<synchronous>, transform_indices = @transform_2, window_bounds = array<i64: 1, 768>}, {pipeline_mode = #tpu.pipeline_mode<synchronous>, transform_indices = @transform_3, window_bounds = array<i64: 256, 256>}, {pipeline_mode = #tpu.pipeline_mode<synchronous>, transform_indices = @transform_4, window_bounds = array<i64: 1, 256>}, {pipeline_mode = #tpu.pipeline_mode<synchronous>, transform_indices = @transform_5, window_bounds = array<i64: 256, 512>}, {pipeline_mode = #tpu.pipeline_mode<synchronous>, transform_indices = @transform_6, window_bounds = array<i64: 1, 512>}, {pipeline_mode = #tpu.pipeline_mode<synchronous>, transform_indices = @transform_7, window_bounds = array<i64: 512, 256>}, {pipeline_mode = #tpu.pipeline_mode<synchronous>, transform_indices = @transform_8, window_bounds = array<i64: 1, 256>}, {pipeline_mode = #tpu.pipeline_mode<synchronous>, transform_indices = @transform_9, window_bounds = array<i64: 1, 256>}, {pipeline_mode = #tpu.pipeline_mode<synchronous>, transform_indices = @transform_10, window_bounds = array<i64: 1, 256>}, {pipeline_mode = #tpu.pipeline_mode<synchronous>, transform_indices = @transform_11, window_bounds = array<i64: 1, 256>}, {pipeline_mode = #tpu.pipeline_mode<synchronous>, transform_indices = @transform_12, window_bounds = array<i64: 1, 256>}, {transform_indices = @transform_13, window_bounds = array<i64: 1, 32, 256>}]} {
    %c0 = arith.constant 0 : index
    %c0_0 = arith.constant 0 : index
    %c0_1 = arith.constant 0 : index
    %0 = vector.load %arg1[%c0, %c0_0, %c0_1] : memref<1x32x256xf32, #tpu.memory_space<vmem>>, vector<1x32x256xf32>
    %1 = vector.shape_cast %0 : vector<1x32x256xf32> to vector<32x256xf32>
    %2 = arith.truncf %1 : vector<32x256xf32> to vector<32x256xbf16>
    %c0_2 = arith.constant 0 : index
    %c0_3 = arith.constant 0 : index
    %3 = vector.load %arg3[%c0_2, %c0_3] : memref<1x768xf32, #tpu.memory_space<vmem>>, vector<1x768xf32>
    %c0_4 = arith.constant 0 : index
    %c0_5 = arith.constant 0 : index
    %4 = vector.load %arg5[%c0_4, %c0_5] : memref<1x256xf32, #tpu.memory_space<vmem>>, vector<1x256xf32>
    %c0_6 = arith.constant 0 : index
    %c0_7 = arith.constant 0 : index
    %5 = vector.load %arg7[%c0_6, %c0_7] : memref<1x512xf32, #tpu.memory_space<vmem>>, vector<1x512xf32>
    %c0_8 = arith.constant 0 : index
    %c0_9 = arith.constant 0 : index
    %6 = vector.load %arg9[%c0_8, %c0_9] : memref<1x256xf32, #tpu.memory_space<vmem>>, vector<1x256xf32>
    %c0_10 = arith.constant 0 : index
    %c0_11 = arith.constant 0 : index
    %7 = vector.load %arg10[%c0_10, %c0_11] : memref<1x256xf32, #tpu.memory_space<vmem>>, vector<1x256xf32>
    %c0_12 = arith.constant 0 : index
    %c0_13 = arith.constant 0 : index
    %8 = vector.load %arg11[%c0_12, %c0_13] : memref<1x256xf32, #tpu.memory_space<vmem>>, vector<1x256xf32>
    %c0_14 = arith.constant 0 : index
    %c0_15 = arith.constant 0 : index
    %9 = vector.load %arg12[%c0_14, %c0_15] : memref<1x256xf32, #tpu.memory_space<vmem>>, vector<1x256xf32>
    %c0_16 = arith.constant 0 : index
    %c0_17 = arith.constant 0 : index
    %10 = vector.load %arg13[%c0_16, %c0_17] : memref<1x256xf32, #tpu.memory_space<vmem>>, vector<1x256xf32>
    %c0_18 = arith.constant 0 : index
    %c0_19 = arith.constant 0 : index
    %11 = vector.load %arg2[%c0_18, %c0_19] : memref<256x768xbf16, #tpu.memory_space<vmem>>, vector<256x768xbf16>
    %cst = arith.constant dense<0.000000e+00> : vector<32x768xf32>
    %12 = tpu.matmul %2, %11, %cst {dimension_numbers = #tpu.dot_dimension_numbers<[1], [0], [0], [1], [0, 0, 1, 1], [], []>} : vector<32x256xbf16>, vector<256x768xbf16>, vector<32x768xf32> -> vector<32x768xf32>
    %13 = vector.broadcast %3 : vector<1x768xf32> to vector<32x768xf32>
    %14 = arith.addf %12, %13 : vector<32x768xf32>
    %15 = vector.extract_strided_slice %14 {offsets = [0, 0], sizes = [32, 128], strides = [1, 1]} : vector<32x768xf32> to vector<32x128xf32>
    %16 = arith.truncf %15 : vector<32x128xf32> to vector<32x128xbf16>
    %17 = vector.extract_strided_slice %14 {offsets = [0, 256], sizes = [32, 128], strides = [1, 1]} : vector<32x768xf32> to vector<32x128xf32>
    %18 = arith.truncf %17 : vector<32x128xf32> to vector<32x128xbf16>
    %19 = vector.extract_strided_slice %14 {offsets = [0, 512], sizes = [32, 128], strides = [1, 1]} : vector<32x768xf32> to vector<32x128xf32>
    %20 = arith.truncf %19 : vector<32x128xf32> to vector<32x128xbf16>
    %cst_20 = arith.constant dense<0.000000e+00> : vector<32x32xf32>
    %21 = tpu.matmul %16, %18, %cst_20 {dimension_numbers = #tpu.dot_dimension_numbers<[1], [1], [0], [0], [0, 0, 1, 0], [], []>} : vector<32x128xbf16>, vector<32x128xbf16>, vector<32x32xf32> -> vector<32x32xf32>
    %cst_21 = arith.constant dense<0xFF800000> : vector<32xf32>
    %22 = vector.multi_reduction <maximumf>, %21, %cst_21 [1] : vector<32x32xf32> to vector<32xf32>
    %23 = vector.shape_cast %22 : vector<32xf32> to vector<32x1xf32>
    %24 = vector.broadcast %23 : vector<32x1xf32> to vector<32x32xf32>
    %25 = arith.subf %21, %24 : vector<32x32xf32>
    %26 = math.exp %25 : vector<32x32xf32>
    %cst_22 = arith.constant dense<0.000000e+00> : vector<32xf32>
    %27 = vector.multi_reduction <add>, %26, %cst_22 [1] : vector<32x32xf32> to vector<32xf32>
    %28 = vector.shape_cast %27 : vector<32xf32> to vector<32x1xf32>
    %29 = arith.truncf %26 : vector<32x32xf32> to vector<32x32xbf16>
    %cst_23 = arith.constant dense<0.000000e+00> : vector<32x128xf32>
    %30 = tpu.matmul %29, %20, %cst_23 {dimension_numbers = #tpu.dot_dimension_numbers<[1], [0], [0], [1], [0, 0, 1, 1], [], []>} : vector<32x32xbf16>, vector<32x128xbf16>, vector<32x128xf32> -> vector<32x128xf32>
    %31 = tpu.reciprocal %28 {approx = true} : vector<32x1xf32> -> vector<32x1xf32>
    %32 = vector.broadcast %31 : vector<32x1xf32> to vector<32x128xf32>
    %33 = arith.mulf %30, %32 : vector<32x128xf32>
    %34 = arith.truncf %33 : vector<32x128xf32> to vector<32x128xbf16>
    %35 = vector.extract_strided_slice %14 {offsets = [0, 128], sizes = [32, 128], strides = [1, 1]} : vector<32x768xf32> to vector<32x128xf32>
    %36 = arith.truncf %35 : vector<32x128xf32> to vector<32x128xbf16>
    %37 = vector.extract_strided_slice %14 {offsets = [0, 384], sizes = [32, 128], strides = [1, 1]} : vector<32x768xf32> to vector<32x128xf32>
    %38 = arith.truncf %37 : vector<32x128xf32> to vector<32x128xbf16>
    %39 = vector.extract_strided_slice %14 {offsets = [0, 640], sizes = [32, 128], strides = [1, 1]} : vector<32x768xf32> to vector<32x128xf32>
    %40 = arith.truncf %39 : vector<32x128xf32> to vector<32x128xbf16>
    %cst_24 = arith.constant dense<0.000000e+00> : vector<32x32xf32>
    %41 = tpu.matmul %36, %38, %cst_24 {dimension_numbers = #tpu.dot_dimension_numbers<[1], [1], [0], [0], [0, 0, 1, 0], [], []>} : vector<32x128xbf16>, vector<32x128xbf16>, vector<32x32xf32> -> vector<32x32xf32>
    %cst_25 = arith.constant dense<0xFF800000> : vector<32xf32>
    %42 = vector.multi_reduction <maximumf>, %41, %cst_25 [1] : vector<32x32xf32> to vector<32xf32>
    %43 = vector.shape_cast %42 : vector<32xf32> to vector<32x1xf32>
    %44 = vector.broadcast %43 : vector<32x1xf32> to vector<32x32xf32>
    %45 = arith.subf %41, %44 : vector<32x32xf32>
    %46 = math.exp %45 : vector<32x32xf32>
    %cst_26 = arith.constant dense<0.000000e+00> : vector<32xf32>
    %47 = vector.multi_reduction <add>, %46, %cst_26 [1] : vector<32x32xf32> to vector<32xf32>
    %48 = vector.shape_cast %47 : vector<32xf32> to vector<32x1xf32>
    %49 = arith.truncf %46 : vector<32x32xf32> to vector<32x32xbf16>
    %cst_27 = arith.constant dense<0.000000e+00> : vector<32x128xf32>
    %50 = tpu.matmul %49, %40, %cst_27 {dimension_numbers = #tpu.dot_dimension_numbers<[1], [0], [0], [1], [0, 0, 1, 1], [], []>} : vector<32x32xbf16>, vector<32x128xbf16>, vector<32x128xf32> -> vector<32x128xf32>
    %51 = tpu.reciprocal %48 {approx = true} : vector<32x1xf32> -> vector<32x1xf32>
    %52 = vector.broadcast %51 : vector<32x1xf32> to vector<32x128xf32>
    %53 = arith.mulf %50, %52 : vector<32x128xf32>
    %54 = arith.truncf %53 : vector<32x128xf32> to vector<32x128xbf16>
    %55 = tpu.concatenate %34, %54 in 1 : vector<32x128xbf16>, vector<32x128xbf16> -> vector<32x256xbf16>
    %c0_28 = arith.constant 0 : index
    %c0_29 = arith.constant 0 : index
    %56 = vector.load %arg4[%c0_28, %c0_29] : memref<256x256xbf16, #tpu.memory_space<vmem>>, vector<256x256xbf16>
    %cst_30 = arith.constant dense<0.000000e+00> : vector<32x256xf32>
    %57 = tpu.matmul %55, %56, %cst_30 {dimension_numbers = #tpu.dot_dimension_numbers<[1], [0], [0], [1], [0, 0, 1, 1], [], []>} : vector<32x256xbf16>, vector<256x256xbf16>, vector<32x256xf32> -> vector<32x256xf32>
    %58 = vector.broadcast %4 : vector<1x256xf32> to vector<32x256xf32>
    %59 = arith.addf %57, %58 : vector<32x256xf32>
    %60 = arith.addf %1, %59 : vector<32x256xf32>
    %cst_31 = arith.constant dense<0.000000e+00> : vector<32xf32>
    %61 = vector.multi_reduction <add>, %60, %cst_31 [1] : vector<32x256xf32> to vector<32xf32>
    %62 = vector.shape_cast %61 : vector<32xf32> to vector<32x1xf32>
    %cst_32 = arith.constant 2.560000e+02 : f32
    %63 = vector.broadcast %cst_32 : f32 to vector<32x1xf32>
    %64 = arith.divf %62, %63 : vector<32x1xf32>
    %65 = vector.broadcast %64 : vector<32x1xf32> to vector<32x256xf32>
    %66 = arith.subf %60, %65 : vector<32x256xf32>
    %67 = arith.mulf %66, %66 : vector<32x256xf32>
    %cst_33 = arith.constant dense<0.000000e+00> : vector<32xf32>
    %68 = vector.multi_reduction <add>, %67, %cst_33 [1] : vector<32x256xf32> to vector<32xf32>
    %69 = vector.shape_cast %68 : vector<32xf32> to vector<32x1xf32>
    %cst_34 = arith.constant 2.560000e+02 : f32
    %70 = vector.broadcast %cst_34 : f32 to vector<32x1xf32>
    %71 = arith.divf %69, %70 : vector<32x1xf32>
    %72 = vector.broadcast %64 : vector<32x1xf32> to vector<32x256xf32>
    %73 = arith.subf %60, %72 : vector<32x256xf32>
    %cst_35 = arith.constant 9.99999974E-6 : f32
    %74 = vector.broadcast %cst_35 : f32 to vector<32x1xf32>
    %75 = arith.addf %71, %74 : vector<32x1xf32>
    %76 = math.rsqrt %75 : vector<32x1xf32>
    %77 = vector.broadcast %76 : vector<32x1xf32> to vector<32x256xf32>
    %78 = arith.mulf %73, %77 : vector<32x256xf32>
    %79 = vector.broadcast %7 : vector<1x256xf32> to vector<32x256xf32>
    %80 = arith.mulf %78, %79 : vector<32x256xf32>
    %81 = vector.broadcast %8 : vector<1x256xf32> to vector<32x256xf32>
    %82 = arith.addf %80, %81 : vector<32x256xf32>
    %83 = arith.truncf %82 : vector<32x256xf32> to vector<32x256xbf16>
    %c0_36 = arith.constant 0 : index
    %c0_37 = arith.constant 0 : index
    %84 = vector.load %arg6[%c0_36, %c0_37] : memref<256x512xbf16, #tpu.memory_space<vmem>>, vector<256x512xbf16>
    %cst_38 = arith.constant dense<0.000000e+00> : vector<32x512xf32>
    %85 = tpu.matmul %83, %84, %cst_38 {dimension_numbers = #tpu.dot_dimension_numbers<[1], [0], [0], [1], [0, 0, 1, 1], [], []>} : vector<32x256xbf16>, vector<256x512xbf16>, vector<32x512xf32> -> vector<32x512xf32>
    %86 = vector.broadcast %5 : vector<1x512xf32> to vector<32x512xf32>
    %87 = arith.addf %85, %86 : vector<32x512xf32>
    %cst_39 = arith.constant 0.000000e+00 : f32
    %88 = vector.broadcast %cst_39 : f32 to vector<32x512xf32>
    %89 = arith.maximumf %87, %88 : vector<32x512xf32>
    %90 = arith.truncf %89 : vector<32x512xf32> to vector<32x512xbf16>
    %c0_40 = arith.constant 0 : index
    %c0_41 = arith.constant 0 : index
    %91 = vector.load %arg8[%c0_40, %c0_41] : memref<512x256xbf16, #tpu.memory_space<vmem>>, vector<512x256xbf16>
    %cst_42 = arith.constant dense<0.000000e+00> : vector<32x256xf32>
    %92 = tpu.matmul %90, %91, %cst_42 {dimension_numbers = #tpu.dot_dimension_numbers<[1], [0], [0], [1], [0, 0, 1, 1], [], []>} : vector<32x512xbf16>, vector<512x256xbf16>, vector<32x256xf32> -> vector<32x256xf32>
    %93 = vector.broadcast %6 : vector<1x256xf32> to vector<32x256xf32>
    %94 = arith.addf %92, %93 : vector<32x256xf32>
    %95 = arith.addf %82, %94 : vector<32x256xf32>
    %cst_43 = arith.constant dense<0.000000e+00> : vector<32xf32>
    %96 = vector.multi_reduction <add>, %95, %cst_43 [1] : vector<32x256xf32> to vector<32xf32>
    %97 = vector.shape_cast %96 : vector<32xf32> to vector<32x1xf32>
    %cst_44 = arith.constant 2.560000e+02 : f32
    %98 = vector.broadcast %cst_44 : f32 to vector<32x1xf32>
    %99 = arith.divf %97, %98 : vector<32x1xf32>
    %100 = vector.broadcast %99 : vector<32x1xf32> to vector<32x256xf32>
    %101 = arith.subf %95, %100 : vector<32x256xf32>
    %102 = arith.mulf %101, %101 : vector<32x256xf32>
    %cst_45 = arith.constant dense<0.000000e+00> : vector<32xf32>
    %103 = vector.multi_reduction <add>, %102, %cst_45 [1] : vector<32x256xf32> to vector<32xf32>
    %104 = vector.shape_cast %103 : vector<32xf32> to vector<32x1xf32>
    %cst_46 = arith.constant 2.560000e+02 : f32
    %105 = vector.broadcast %cst_46 : f32 to vector<32x1xf32>
    %106 = arith.divf %104, %105 : vector<32x1xf32>
    %107 = vector.broadcast %99 : vector<32x1xf32> to vector<32x256xf32>
    %108 = arith.subf %95, %107 : vector<32x256xf32>
    %cst_47 = arith.constant 9.99999974E-6 : f32
    %109 = vector.broadcast %cst_47 : f32 to vector<32x1xf32>
    %110 = arith.addf %106, %109 : vector<32x1xf32>
    %111 = math.rsqrt %110 : vector<32x1xf32>
    %112 = vector.broadcast %111 : vector<32x1xf32> to vector<32x256xf32>
    %113 = arith.mulf %108, %112 : vector<32x256xf32>
    %114 = vector.broadcast %9 : vector<1x256xf32> to vector<32x256xf32>
    %115 = arith.mulf %113, %114 : vector<32x256xf32>
    %116 = vector.broadcast %10 : vector<1x256xf32> to vector<32x256xf32>
    %117 = arith.addf %115, %116 : vector<32x256xf32>
    %c0_48 = arith.constant 0 : index
    %c0_49 = arith.constant 0 : index
    %c0_50 = arith.constant 0 : index
    %118 = vector.load %arg14[%c0_48, %c0_49, %c0_50] : memref<1x32x256xf32, #tpu.memory_space<vmem>>, vector<1x32x256xf32>
    %119 = vector.shape_cast %118 : vector<1x32x256xf32> to vector<32x256xf32>
    %120 = vector.shape_cast %117 : vector<32x256xf32> to vector<1x32x256xf32>
    tpu.vector_store %arg14[%c0_48, %c0_49, %c0_50], %120 {strides = array<i32>} : memref<1x32x256xf32, #tpu.memory_space<vmem>>, vector<1x32x256xf32>,
    return
  }
  func.func @transform_0(%arg0: i32) -> (i32, i32, i32) {
    %c0_i32 = arith.constant 0 : i32
    %c0_i32_0 = arith.constant 0 : i32
    %c0_i32_1 = arith.constant 0 : i32
    return %arg0, %c0_i32, %c0_i32_0 : i32, i32, i32
  }
  func.func @transform_1(%arg0: i32) -> (i32, i32) {
    %c0_i32 = arith.constant 0 : i32
    %c0_i32_0 = arith.constant 0 : i32
    %c0_i32_1 = arith.constant 0 : i32
    return %c0_i32, %c0_i32_0 : i32, i32
  }
  func.func @transform_2(%arg0: i32) -> (i32, i32) {
    %c0_i32 = arith.constant 0 : i32
    %c0_i32_0 = arith.constant 0 : i32
    %c0_i32_1 = arith.constant 0 : i32
    return %c0_i32, %c0_i32_0 : i32, i32
  }
  func.func @transform_3(%arg0: i32) -> (i32, i32) {
    %c0_i32 = arith.constant 0 : i32
    %c0_i32_0 = arith.constant 0 : i32
    %c0_i32_1 = arith.constant 0 : i32
    return %c0_i32, %c0_i32_0 : i32, i32
  }
  func.func @transform_4(%arg0: i32) -> (i32, i32) {
    %c0_i32 = arith.constant 0 : i32
    %c0_i32_0 = arith.constant 0 : i32
    %c0_i32_1 = arith.constant 0 : i32
    return %c0_i32, %c0_i32_0 : i32, i32
  }
  func.func @transform_5(%arg0: i32) -> (i32, i32) {
    %c0_i32 = arith.constant 0 : i32
    %c0_i32_0 = arith.constant 0 : i32
    %c0_i32_1 = arith.constant 0 : i32
    return %c0_i32, %c0_i32_0 : i32, i32
  }
  func.func @transform_6(%arg0: i32) -> (i32, i32) {
    %c0_i32 = arith.constant 0 : i32
    %c0_i32_0 = arith.constant 0 : i32
    %c0_i32_1 = arith.constant 0 : i32
    return %c0_i32, %c0_i32_0 : i32, i32
  }
  func.func @transform_7(%arg0: i32) -> (i32, i32) {
    %c0_i32 = arith.constant 0 : i32
    %c0_i32_0 = arith.constant 0 : i32
    %c0_i32_1 = arith.constant 0 : i32
    return %c0_i32, %c0_i32_0 : i32, i32
  }
  func.func @transform_8(%arg0: i32) -> (i32, i32) {
    %c0_i32 = arith.constant 0 : i32
    %c0_i32_0 = arith.constant 0 : i32
    %c0_i32_1 = arith.constant 0 : i32
    return %c0_i32, %c0_i32_0 : i32, i32
  }
  func.func @transform_9(%arg0: i32) -> (i32, i32) {
    %c0_i32 = arith.constant 0 : i32
    %c0_i32_0 = arith.constant 0 : i32
    %c0_i32_1 = arith.constant 0 : i32
    return %c0_i32, %c0_i32_0 : i32, i32
  }
  func.func @transform_10(%arg0: i32) -> (i32, i32) {
    %c0_i32 = arith.constant 0 : i32
    %c0_i32_0 = arith.constant 0 : i32
    %c0_i32_1 = arith.constant 0 : i32
    return %c0_i32, %c0_i32_0 : i32, i32
  }
  func.func @transform_11(%arg0: i32) -> (i32, i32) {
    %c0_i32 = arith.constant 0 : i32
    %c0_i32_0 = arith.constant 0 : i32
    %c0_i32_1 = arith.constant 0 : i32
    return %c0_i32, %c0_i32_0 : i32, i32
  }
  func.func @transform_12(%arg0: i32) -> (i32, i32) {
    %c0_i32 = arith.constant 0 : i32
    %c0_i32_0 = arith.constant 0 : i32
    %c0_i32_1 = arith.constant 0 : i32
    return %c0_i32, %c0_i32_0 : i32, i32
  }
  func.func @transform_13(%arg0: i32) -> (i32, i32, i32) {
    %c0_i32 = arith.constant 0 : i32
    %c0_i32_0 = arith.constant 0 : i32
    %c0_i32_1 = arith.constant 0 : i32
    return %arg0, %c0_i32, %c0_i32_0 : i32, i32, i32
  }
}

</mosaic_0001>

<bundles_post_ra>
// kernel: tpu_custom_call.1
= control target key start
LH: loop header
LB: loop body
LE: loop exit
PB: predicated region body
PF: predicated region fallthrough
CT: control target
= control target key end

     0   :  { %s4977_s0 = inlined_call_operand.hbm [shape: f32[2,32,256], index: 0, kind: input, shape index: {}]   ;;  %s4978_s1 = inlined_call_operand.hbm [shape: bf16[256,768], index: 1, kind: input, shape index: {}]   ;;  %s4979_s2 = inlined_call_operand.vmem [shape: f32[1,768], index: 2, kind: input, shape index: {}]   ;;  %s4980_s3 = inlined_call_operand.hbm [shape: bf16[256,256], index: 3, kind: input, shape index: {}]   ;;  %s4981_s4 = inlined_call_operand.vmem [shape: f32[1,256], index: 4, kind: input, shape index: {}]   ;;  %s4982_s5 = inlined_call_operand.hbm [shape: bf16[256,512], index: 5, kind: input, shape index: {}]   ;;  %s4983_s6 = inlined_call_operand.vmem [shape: f32[1,512], index: 6, kind: input, shape index: {}]   ;;  %s4984_s7 = inlined_call_operand.hbm [shape: bf16[512,256], index: 7, kind: input, shape index: {}]   ;;  %s4985_s8 = inlined_call_operand.vmem [shape: f32[1,256], index: 8, kind: input, shape index: {}]   ;;  %s4986_s9 = inlined_call_operand.vmem [shape: f32[1,256], index: 9, kind: input, shape index: {}]   ;;  %s4987_s10 = inlined_call_operand.vmem [shape: f32[1,256], index: 10, kind: input, shape index: {}]   ;;  %s4988_s11 = inlined_call_operand.vmem [shape: f32[1,256], index: 11, kind: input, shape index: {}]   ;;  %s4989_s12 = inlined_call_operand.vmem [shape: f32[1,256], index: 12, kind: input, shape index: {}]   ;;  %s4990_s13 = inlined_call_operand.hbm [shape: f32[2,32,256], index: 13, kind: output, shape index: {}]  }
   0x1   :  { %4999 = sst [smem:[#allocation18_spill]] %s4978_s1 }
   0x2   :  { %5000 = sst [smem:[#allocation19_spill]] %s4985_s8 }
   0x3   :  { %5001 = sst [smem:[#allocation20_spill]] %s4988_s11 }
   0x4   :  { %5002 = sst [smem:[#allocation21_spill]] %s4989_s12 }
   0x5   :  { %5003 = sst [smem:[#allocation22_spill]] %s4990_s13 }
   0x6   :  { %18 = vsyncpa [#allocation3], 0 }
   0x7   :  { %20 = vsyncpa [#allocation3 + $0x1], 0 }
   0x8   :  { %21 = vsyncpa [#allocation6], 0 }
   0x9   :  { %22 = vsyncpa [#allocation9], 0 }
   0xa   :  { %23 = vsyncpa [#allocation4], 0 }
   0xb   :  { %25 = vsyncpa [#allocation4 + $0x1], 0  ;;  %s4456_s25 = smov 0   ;;  %s4458_s26 = smov 0  }
   0xc   :  { %s4460_s27 = smov 0   ;;  %s4462_s28 = smov 0  }
   0xd LB: > { %5004 = sst [smem:[#allocation16_spill]] %s4358_s25  ;;  %s4477_s29 = sadd.s32 4294967295, %s4370_s28   ;;  %s4370_s28 = sphi %s4462_s28, %s5034_s28   ;;  %s4366_s27 = sphi %s4460_s27, %s5033_s27   ;;  %s4362_s26 = sphi %s4458_s26, %s5032_s26   ;;  %s4358_s25 = sphi %s4456_s25, %s5031_s25  }
   0xe   : > { %s3271_s30 = sadd.s32 4294967294, %s4370_s28   ;;  %p51_p0 = scmp.ne.s32.totalorder %s4362_s26, %s4358_s25 }
   0xf   : > { %p4993_p1 = scmp.eq.s32.totalorder %s4477_s29, 0  ;;  %p333_p3 = scmp.eq.s32.totalorder %s3271_s30, 1 }
  0x10   : > { %p3272_p5 = scmp.ge.s32.totalorder %s4370_s28, 1  ;;  %p340_p7 = scmp.lt.s32.totalorder %s4370_s28, 3 }
  0x11   : > { %p4486_p4 = por %p4993_p1, %p51_p0  ;;  %p4491_p6 = por %p333_p3, %p51_p0 }
  0x12   : > { %p4496_p8 = pnand %p3272_p5, %p340_p7  ;;  %s4372_s17 = smov [#allocation5]  }
  0x13   : > { %s5005_s14 = scalar_select %p4486_p4, 1, 0 }
  0x14   : > { %s5006_s15 = scalar_select %p4491_p6, 1, 0 }
  0x15   : > { %s5008_s16 = scalar_select %p4496_p8, 1, 0 }
  0x16   : > { %5007 = sst [smem:[#allocation17_spill]] %s5006_s15  ;;  %s352_s18 = sshll.u32 %s4372_s17, 4  ;;  %s4500_s18 = int_to_ptr.vmem [resolvable:$true] %s352_s18 }
  0x17   : > { %p3639_p9 = pneg %p4496_p8  ;;  %s4373_s20 = smov [#allocation8]  }
  0x18   : > { %s384_s21 = sshll.u32 %s4373_s20, 4  ;;  %s5010_s1 = sld [smem:[#allocation18_spill]]  ;;  %s4511_s21 = int_to_ptr.vmem [resolvable:$true] %s384_s21 }
  0x19   : > { %p4507_p11 = pnand %p3639_p9, %p4993_p1 }
  0x1b   : > { %p4521_p13 = pneg %p4507_p11 }
  0x1e   : > { %s4154_s24 = scalar_lea.hbm %s5010_s1, 12288 }
  0x1f   : > { %p4155_p12 = scmp.ne.s32.totalorder %s5010_s1, %s4154_s24  ;;  %p4161_p5 = scmp.lt.u32.totalorder %s4154_s24, %s5010_s1 }
  0x21   : > { %p4157_p0 = pnand %p4521_p13, %p4155_p12 }
  0x23   : > { %p4158_p3 = pneg %p4157_p0 }
  0x25   : > { %p4163_p7 = pnand %p4161_p5, %p4158_p3 }
  0x27   : > { %4166 = shalt.err (!%p4163_p7)
}
  0x28   : > { %s4167_s22 = scalar_lea.vmem %s4500_s18, 12288  ;;  %p4175_p2 = scmp.lt.s32.totalorder %s4500_s18, %s4500_s18 }
  0x29   : > { %p4168_p9 = scmp.ne.s32.totalorder %s4500_s18, %s4167_s22  ;;  %p4176_p6 = scmp.lt.s32.totalorder %s4167_s22, %s4167_s22 }
  0x2b   : > { %p4170_p10 = pnand %p4168_p9, %p4521_p13  ;;  %p4177_p12 = por %p4176_p6, %p4175_p2 }
  0x2d   : > { %p4171_p1 = pneg %p4170_p10 }
  0x2f   : > { %p4178_p0 = pnand %p4177_p12, %p4171_p1 }
  0x31   : > { %4181 = shalt.err (!%p4178_p0)
}
  0x32   : > { %s4374_s23 = smov 384   ;;  %s4375_s25 = smov 24  }
  0x33   : > { %3642 = dma.hbm_to_vmem [thread:$0]  (!%p4507_p11), %s5010_s1, 12288, %s4500_s18, [#allocation6], %s4374_s23, %s4374_s23, %s4375_s25  }
  0x34   : > { %s4182_s13 = scalar_lea.hbm %s4982_s5, 8192 }
  0x35   : > { %p4183_p2 = scmp.ne.s32.totalorder %s4982_s5, %s4182_s13  ;;  %p4189_p10 = scmp.lt.u32.totalorder %s4182_s13, %s4982_s5 }
  0x37   : > { %p4185_p1 = pnand %p4183_p2, %p4521_p13 }
  0x39   : > { %p4186_p6 = pneg %p4185_p1 }
  0x3b   : > { %p4191_p3 = pnand %p4189_p10, %p4186_p6 }
  0x3d   : > { %4194 = shalt.err (!%p4191_p3)
}
  0x3e   : > { %s4195_s18 = scalar_lea.vmem %s4511_s21, 8192  ;;  %p4203_p12 = scmp.lt.s32.totalorder %s4511_s21, %s4511_s21 }
  0x3f   : > { %p4196_p5 = scmp.ne.s32.totalorder %s4511_s21, %s4195_s18  ;;  %p4204_p0 = scmp.lt.s32.totalorder %s4195_s18, %s4195_s18 }
  0x41   : > { %p4198_p7 = pnand %p4196_p5, %p4521_p13  ;;  %p4205_p2 = por %p4204_p0, %p4203_p12 }
  0x43   : > { %p4199_p9 = pneg %p4198_p7 }
  0x45   : > { %p4206_p1 = pnand %p4205_p2, %p4199_p9 }
  0x47   : > { %4209 = shalt.err (!%p4206_p1)
}
  0x48   : > { %s4997_s11 = smov 256   ;;  %s4998_s8 = smov 16  }
  0x49   : > { %3648 = dma.hbm_to_vmem [thread:$0]  (!%p4507_p11), %s4982_s5, 8192, %s4511_s21, [#allocation9], %s4997_s11, %s4997_s11, %s4998_s8  }
  0x4a   : > { %s4378_s23 = smov [#allocation7]   ;;  %s4210_s17 = scalar_lea.hbm %s4980_s3, 4096 }
  0x4b   : > { %s368_s25 = sshll.u32 %s4378_s23, 4  ;;  %p4211_p6 = scmp.ne.s32.totalorder %s4980_s3, %s4210_s17  ;;  %s369_s25 = int_to_ptr.vmem [resolvable:$true] %s368_s25 }
  0x4c   : > { %p4217_p5 = scmp.lt.u32.totalorder %s4210_s17, %s4980_s3 }
  0x4d   : > { %p4213_p10 = pnand %p4211_p6, %p4521_p13 }
  0x4f   : > { %p4214_p3 = pneg %p4213_p10 }
  0x51   : > { %p4219_p7 = pnand %p4217_p5, %p4214_p3 }
  0x53   : > { %4222 = shalt.err (!%p4219_p7)
}
  0x54   : > { %s4223_s21 = scalar_lea.vmem %s369_s25, 4096  ;;  %p4231_p2 = scmp.lt.s32.totalorder %s369_s25, %s369_s25 }
  0x55   : > { %p4224_p9 = scmp.ne.s32.totalorder %s369_s25, %s4223_s21  ;;  %p4232_p1 = scmp.lt.s32.totalorder %s4223_s21, %s4223_s21 }
  0x57   : > { %p4226_p12 = pnand %p4224_p9, %p4521_p13  ;;  %p4233_p4 = por %p4232_p1, %p4231_p2 }
  0x59   : > { %p4227_p0 = pneg %p4226_p12 }
  0x5b   : > { %p4234_p8 = pnand %p4233_p4, %p4227_p0 }
  0x5d   : > { %4237 = shalt.err (!%p4234_p8)
}
  0x5e   : > { %s4379_s12 = smov 128   ;;  %s4380_s13 = smov 8  }
  0x5f   : > { %3645 = dma.hbm_to_vmem [thread:$0]  (!%p4507_p11), %s4980_s3, 4096, %s369_s25, [#allocation6], %s4379_s12, %s4379_s12, %s4380_s13  }
  0x60   : > { %s4381_s24 = smov [#allocation10]   ;;  %s4238_s22 = scalar_lea.hbm %s4984_s7, 8192 }
  0x61   : > { %s400_s30 = sshll.u32 %s4381_s24, 4  ;;  %p4239_p4 = scmp.ne.s32.totalorder %s4984_s7, %s4238_s22  ;;  %s401_s30 = int_to_ptr.vmem [resolvable:$true] %s400_s30 }
  0x62   : > { %p4245_p10 = scmp.lt.u32.totalorder %s4238_s22, %s4984_s7 }
  0x63   : > { %p4241_p8 = pnand %p4239_p4, %p4521_p13 }
  0x65   : > { %p4242_p6 = pneg %p4241_p8 }
  0x67   : > { %p4247_p3 = pnand %p4245_p10, %p4242_p6 }
  0x69   : > { %4250 = shalt.err (!%p4247_p3)
}
  0x6a   : > { %s4251_s25 = scalar_lea.vmem %s401_s30, 8192  ;;  %p4259_p12 = scmp.lt.s32.totalorder %s401_s30, %s401_s30 }
  0x6b   : > { %p4252_p5 = scmp.ne.s32.totalorder %s401_s30, %s4251_s25  ;;  %p4260_p0 = scmp.lt.s32.totalorder %s4251_s25, %s4251_s25 }
  0x6d   : > { %p4254_p7 = pnand %p4252_p5, %p4521_p13  ;;  %p4261_p2 = por %p4260_p0, %p4259_p12 }
  0x6f   : > { %p4255_p9 = pneg %p4254_p7 }
  0x71   : > { %p4262_p1 = pnand %p4261_p2, %p4255_p9 }
  0x73   : > { %4265 = shalt.err (!%p4262_p1)
}
  0x74   : > { %3651 = dma.hbm_to_vmem [thread:$0]  (!%p4507_p11), %s4984_s7, 8192, %s401_s30, [#allocation9], %s4379_s12, %s4379_s12, %s4380_s13  }
  0x75   : > { %s4605_s15 = sadd.s32 1, %s4370_s28   ;;  %s38_s11 = sadd.s32 1, %s4366_s27 }
  0x76   : > { %s35_s19 = ssub.s32 %s4370_s28, %s4605_s15  ;;  %p45_p13 = scmp.ne.s32.totalorder %s4366_s27, %s4362_s26 }
  0x77   : > { %p36_p4 = scmp.eq.s32.totalorder %s35_s19, 0  ;;  %p46_p8 = scmp.eq.s32.totalorder %s4370_s28, 0 }
  0x78   : > { %p5012_p6 = scmp.eq.s32.totalorder %s4477_s29, 1  ;;  %p3664_p3 = scmp.lt.s32.totalorder %s4370_s28, 2 }
  0x79   : > { %s4621_s24 = scalar_select %p36_p4, %s4366_s27, %s38_s11  }
  0x7a   : > { %p4615_p10 = por %p5012_p6, %p45_p13  ;;  %p47_p5 = por %p46_p8, %p45_p13 }
  0x7b   : > { %s429_s17 = sand.u32 1, %s4366_s27   ;;  %s3553_s12 = sshll.u32 %s4370_s28, 10 }
  0x7c   : > { %s3278_s20 = sshll.u32 %s429_s17, 6  ;;  %s4628_s22 = scalar_lea.hbm %s4977_s0, %s3553_s12 }
  0x7d   : > { %s433_s18 = scalar_lea.vmem [#allocation2], %s3278_s20  ;;  %p4632_p11 = pnand %p3664_p3, %p47_p5 }
  0x7e   : > { %s440_s21 = sshll.u32 %s433_s18, 4  ;;  %s4636_s1 = scalar_lea.sflag [#allocation3], %s429_s17  ;;  %s4630_s21 = int_to_ptr.vmem [resolvable:$true] %s440_s21 }
  0x7f   : > { %s4266_s23 = scalar_lea.hbm %s4628_s22, 1024  ;;  %p4268_p9 = pneg %p4632_p11 }
  0x80   : > { %p4267_p7 = scmp.ne.s32.totalorder %s4628_s22, %s4266_s23  ;;  %s4271_s20 = scalar_lea.hbm %s4977_s0, 2048 }
  0x81   : > { %p4272_p2 = scmp.lt.u32.totalorder %s4628_s22, %s4977_s0  ;;  %p4273_p1 = scmp.lt.u32.totalorder %s4271_s20, %s4266_s23 }
  0x82   : > { %p4269_p12 = pnand %p4268_p9, %p4267_p7  ;;  %p4275_p4 = scmp.lt.u32.totalorder %s4266_s23, %s4628_s22 }
  0x83   : > { %p4274_p13 = por %p4273_p1, %p4272_p2 }
  0x84   : > { %p4270_p0 = pneg %p4269_p12 }
  0x85   : > { %p4276_p8 = por %p4275_p4, %p4274_p13 }
  0x87   : > { %p4277_p6 = pnand %p4276_p8, %p4270_p0 }
  0x89   : > { %4280 = shalt.err (!%p4277_p6)
}
  0x8a   : > { %s4281_s17 = scalar_lea.vmem %s4630_s21, 1024  ;;  %s4382_s30 = smov [#allocation2]  }
  0x8b   : > { %p4282_p3 = scmp.ne.s32.totalorder %s4630_s21, %s4281_s17  ;;  %s4286_s18 = sshll.u32 %s4382_s30, 4  ;;  %s4287_s18 = int_to_ptr.vmem [resolvable:$false] %s4286_s18 }
  0x8c   : > { %s4288_s11 = scalar_lea.vmem %s4287_s18, 2048  ;;  %p4289_p12 = scmp.lt.s32.totalorder %s4630_s21, %s4287_s18 }
  0x8d   : > { %p4284_p5 = pnand %p4282_p3, %p4268_p9  ;;  %p4290_p2 = scmp.lt.s32.totalorder %s4288_s11, %s4281_s17 }
  0x8f   : > { %p4285_p7 = pneg %p4284_p5  ;;  %p4291_p1 = por %p4290_p2, %p4289_p12 }
  0x91   : > { %p4292_p13 = pnand %p4291_p1, %p4285_p7 }
  0x93   : > { %4295 = shalt.err (!%p4292_p13)
}
  0x94   : > { %s5015_s23 = smov 16   ;;  %s5016_s19 = smov 256  }
  0x95   : > { %3655 = dma.hbm_to_vmem [thread:$0]  (!%p4632_p11), %s4628_s22, 1024, %s4630_s21, %s4636_s1, %s5016_s19, %s5016_s19, %s5015_s23  }
  0x96   : > { %p5017_p9 = scmp.ne.s32.totalorder %s5008_s16, 0 }
  0x97   : > { %s4670_s20 = sand.u32 (!%p5017_p9), 1, %s4362_s26   ;;  %p5018_p0 = scmp.ne.s32.totalorder (!%p5017_p9), %s5005_s14, 0 }
  0x98   : > { %452 = sbr.rel (%p5017_p9) target bundleno = 2515 (0x9d3), region = 72  ;;  %s3282_s12 = sshll.u32 (!%p5017_p9), %s4670_s20, 6 }
  0x99   : > { %s455_s13 = scalar_lea.sflag (!%p5017_p9), [#allocation3], %s4670_s20  ;;  %s4676_s25 = scalar_lea.vmem (!%p5017_p9), [#allocation2], %s3282_s12 }
  0x9f   : > { %4341 = dma.done.wait (%p5018_p0), %s455_s13, 1024  }
  0xa0   : > { %4343 = vsyncadd (%p5018_p0), %s455_s13, 4294966272  ;;  %p5019_p11 = scmp.eq.s32.totalorder %s4477_s29, 0 }
  0xa2   : > { %4345 = dma.done.wait (%p5019_p11), [#allocation6], 16384   ;;  %p5020_p4 = pmov %p5019_p11 }
  0xa4   : > { %4347 = vsyncadd (%p5020_p4), [#allocation6], 4294950912  ;;  %p5021_p8 = pmov %p5020_p4 }
  0xa5   : > { %p5022_p6 = pmov %p5020_p4 }
  0xa6   : > { %4349 = dma.done.wait (%p5021_p8), [#allocation9], 16384  }
  0xa7   : > { %4351 = vsyncadd (%p5022_p6), [#allocation9], 4294950912  ;;  %v3714_v0 = vld [vmem:[#allocation5 + $0x4] ss:$24 sps:$4 sm:$0xff]   ;;  %v3716_v1 = vld [vmem:[#allocation5] ss:$24 sps:$4 sm:$0xff]  }
  0xa8   : > { %1145 = vmatprep.subr.bf16.mxu1 %v3714_v0  ;;  %v3717_v2 = vld [vmem:[#allocation5 + $0x34] ss:$24 sps:$4 sm:$0xff]   ;;  %v3719_v3 = vld [vmem:[#allocation5 + $0x30] ss:$24 sps:$4 sm:$0xff]   ;;  %v3720_v4 = vld [vmem:[#allocation5 + $0x64] ss:$24 sps:$4 sm:$0xff]  }
  0xa9   : > { %1146 = vmatpush1.bf16.msra.mxu1 %v3716_v1  ;;  %v3722_v5 = vld [vmem:[#allocation5 + $0x60] ss:$24 sps:$4 sm:$0xff]   ;;  %v3723_v6 = vld [vmem:[#allocation5 + $0x94] ss:$24 sps:$4 sm:$0xff]   ;;  %v3725_v7 = vld [vmem:[#allocation5 + $0x90] ss:$24 sps:$4 sm:$0xff]  }
  0xaa   : > { %1147 = vmatprep.subr.bf16.mxu1 %v3717_v2  ;;  %v3726_v8 = vld [vmem:[#allocation5 + $0xc4] ss:$24 sps:$4 sm:$0xff]   ;;  %v3728_v9 = vld [vmem:[#allocation5 + $0xc0] ss:$24 sps:$4 sm:$0xff]   ;;  %v3729_v10 = vld [vmem:[#allocation5 + $0xf4] ss:$24 sps:$4 sm:$0xff]  }
  0xab   : > { %v3731_v11 = vld [vmem:[#allocation5 + $0xf0] ss:$24 sps:$4 sm:$0xff]   ;;  %v3732_v12 = vld [vmem:[#allocation5 + $0x124] ss:$24 sps:$4 sm:$0xff]   ;;  %v3734_v16 = vld [vmem:[#allocation5 + $0x120] ss:$24 sps:$4 sm:$0xff]  }
  0xac   : > { %v519_v13 = vld [vmem:[%s4676_s25 + $0x8] sm:$0xff]  ;;  %v521_v14 = vld [vmem:[%s4676_s25 + $0x18] sm:$0xff]  ;;  %v518_v42 = vld [vmem:[%s4676_s25] sm:$0xff]  ;;  %vm1359_vm0 = vcmask 261120   ;;  %s5024_s22 = sld [smem:[#allocation20_spill]]  ;;  %s5025_s17 = sld [smem:[#allocation21_spill]] }
  0xad   : > { %1148 = vmatpush1.bf16.msra.mxu1 %v3719_v3  ;;  %v4692_v15 = vpack.c.bf16 %v521_v14, %v519_v13  ;;  %v3735_v17 = vld [vmem:[#allocation5 + $0x154] ss:$24 sps:$4 sm:$0xff]   ;;  %v3737_v18 = vld [vmem:[#allocation5 + $0x150] ss:$24 sps:$4 sm:$0xff]   ;;  %v3738_v19 = vld [vmem:[#allocation5 + $0x184] ss:$24 sps:$4 sm:$0xff]  }
  0xae   : > { %1149 = vmatprep.subr.bf16.mxu1 %v3720_v4  ;;  %v3740_v20 = vld [vmem:[#allocation5 + $0x180] ss:$24 sps:$4 sm:$0xff]   ;;  %v3741_v21 = vld [vmem:[#allocation5 + $0x1b4] ss:$24 sps:$4 sm:$0xff]   ;;  %v3743_v22 = vld [vmem:[#allocation5 + $0x1b0] ss:$24 sps:$4 sm:$0xff]  }
  0xaf   : > { %1177 = vmatprep.mubr.bf16.mxu1 %v4692_v15  ;;  %1283 = vmatprep.mubr.bf16.mxu0 %v4692_v15  ;;  %v3744_v23 = vld [vmem:[#allocation5 + $0x1e4] ss:$24 sps:$4 sm:$0xff]   ;;  %v3746_v24 = vld [vmem:[#allocation5 + $0x1e0] ss:$24 sps:$4 sm:$0xff]   ;;  %v3747_v25 = vld [vmem:[#allocation5 + $0x214] ss:$24 sps:$4 sm:$0xff]  }
  0xb0   : > { %v3749_v26 = vld [vmem:[#allocation5 + $0x210] ss:$24 sps:$4 sm:$0xff]   ;;  %v3750_v27 = vld [vmem:[#allocation5 + $0x244] ss:$24 sps:$4 sm:$0xff]   ;;  %v3810_v28 = vld [vmem:[#allocation5 + $0x14] ss:$24 sps:$4 sm:$0xff]  }
  0xb1   : > { %1150 = vmatpush1.bf16.msra.mxu1 %v3722_v5  ;;  %v3812_v29 = vld [vmem:[#allocation5 + $0x10] ss:$24 sps:$4 sm:$0xff]   ;;  %v3752_v30 = vld [vmem:[#allocation5 + $0x240] ss:$24 sps:$4 sm:$0xff]   ;;  %v3813_v31 = vld [vmem:[#allocation5 + $0x44] ss:$24 sps:$4 sm:$0xff]   ;;  %1251 = vmatprep.subr.bf16.mxu0 %v3810_v28 }
  0xb2   : > { %1151 = vmatprep.subr.bf16.mxu1 %v3723_v6  ;;  %v3753_v32 = vld [vmem:[#allocation5 + $0x274] ss:$24 sps:$4 sm:$0xff]   ;;  %1252 = vmatpush1.bf16.msra.mxu0 %v3812_v29  ;;  %v3815_v33 = vld [vmem:[#allocation5 + $0x40] ss:$24 sps:$4 sm:$0xff]   ;;  %v3755_v35 = vld [vmem:[#allocation5 + $0x270] ss:$24 sps:$4 sm:$0xff]  }
  0xb3   : > { %1253 = vmatprep.subr.bf16.mxu0 %v3813_v31  ;;  %v3816_v34 = vld [vmem:[#allocation5 + $0x74] ss:$24 sps:$4 sm:$0xff]   ;;  %v3756_v36 = vld [vmem:[#allocation5 + $0x2a4] ss:$24 sps:$4 sm:$0xff]   ;;  %v3818_v37 = vld [vmem:[#allocation5 + $0x70] ss:$24 sps:$4 sm:$0xff]  }
  0xb4   : > { %v3819_v38 = vld [vmem:[#allocation5 + $0xa4] ss:$24 sps:$4 sm:$0xff]   ;;  %v3758_v39 = vld [vmem:[#allocation5 + $0x2a0] ss:$24 sps:$4 sm:$0xff]   ;;  %v3759_v40 = vld [vmem:[#allocation5 + $0x2d4] ss:$24 sps:$4 sm:$0xff]  }
  0xb5   : > { %1152 = vmatpush1.bf16.msra.mxu1 %v3725_v7  ;;  %v3761_v41 = vld [vmem:[#allocation5 + $0x2d0] ss:$24 sps:$4 sm:$0xff]   ;;  %v3821_v43 = vld [vmem:[#allocation5 + $0xa0] ss:$24 sps:$4 sm:$0xff]   ;;  %v3822_v45 = vld [vmem:[#allocation5 + $0xd4] ss:$24 sps:$4 sm:$0xff]  }
  0xb6   : > { %1153 = vmatprep.subr.bf16.mxu1 %v3726_v8  ;;  %1254 = vmatpush1.bf16.msra.mxu0 %v3815_v33  ;;  %v520_v44 = vld [vmem:[%s4676_s25 + $0x10] sm:$0xff]  ;;  %v3764_v46 = vld [vmem:[#allocation5 + $0xc] ss:$24 sps:$4 sm:$0xff]   ;;  %v525_v48 = vld [vmem:[%s4676_s25 + $0x38] sm:$0xff]  ;;  %s516_s30 = scalar_lea.vmem [#allocation11], %s3282_s12  ;;  %s3554_s18 = sshll.u32 %s4477_s29, 10 }
  0xb7   : > { %1255 = vmatprep.subr.bf16.mxu0 %v3816_v34  ;;  %v523_v47 = vld [vmem:[%s4676_s25 + $0x28] sm:$0xff]  ;;  %v4700_v50 = vpack.c.bf16 %v520_v44, %v518_v42  ;;  %v3825_v51 = vld [vmem:[#allocation5 + $0x104] ss:$24 sps:$4 sm:$0xff]   ;;  %v3765_v55 = vld [vmem:[#allocation5 + $0x38] ss:$24 sps:$4 sm:$0xff]   ;;  %v635_v44 = vlaneseq  ;;  %s3160_s11 = sshll.u32 %s516_s30, 4  ;;  %s4933_s11 = int_to_ptr.vmem [resolvable:$true] %s3160_s11 }
  0xb8   : > { %v3824_v49 = vld [vmem:[#allocation5 + $0xd0] ss:$24 sps:$4 sm:$0xff]   ;;  %v4702_v53 = vpack.c.bf16 %v525_v48, %v523_v47  ;;  %v3767_v54 = vld [vmem:[#allocation5 + $0x3c] ss:$24 sps:$4 sm:$0xff]   ;;  %v3827_v56 = vld [vmem:[#allocation5 + $0x100] ss:$24 sps:$4 sm:$0xff]  }
  0xb9   : > { %1154 = vmatpush1.bf16.msra.mxu1 %v3728_v9  ;;  %v3762_v52 = vld [vmem:[#allocation5 + $0x8] ss:$24 sps:$4 sm:$0xff]   ;;  %v3770_v57 = vld [vmem:[#allocation5 + $0x6c] ss:$24 sps:$4 sm:$0xff]   ;;  %v524_v59 = vld [vmem:[%s4676_s25 + $0x30] sm:$0xff]  ;;  %s5026_s19 = sld [smem:[#allocation22_spill]] }
  0xba   : > { %1155 = vmatprep.subr.bf16.mxu1 %v3729_v10  ;;  %1256 = vmatpush1.bf16.msra.mxu0 %v3818_v37  ;;  %v522_v58 = vld [vmem:[%s4676_s25 + $0x20] sm:$0xff]  ;;  %v3828_v60 = vld [vmem:[#allocation5 + $0x134] ss:$24 sps:$4 sm:$0xff]   ;;  %v3830_v61 = vld [vmem:[#allocation5 + $0x130] ss:$24 sps:$4 sm:$0xff]   ;;  %s3147_s29 = scalar_lea.sflag [#allocation4], %s4670_s20 }
  0xbb   : > { %1257 = vmatprep.subr.bf16.mxu0 %v3819_v38  ;;  %v3831_v62 = vld [vmem:[#allocation5 + $0x164] ss:$24 sps:$4 sm:$0xff]   ;;  %v3768_v63 = vld [vmem:[#allocation5 + $0x68] ss:$24 sps:$4 sm:$0xff]   ;;  %v4708_v1 = vpack.c.bf16 %v524_v59, %v522_v58  ;;  %v3834_v3 = vld [vmem:[#allocation5 + $0x194] ss:$24 sps:$4 sm:$0xff]  }
  0xbc   : > { %v3773_v0 = vld [vmem:[#allocation5 + $0x9c] ss:$24 sps:$4 sm:$0xff]   ;;  %v3833_v2 = vld [vmem:[#allocation5 + $0x160] ss:$24 sps:$4 sm:$0xff]   ;;  %v3776_v5 = vld [vmem:[#allocation5 + $0xcc] ss:$24 sps:$4 sm:$0xff]  }
  0xbd   : > { %1156 = vmatpush1.bf16.msra.mxu1 %v3731_v11  ;;  %v3771_v4 = vld [vmem:[#allocation5 + $0x98] ss:$24 sps:$4 sm:$0xff]   ;;  %v3837_v7 = vld [vmem:[#allocation5 + $0x1c4] ss:$24 sps:$4 sm:$0xff]   ;;  %v3774_v8 = vld [vmem:[#allocation5 + $0xc8] ss:$24 sps:$4 sm:$0xff]  }
  0xbe   : > { %1157 = vmatprep.subr.bf16.mxu1 %v3732_v12  ;;  %1258 = vmatpush1.bf16.msra.mxu0 %v3821_v43  ;;  %v3836_v6 = vld [vmem:[#allocation5 + $0x190] ss:$24 sps:$4 sm:$0xff]   ;;  %v3779_v9 = vld [vmem:[#allocation5 + $0xfc] ss:$24 sps:$4 sm:$0xff]   ;;  %v3839_v10 = vld [vmem:[#allocation5 + $0x1c0] ss:$24 sps:$4 sm:$0xff]  }
  0xbf   : > { %1259 = vmatprep.subr.bf16.mxu0 %v3822_v45  ;;  %v3840_v11 = vld [vmem:[#allocation5 + $0x1f4] ss:$24 sps:$4 sm:$0xff]   ;;  %v3777_v12 = vld [vmem:[#allocation5 + $0xf8] ss:$24 sps:$4 sm:$0xff]   ;;  %v3855_v31 = vld [vmem:[#allocation5 + $0x2e4] ss:$24 sps:$4 sm:$0xff]   ;;  %s4931_s13 = scalar_lea.hbm %s5026_s19, %s3554_s18 }
  0xc0   : > { %v3782_v13 = vld [vmem:[#allocation5 + $0x12c] ss:$24 sps:$4 sm:$0xff]   ;;  %v3842_v14 = vld [vmem:[#allocation5 + $0x1f0] ss:$24 sps:$4 sm:$0xff]   ;;  %v3797_v33 = vld [vmem:[#allocation5 + $0x21c] ss:$24 sps:$4 sm:$0xff]  }
  0xc1   : > { %1158 = vmatpush1.bf16.msra.mxu1 %v3734_v16  ;;  %v3843_v16 = vld [vmem:[#allocation5 + $0x224] ss:$24 sps:$4 sm:$0xff]   ;;  %v3789_v28 = vld [vmem:[#allocation5 + $0x1b8] ss:$24 sps:$4 sm:$0xff]   ;;  %v3798_v37 = vld [vmem:[#allocation5 + $0x248] ss:$24 sps:$4 sm:$0xff]  }
  0xc2   : > { %1159 = vmatprep.subr.bf16.mxu1 %v3735_v17  ;;  %1260 = vmatpush1.bf16.msra.mxu0 %v3824_v49  ;;  %v3785_v17 = vld [vmem:[#allocation5 + $0x15c] ss:$24 sps:$4 sm:$0xff]   ;;  %v3794_v29 = vld [vmem:[#allocation5 + $0x1ec] ss:$24 sps:$4 sm:$0xff]   ;;  %v3857_v34 = vld [vmem:[#allocation5 + $0x2e0] ss:$24 sps:$4 sm:$0xff]  }
  0xc3   : > { %1261 = vmatprep.subr.bf16.mxu0 %v3825_v51  ;;  %v3803_v38 = vld [vmem:[#allocation5 + $0x27c] ss:$24 sps:$4 sm:$0xff]   ;;  %v3807_v43 = vld [vmem:[#allocation5 + $0x2d8] ss:$24 sps:$4 sm:$0xff]   ;;  %v4718_v45 = vshrl.u32 %v635_v44, 7  ;;  %s4383_s14 = smov [#allocation11]  }
  0xc4   : > { %v3809_v42 = vld [vmem:[#allocation5 + $0x2dc] ss:$24 sps:$4 sm:$0xff]   ;;  %v530_v47 = vld [vmem:[%s4979_s2] sm:$0x3f]  ;;  %s4300_s16 = sshll.u32 %s4383_s14, 4  ;;  %s4301_s16 = int_to_ptr.vmem [resolvable:$false] %s4300_s16 }
  0xc5   : > { %1160 = vmatpush1.bf16.msra.mxu1 %v3737_v18  ;;  %v3845_v18 = vld [vmem:[#allocation5 + $0x220] ss:$24 sps:$4 sm:$0xff]   ;;  %v4727_v48 = vsub.s32 1, %v4718_v45  ;;  %p4303_p12 = scmp.lt.s32.totalorder %s4933_s11, %s4301_s16 }
  0xc6   : > { %1161 = vmatprep.subr.bf16.mxu1 %v3738_v19  ;;  %1262 = vmatpush1.bf16.msra.mxu0 %v3827_v56  ;;  %v3846_v19 = vld [vmem:[#allocation5 + $0x254] ss:$24 sps:$4 sm:$0xff]  }
  0xc7   : > { %1263 = vmatprep.subr.bf16.mxu0 %v3828_v60  ;;  %v642_v51 = vrot.slane %v530_v47, %v4727_v48 }
  0xc9   : > { %1162 = vmatpush1.bf16.msra.mxu1 %v3740_v20  ;;  %v3783_v20 = vld [vmem:[#allocation5 + $0x158] ss:$24 sps:$4 sm:$0xff]  }
  0xca   : > { %1163 = vmatprep.subr.bf16.mxu1 %v3741_v21  ;;  %1264 = vmatpush1.bf16.msra.mxu0 %v3830_v61  ;;  %v3788_v21 = vld [vmem:[#allocation5 + $0x18c] ss:$24 sps:$4 sm:$0xff]  }
  0xcb   : > { %1265 = vmatprep.subr.bf16.mxu0 %v3831_v62 }
  0xcd   : > { %1164 = vmatpush1.bf16.msra.mxu1 %v3743_v22  ;;  %v3848_v22 = vld [vmem:[#allocation5 + $0x250] ss:$24 sps:$4 sm:$0xff]  }
  0xce   : > { %1165 = vmatprep.subr.bf16.mxu1 %v3744_v23  ;;  %1266 = vmatpush1.bf16.msra.mxu0 %v3833_v2  ;;  %v3849_v23 = vld [vmem:[#allocation5 + $0x284] ss:$24 sps:$4 sm:$0xff]  }
  0xcf   : > { %1267 = vmatprep.subr.bf16.mxu0 %v3834_v3 }
  0xd1   : > { %1166 = vmatpush1.bf16.msra.mxu1 %v3746_v24  ;;  %v3786_v24 = vld [vmem:[#allocation5 + $0x188] ss:$24 sps:$4 sm:$0xff]  }
  0xd2   : > { %1167 = vmatprep.subr.bf16.mxu1 %v3747_v25  ;;  %1268 = vmatpush1.bf16.msra.mxu0 %v3836_v6  ;;  %v3791_v25 = vld [vmem:[#allocation5 + $0x1bc] ss:$24 sps:$4 sm:$0xff]  }
  0xd3   : > { %1269 = vmatprep.subr.bf16.mxu0 %v3837_v7  ;;  %v653_v7 = vsub.s32 4, %v4718_v45 }
  0xd5   : > { %1168 = vmatpush1.bf16.msra.mxu1 %v3749_v26  ;;  %v3851_v26 = vld [vmem:[#allocation5 + $0x280] ss:$24 sps:$4 sm:$0xff]  }
  0xd6   : > { %1169 = vmatprep.subr.bf16.mxu1 %v3750_v27  ;;  %1270 = vmatpush1.bf16.msra.mxu0 %v3839_v10  ;;  %v3852_v27 = vld [vmem:[#allocation5 + $0x2b4] ss:$24 sps:$4 sm:$0xff]  }
  0xd7   : > { %1271 = vmatprep.subr.bf16.mxu0 %v3840_v11 }
  0xd9   : > { %1170 = vmatpush1.bf16.msra.mxu1 %v3752_v30  ;;  %v3854_v30 = vld [vmem:[#allocation5 + $0x2b0] ss:$24 sps:$4 sm:$0xff]  }
  0xda   : > { %1171 = vmatprep.subr.bf16.mxu1 %v3753_v32  ;;  %1272 = vmatpush1.bf16.msra.mxu0 %v3842_v14  ;;  %v3792_v32 = vld [vmem:[#allocation5 + $0x1e8] ss:$24 sps:$4 sm:$0xff]  }
  0xdb   : > { %1273 = vmatprep.subr.bf16.mxu0 %v3843_v16 }
  0xdd   : > { %1172 = vmatpush1.bf16.msra.mxu1 %v3755_v35  ;;  %v3795_v35 = vld [vmem:[#allocation5 + $0x218] ss:$24 sps:$4 sm:$0xff]  }
  0xde   : > { %1173 = vmatprep.subr.bf16.mxu1 %v3756_v36  ;;  %1274 = vmatpush1.bf16.msra.mxu0 %v3845_v18  ;;  %v3800_v36 = vld [vmem:[#allocation5 + $0x24c] ss:$24 sps:$4 sm:$0xff]  }
  0xdf   : > { %1275 = vmatprep.subr.bf16.mxu0 %v3846_v19 }
  0xe1   : > { %1174 = vmatpush1.bf16.msra.mxu1 %v3758_v39  ;;  %v3801_v39 = vld [vmem:[#allocation5 + $0x278] ss:$24 sps:$4 sm:$0xff]  }
  0xe2   : > { %1175 = vmatprep.subr.bf16.mxu1 %v3759_v40  ;;  %1276 = vmatpush1.bf16.msra.mxu0 %v3848_v22  ;;  %v3806_v40 = vld [vmem:[#allocation5 + $0x2ac] ss:$24 sps:$4 sm:$0xff]  }
  0xe3   : > { %1277 = vmatprep.subr.bf16.mxu0 %v3849_v23 }
  0xe5   : > { %1176 = vmatpush1.bf16.msra.mxu1 %v3761_v41  ;;  %v3804_v41 = vld [vmem:[#allocation5 + $0x2a8] ss:$24 sps:$4 sm:$0xff]  }
  0xe6   : > { %1198 = vmatprep.subr.bf16.mxu1 %v3764_v46  ;;  %1278 = vmatpush1.bf16.msra.mxu0 %v3851_v26  ;;  %v4721_v46 = vsub.s32 0, %v4718_v45 }
  0xe7   : > { %1279 = vmatprep.subr.bf16.mxu0 %v3852_v27 }
  0xe8   : > { %1178 = vmatmul.mubr.bf16.vlgmr.msra.gmra.mrb[0].mxu1 %v4700_v50  ;;  %v638_v49 = vrot.slane %v530_v47, %v4721_v46 }
  0xe9   : > { %1199 = vmatpush1.bf16.msra.mxu1 %v3762_v52  ;;  %1187 = vmatprep.mubr.bf16.mxu1 %v4702_v53 }
  0xea   : > { %1200 = vmatprep.subr.bf16.mxu1 %v3767_v54  ;;  %1280 = vmatpush1.bf16.msra.mxu0 %v3854_v30 }
  0xeb   : > { %1281 = vmatprep.subr.bf16.mxu0 %v3855_v31  ;;  %v649_v31 = vsub.s32 3, %v4718_v45 }
  0xed   : > { %1201 = vmatpush1.bf16.msra.mxu1 %v3765_v55 }
  0xee   : > { %1202 = vmatprep.subr.bf16.mxu1 %v3770_v57  ;;  %1282 = vmatpush1.bf16.msra.mxu0 %v3857_v34 }
  0xf0   : > { %1188 = vmatmul.mubr.bf16.gmra.mrb[4].mxu1 %v4708_v1 }
  0xf1   : > { %1203 = vmatpush1.bf16.msra.mxu1 %v3768_v63  ;;  %1230 = vmatprep.mubr.bf16.mxu1 %v4692_v15  ;;  %v3780_v15 = vld [vmem:[#allocation5 + $0x128] ss:$24 sps:$4 sm:$0xff]  }
  0xf2   : > { %1204 = vmatprep.subr.bf16.mxu1 %v3773_v0  ;;  %1284 = vmatmul.mubr.bf16.vlgmr.msra.gmra.mrb[0].mxu0 %v4700_v50 }
  0xf3   : > { %1293 = vmatprep.mubr.bf16.mxu0 %v4702_v53 }
  0xf5   : > { %1205 = vmatpush1.bf16.msra.mxu1 %v3771_v4 }
  0xf6   : > { %1206 = vmatprep.subr.bf16.mxu1 %v3776_v5 }
  0xf9   : > { %1207 = vmatpush1.bf16.msra.mxu1 %v3774_v8  ;;  %v657_v8 = vsub.s32 5, %v4718_v45 }
  0xfa   : > { %1208 = vmatprep.subr.bf16.mxu1 %v3779_v9  ;;  %1294 = vmatmul.mubr.bf16.gmra.mrb[4].mxu0 %v4708_v1  ;;  %v654_v9 = vrot.slane %v530_v47, %v653_v7 }
  0xfb   : > { %v658_v10 = vrot.slane %v530_v47, %v657_v8 }
  0xfd   : > { %1209 = vmatpush1.bf16.msra.mxu1 %v3777_v12 }
  0xfe   : > { %1210 = vmatprep.subr.bf16.mxu1 %v3782_v13 }
 0x101   : > { %1211 = vmatpush1.bf16.msra.mxu1 %v3780_v15 }
 0x102   : > { %1212 = vmatprep.subr.bf16.mxu1 %v3785_v17 }
 0x105   : > { %1213 = vmatpush1.bf16.msra.mxu1 %v3783_v20 }
 0x106   : > { %1214 = vmatprep.subr.bf16.mxu1 %v3788_v21 }
 0x109   : > { %1215 = vmatpush1.bf16.msra.mxu1 %v3786_v24 }
 0x10a   : > { %1216 = vmatprep.subr.bf16.mxu1 %v3791_v25 }
 0x10d   : > { %1217 = vmatpush1.bf16.msra.mxu1 %v3789_v28 }
 0x10e   : > { %1218 = vmatprep.subr.bf16.mxu1 %v3794_v29  ;;  %v645_v29 = vsub.s32 2, %v4718_v45 }
 0x111   : > { %1219 = vmatpush1.bf16.msra.mxu1 %v3792_v32 }
 0x112   : > { %1220 = vmatprep.subr.bf16.mxu1 %v3797_v33  ;;  %v646_v33 = vrot.slane %v530_v47, %v645_v29 }
 0x115   : > { %1221 = vmatpush1.bf16.msra.mxu1 %v3795_v35  ;;  %v650_v35 = vrot.slane %v530_v47, %v649_v31 }
 0x116   : > { %1222 = vmatprep.subr.bf16.mxu1 %v3800_v36 }
 0x119   : > { %1223 = vmatpush1.bf16.msra.mxu1 %v3798_v37 }
 0x11a   : > { %1224 = vmatprep.subr.bf16.mxu1 %v3803_v38 }
 0x11d   : > { %1225 = vmatpush1.bf16.msra.mxu1 %v3801_v39 }
 0x11e   : > { %1226 = vmatprep.subr.bf16.mxu1 %v3806_v40 }
 0x121   : > { %1227 = vmatpush1.bf16.msra.mxu1 %v3804_v41 }
 0x122   : > { %1228 = vmatprep.subr.bf16.mxu1 %v3809_v42 }
 0x125   : > { %1229 = vmatpush1.bf16.msra.mxu1 %v3807_v43 }
 0x128   : > { %1231 = vmatmul.mubr.bf16.vlgmr.msra.gmra.mrb[8].mxu1 %v4700_v50 }
 0x129   : > { %1240 = vmatprep.mubr.bf16.mxu1 %v4702_v53 }
 0x130   : > { %1241 = vmatmul.mubr.bf16.gmra.mrb[12].mxu1 %v4708_v1 }
 0x1bb   : > { %v1179_v50 = vpop.f32.mrb[0].mxu1 }
 0x1bc   : > { %v1180_v52 = vadd.f32 %v1179_v50, %v638_v49  ;;  %v1181_v53 = vpop.f32.mrb[1].mxu1 }
 0x1bd   : > { %v1183_v54 = vpop.f32.mrb[2].mxu1  ;;  %v1182_v57 = vadd.f32 %v1181_v53, %v642_v51 }
 0x1be   : > { %v1184_v55 = vadd.f32 %v1183_v54, %v638_v49  ;;  %v1185_v56 = vpop.f32.mrb[3].mxu1 }
 0x1bf   : > { %v1186_v58 = vadd.f32 %v1185_v56, %v642_v51 }
 0x1c0   : > { %v1304_v59 = vpack.c.bf16 %v1184_v55, %v1180_v52 }
 0x1c1   : > { %v1463_v60 = vpack.c.bf16 %v1186_v58, %v1182_v57 }
 0x1c2   : > { %3575 = vmatprep.mubr.bf16.mxu1 %v1304_v59 }
 0x1c3   : > { %3591 = vmatprep.mubr.bf16.mxu0 %v1463_v60  ;;  %v1189_v61 = vpop.f32.mrb[4].mxu1 }
 0x1c4   : > { %v4731_v62 = vadd.f32 %v1189_v61, %v638_v49  ;;  %v1191_v63 = vpop.f32.mrb[5].mxu1 }
 0x1c5   : > { %v4733_v0 = vadd.f32 %v1191_v63, %v642_v51  ;;  %v1193_v1 = vpop.f32.mrb[6].mxu1  ;;  %v1285_v11 = vpop.f32.mrb[0].mxu0 }
 0x1c6   : > { %v4735_v2 = vadd.f32 %v1193_v1, %v638_v49  ;;  %v1195_v3 = vpop.f32.mrb[7].mxu1  ;;  %v1286_v12 = vadd.f32 %v1285_v11, %v654_v9  ;;  %v1287_v13 = vpop.f32.mrb[1].mxu0 }
 0x1c7   : > { %v1196_v4 = vadd.f32 %v1195_v3, %v642_v51  ;;  %v1288_v14 = vadd.f32 %v1287_v13, %v658_v10  ;;  %v1289_v16 = vpop.f32.mrb[2].mxu0 }
 0x1c8   : > { %v1305_v5 = vpack.c.bf16 %v4735_v2, %v4731_v62  ;;  %v1290_v15 = vadd.f32 %v1289_v16, %v654_v9  ;;  %v1291_v17 = vpop.f32.mrb[3].mxu0 }
 0x1c9   : > { %v1464_v6 = vpack.c.bf16 %v1196_v4, %v4733_v0  ;;  %v1292_v18 = vadd.f32 %v1291_v17, %v658_v10 }
 0x1ca   : > { %v1308_v19 = vpack.c.bf16 %v1290_v15, %v1286_v12 }
 0x1cb   : > { %v1467_v20 = vpack.c.bf16 %v1292_v18, %v1288_v14 }
 0x1cd   : > { %v1295_v21 = vpop.f32.mrb[4].mxu0 }
 0x1ce   : > { %v1296_v22 = vadd.f32 %v1295_v21, %v654_v9  ;;  %v1297_v23 = vpop.f32.mrb[5].mxu0 }
 0x1cf   : > { %v1298_v24 = vadd.f32 %v1297_v23, %v658_v10  ;;  %v1299_v25 = vpop.f32.mrb[6].mxu0 }
 0x1d0   : > { %v1300_v26 = vadd.f32 %v1299_v25, %v654_v9  ;;  %v1301_v27 = vpop.f32.mrb[7].mxu0 }
 0x1d1   : > { %v1302_v28 = vadd.f32 %v1301_v27, %v658_v10 }
 0x1d2   : > { %v1309_v30 = vpack.c.bf16 %v1300_v26, %v1296_v22 }
 0x1d3   : > { %v1468_v32 = vpack.c.bf16 %v1302_v28, %v1298_v24 }
 0x1fb   : > { %v1232_v34 = vpop.f32.mrb[8].mxu1 }
 0x1fc   : > { %v1234_v36 = vpop.f32.mrb[9].mxu1  ;;  %v1233_v38 = vadd.f32 %v1232_v34, %v646_v33 }
 0x1fd   : > { %v1236_v37 = vpop.f32.mrb[10].mxu1  ;;  %v1235_v41 = vadd.f32 %v1234_v36, %v650_v35 }
 0x1fe   : > { %v1237_v39 = vadd.f32 %v1236_v37, %v646_v33  ;;  %v1238_v40 = vpop.f32.mrb[11].mxu1 }
 0x1ff   : > { %v1239_v42 = vadd.f32 %v1238_v40, %v650_v35 }
 0x200   : > { %v1306_v43 = vpack.c.bf16 %v1237_v39, %v1233_v38 }
 0x201   : > { %v1465_v44 = vpack.c.bf16 %v1239_v42, %v1235_v41 }
 0x202   : > { %3571 = vmatprep.subr.bf16.mxu1 %v1306_v43 }
 0x203   : > { %v1242_v49 = vpop.f32.mrb[12].mxu1  ;;  %3572 = vmatpush3.bf16.xpose.msra.mxu1 %v1306_v43  ;;  %3587 = vmatprep.subr.bf16.mxu0 %v1465_v44 }
 0x204   : > { %v1244_v50 = vpop.f32.mrb[13].mxu1  ;;  %3588 = vmatpush3.bf16.xpose.msra.mxu0 %v1465_v44  ;;  %v1243_v52 = vadd.f32 %v1242_v49, %v646_v33 }
 0x205   : > { %v1246_v51 = vpop.f32.mrb[14].mxu1  ;;  %v1245_v47 = vadd.f32 %v1244_v50, %v650_v35 }
 0x206   : > { %v1247_v53 = vadd.f32 %v1246_v51, %v646_v33  ;;  %v1248_v54 = vpop.f32.mrb[15].mxu1 }
 0x207   : > { %v1249_v55 = vadd.f32 %v1248_v54, %v650_v35 }
 0x208   : > { %v1307_v56 = vpack.c.bf16 %v1247_v53, %v1243_v52 }
 0x209   : > { %v1466_v57 = vpack.c.bf16 %v1249_v55, %v1245_v47 }
 0x20a   : > { %3573 = vmatprep.subr.bf16.mxu1 %v1307_v56 }
 0x20b   : > { %3574 = vmatpush3.bf16.xpose.msra.mxu1 %v1307_v56  ;;  %3589 = vmatprep.subr.bf16.mxu0 %v1466_v57 }
 0x20c   : > { %3590 = vmatpush3.bf16.xpose.msra.mxu0 %v1466_v57  ;;  %3579 = vmatprep.subr.bf16.mxu1 %v1308_v19 }
 0x20d   : > { %3595 = vmatprep.subr.bf16.mxu0 %v1467_v20 }
 0x212   : > { %3576 = vmatmul.mubr.bf16.vlgmr.msra.gmra.mrb[16].mxu1 %v1305_v5 }
 0x213   : > { %3592 = vmatmul.mubr.bf16.vlgmr.msra.gmra.mrb[8].mxu0 %v1464_v6  ;;  %3580 = vmatpush3.bf16.msra.mxu1 %v1308_v19 }
 0x214   : > { %3596 = vmatpush3.bf16.msra.mxu0 %v1467_v20  ;;  %3581 = vmatprep.subr.bf16.mxu1 %v1309_v30 }
 0x215   : > { %3597 = vmatprep.subr.bf16.mxu0 %v1468_v32 }
 0x217   : > { %3582 = vmatpush3.bf16.msra.mxu1 %v1309_v30 }
 0x218   : > { %3598 = vmatpush3.bf16.msra.mxu0 %v1468_v32 }
 0x2e5   : > { %v3577_v58 = vpop.f32.mrb[16].mxu1 }
 0x2e6   : > { %v1344_v59 = vpop.f32.mrb[17].mxu1  ;;  %v3593_v60 = vpop.f32.mrb[8].mxu0  ;;  %v1366_v8 = vsel %vm1359_vm0, %v3577_v58, -inf }
 0x2e7   : > { %v3578_v61 = vpop.f32.mrb[18].mxu1  ;;  %v1503_v62 = vpop.f32.mrb[9].mxu0  ;;  %v1524_v63 = vsel %vm1359_vm0, %v3593_v60, -inf  ;;  %v1360_v0 = vsel %vm1359_vm0, %v1344_v59, -inf }
 0x2e8   : > { %1525 = vmax.xlane.f32.xlu0 %v1524_v63  ;;  %v3594_v1 = vpop.f32.mrb[10].mxu0  ;;  %1361 = vmax.xlane.f32.xlu1 %v1360_v0  ;;  %v1347_v2 = vpop.f32.mrb[19].mxu1  ;;  %v1518_v4 = vsel %vm1359_vm0, %v1503_v62, -inf  ;;  %v1369_v9 = vsel %vm1359_vm0, %v3578_v61, -inf  ;;  %v3866_v63 = vld [vmem:[#allocation7 + $0x24] ss:$8 sps:$4 sm:$0xff]  }
 0x2e9   : > { %v1506_v3 = vpop.f32.mrb[11].mxu0  ;;  %v1363_v5 = vsel %vm1359_vm0, %v1347_v2, -inf  ;;  %v1527_v7 = vsel %vm1359_vm0, %v3594_v1, -inf  ;;  %v3864_v0 = vld [vmem:[#allocation7 + $0x20] ss:$8 sps:$4 sm:$0xff]  }
 0x2ea   : > { %v1521_v6 = vsel %vm1359_vm0, %v1506_v3, -inf }
 0x2ec   : > { %1519 = vmax.xlane.f32.xlu0 %v1518_v4  ;;  %1364 = vmax.xlane.f32.xlu1 %v1363_v5  ;;  %v3870_v4 = vld [vmem:[#allocation7 + $0x40] ss:$8 sps:$4 sm:$0xff]   ;;  %v3875_v5 = vld [vmem:[#allocation7 + $0x54] ss:$8 sps:$4 sm:$0xff]  }
 0x2f0   : > { %1522 = vmax.xlane.f32.xlu0 %v1521_v6  ;;  %1528 = vmax.xlane.f32.xlu1 %v1527_v7  ;;  %v3873_v6 = vld [vmem:[#allocation7 + $0x50] ss:$8 sps:$4 sm:$0xff]   ;;  %v3878_v7 = vld [vmem:[#allocation7 + $0x64] ss:$8 sps:$4 sm:$0xff]  }
 0x2f4   : > { %1367 = vmax.xlane.f32.xlu0 %v1366_v8  ;;  %1370 = vmax.xlane.f32.xlu1 %v1369_v9  ;;  %v3876_v8 = vld [vmem:[#allocation7 + $0x60] ss:$8 sps:$4 sm:$0xff]   ;;  %v3881_v9 = vld [vmem:[#allocation7 + $0x74] ss:$8 sps:$4 sm:$0xff]  }
 0x375   : > { %v1526_v10 = vpop.xlane.xlu0 %1525  ;;  %v1362_v11 = vpop.xlane.xlu1 %1361 }
 0x376   : > { %v1372_v12 = vsub.f32 %v1344_v59, %v1362_v11  ;;  %v1532_v13 = vsub.f32 %v3593_v60, %v1526_v10  ;;  %v3858_v59 = vld [vmem:[#allocation7] ss:$8 sps:$4 sm:$0xff]   ;;  %v3860_v60 = vld [vmem:[#allocation7 + $0x4] ss:$8 sps:$4 sm:$0xff]   ;;  %v3879_v10 = vld [vmem:[#allocation7 + $0x70] ss:$8 sps:$4 sm:$0xff]  }
 0x377   : > { %1824 = vmatprep.subr.bf16.mxu1 %v3860_v60  ;;  %v3884_v11 = vld [vmem:[#allocation7 + $0x84] ss:$8 sps:$4 sm:$0xff]  }
 0x378   : > { %v1376_v14 = vmul.f32 1.442695, %v1372_v12  ;;  %v1538_v21 = vmul.f32 1.442695, %v1532_v13  ;;  %v3882_v12 = vld [vmem:[#allocation7 + $0x80] ss:$8 sps:$4 sm:$0xff]  }
 0x379   : > { %v1520_v16 = vpop.xlane.xlu0 %1519  ;;  %v1365_v15 = vpop.xlane.xlu1 %1364  ;;  %v3887_v13 = vld [vmem:[#allocation7 + $0x94] ss:$8 sps:$4 sm:$0xff]  }
 0x37a   : > { %v1530_v17 = vsub.f32 %v1503_v62, %v1520_v16  ;;  %v1373_v18 = vsub.f32 %v1347_v2, %v1365_v15  ;;  %4098 = vpow2.f32 %v1376_v14  ;;  %v3861_v62 = vld [vmem:[#allocation7 + $0x10] ss:$8 sps:$4 sm:$0xff]   ;;  %v3890_v16 = vld [vmem:[#allocation7 + $0xa4] ss:$8 sps:$4 sm:$0xff]   ;;  %v3888_v15 = vld [vmem:[#allocation7 + $0xa0] ss:$8 sps:$4 sm:$0xff]  }
 0x37b   : > { %v3867_v2 = vld [vmem:[#allocation7 + $0x30] ss:$8 sps:$4 sm:$0xff]  }
 0x37c   : > { %v1534_v19 = vmul.f32 1.442695, %v1530_v17  ;;  %v1378_v20 = vmul.f32 1.442695, %v1373_v18  ;;  %v3885_v14 = vld [vmem:[#allocation7 + $0x90] ss:$8 sps:$4 sm:$0xff]  }
 0x37d   : > { %v1523_v22 = vpop.xlane.xlu0 %1522  ;;  %v1529_v23 = vpop.xlane.xlu1 %1528  ;;  %v3893_v17 = vld [vmem:[#allocation7 + $0xb4] ss:$8 sps:$4 sm:$0xff]   ;;  %v3891_v18 = vld [vmem:[#allocation7 + $0xb0] ss:$8 sps:$4 sm:$0xff]  }
 0x37e   : > { %4100 = vpow2.f32 %v1534_v19  ;;  %v1531_v24 = vsub.f32 %v1506_v3, %v1523_v22  ;;  %v1533_v25 = vsub.f32 %v3594_v1, %v1529_v23  ;;  %v3869_v1 = vld [vmem:[#allocation7 + $0x34] ss:$8 sps:$4 sm:$0xff]   ;;  %v3872_v3 = vld [vmem:[#allocation7 + $0x44] ss:$8 sps:$4 sm:$0xff]   ;;  %v3897_v22 = vld [vmem:[#allocation7 + $0xd0] ss:$8 sps:$4 sm:$0xff]  }
 0x37f   : > { %4102 = vpow2.f32 %v1378_v20  ;;  %v3896_v19 = vld [vmem:[#allocation7 + $0xc4] ss:$8 sps:$4 sm:$0xff]   ;;  %v3894_v20 = vld [vmem:[#allocation7 + $0xc0] ss:$8 sps:$4 sm:$0xff]  }
 0x380   : > { %v1536_v26 = vmul.f32 1.442695, %v1531_v24  ;;  %v1540_v27 = vmul.f32 1.442695, %v1533_v25  ;;  %4104 = vpow2.f32 %v1538_v21  ;;  %v3899_v21 = vld [vmem:[#allocation7 + $0xd4] ss:$8 sps:$4 sm:$0xff]  }
 0x381   : > { %v1368_v28 = vpop.xlane.xlu0 %1367  ;;  %v1371_v30 = vpop.xlane.xlu1 %1370  ;;  %v3902_v23 = vld [vmem:[#allocation7 + $0xe4] ss:$8 sps:$4 sm:$0xff]   ;;  %v3900_v24 = vld [vmem:[#allocation7 + $0xe0] ss:$8 sps:$4 sm:$0xff]   ;;  %v3905_v25 = vld [vmem:[#allocation7 + $0xf4] ss:$8 sps:$4 sm:$0xff]  }
 0x382   : > { %4106 = vpow2.f32 %v1536_v26  ;;  %v1374_v32 = vsub.f32 %v3577_v58, %v1368_v28  ;;  %v1375_v33 = vsub.f32 %v3578_v61, %v1371_v30  ;;  %v3863_v61 = vld [vmem:[#allocation7 + $0x14] ss:$8 sps:$4 sm:$0xff]   ;;  %v3903_v26 = vld [vmem:[#allocation7 + $0xf0] ss:$8 sps:$4 sm:$0xff]  }
 0x383   : > { %4108 = vpow2.f32 %v1540_v27 }
 0x384   : > { %v1380_v34 = vmul.f32 1.442695, %v1374_v32  ;;  %v1382_v35 = vmul.f32 1.442695, %v1375_v33  ;;  %v4099_v36 = vpop.eup %4098 }
 0x385   : > { %v1384_v44 = vsel %vm1359_vm0, %v4099_v36, 0.0 }
 0x386   : > { %4110 = vpow2.f32 %v1380_v34 }
 0x387   : > { %4112 = vpow2.f32 %v1382_v35 }
 0x388   : > { %v4101_v37 = vpop.eup %4100 }
 0x389   : > { %v4103_v38 = vpop.eup %4102  ;;  %v1542_v39 = vsel %vm1359_vm0, %v4101_v37, 0.0 }
 0x38a   : > { %1543 = vadd.xlane.f32.xlu0 %v1542_v39  ;;  %v1396_v40 = vpack.c.bf16 %v4103_v38, %v4099_v36  ;;  %v4105_v41 = vpop.eup %4104  ;;  %v1387_v47 = vsel %vm1359_vm0, %v4103_v38, 0.0 }
 0x38b   : > { %v1548_v54 = vsel %vm1359_vm0, %v4105_v41, 0.0 }
 0x38c   : > { %v4107_v42 = vpop.eup %4106  ;;  %3583 = vmatprep.mubr.msk.bf16.mxu1 %vm1359_vm0, %v1396_v40 }
 0x38d   : > { %v4109_v43 = vpop.eup %4108  ;;  %v1545_v49 = vsel %vm1359_vm0, %v4107_v42, 0.0  ;;  %v1554_v50 = vpack.c.bf16 %v4107_v42, %v4101_v37 }
 0x38e   : > { %1385 = vadd.xlane.f32.xlu0 %v1384_v44  ;;  %1546 = vadd.xlane.f32.xlu1 %v1545_v49  ;;  %v1555_v51 = vpack.c.bf16 %v4109_v43, %v4105_v41  ;;  %v1551_v57 = vsel %vm1359_vm0, %v4109_v43, 0.0 }
 0x38f   : > { %3599 = vmatprep.mubr.msk.bf16.mxu0 %vm1359_vm0, %v1554_v50 }
 0x390   : > { %v4111_v52 = vpop.eup %4110  ;;  %3600 = vmatmul.mubr.msk.bf16.vlgmr.msra.gmra.mrb[12].mxu0 %vm1359_vm0, %v1555_v51 }
 0x391   : > { %v4113_v53 = vpop.eup %4112  ;;  %v1390_v56 = vsel %vm1359_vm0, %v4111_v52, 0.0 }
 0x392   : > { %1549 = vadd.xlane.f32.xlu0 %v1548_v54  ;;  %1388 = vadd.xlane.f32.xlu1 %v1387_v47  ;;  %v1397_v55 = vpack.c.bf16 %v4113_v53, %v4111_v52  ;;  %v1393_v58 = vsel %vm1359_vm0, %v4113_v53, 0.0 }
 0x394   : > { %3584 = vmatmul.mubr.msk.bf16.vlgmr.msra.gmra.mrb[20].mxu1 %vm1359_vm0, %v1397_v55 }
 0x395   : > { %1825 = vmatpush1.bf16.msra.mxu1 %v3858_v59 }
 0x396   : > { %1391 = vadd.xlane.f32.xlu0 %v1390_v56  ;;  %1552 = vadd.xlane.f32.xlu1 %v1551_v57 }
 0x397   : > { %1826 = vmatprep.subr.bf16.mxu1 %v3863_v61 }
 0x399   : > { %1827 = vmatpush1.bf16.msra.mxu1 %v3861_v62 }
 0x39a   : > { %1394 = vadd.xlane.f32.xlu1 %v1393_v58  ;;  %1828 = vmatprep.subr.bf16.mxu1 %v3866_v63 }
 0x39d   : > { %1829 = vmatpush1.bf16.msra.mxu1 %v3864_v0 }
 0x39e   : > { %1830 = vmatprep.subr.bf16.mxu1 %v3869_v1 }
 0x3a1   : > { %1831 = vmatpush1.bf16.msra.mxu1 %v3867_v2 }
 0x3a2   : > { %1832 = vmatprep.subr.bf16.mxu1 %v3872_v3 }
 0x3a5   : > { %1833 = vmatpush1.bf16.msra.mxu1 %v3870_v4  ;;  %v531_v4 = vld [vmem:[%s4981_s4] sm:$0x3] }
 0x3a6   : > { %1834 = vmatprep.subr.bf16.mxu1 %v3875_v5  ;;  %v1657_v5 = vrot.slane %v531_v4, %v4721_v46 }
 0x3a9   : > { %1835 = vmatpush1.bf16.msra.mxu1 %v3873_v6  ;;  %v1661_v6 = vrot.slane %v531_v4, %v4727_v48  ;;  %v3938_v4 = vld [vmem:[#allocation8 + $0xa4] ss:$16 sps:$4 sm:$0xff]  }
 0x3aa   : > { %1836 = vmatprep.subr.bf16.mxu1 %v3878_v7 }
 0x3ad   : > { %1837 = vmatpush1.bf16.msra.mxu1 %v3876_v8 }
 0x3ae   : > { %1838 = vmatprep.subr.bf16.mxu1 %v3881_v9 }
 0x3b1   : > { %1839 = vmatpush1.bf16.msra.mxu1 %v3879_v10 }
 0x3b2   : > { %1840 = vmatprep.subr.bf16.mxu1 %v3884_v11 }
 0x3b5   : > { %1841 = vmatpush1.bf16.msra.mxu1 %v3882_v12  ;;  %v4146_v12 = vld [vmem:[%s4676_s25] sm:$0xff] }
 0x3b6   : > { %1842 = vmatprep.subr.bf16.mxu1 %v3887_v13 }
 0x3b9   : > { %1843 = vmatpush1.bf16.msra.mxu1 %v3885_v14 }
 0x3ba   : > { %1844 = vmatprep.subr.bf16.mxu1 %v3890_v16 }
 0x3bd   : > { %1845 = vmatpush1.bf16.msra.mxu1 %v3888_v15  ;;  %v4147_v15 = vld [vmem:[%s4676_s25 + $0x8] sm:$0xff] }
 0x3be   : > { %1846 = vmatprep.subr.bf16.mxu1 %v3893_v17 }
 0x3c1   : > { %1847 = vmatpush1.bf16.msra.mxu1 %v3891_v18 }
 0x3c2   : > { %1848 = vmatprep.subr.bf16.mxu1 %v3896_v19  ;;  %v4148_v19 = vld [vmem:[%s4676_s25 + $0x10] sm:$0xff] }
 0x3c5   : > { %1849 = vmatpush1.bf16.msra.mxu1 %v3894_v20 }
 0x3c6   : > { %1850 = vmatprep.subr.bf16.mxu1 %v3899_v21  ;;  %v4149_v21 = vld [vmem:[%s4676_s25 + $0x18] sm:$0xff] }
 0x3c9   : > { %1851 = vmatpush1.bf16.msra.mxu1 %v3897_v22 }
 0x3ca   : > { %1852 = vmatprep.subr.bf16.mxu1 %v3902_v23 }
 0x3cd   : > { %1853 = vmatpush1.bf16.msra.mxu1 %v3900_v24 }
 0x3ce   : > { %1854 = vmatprep.subr.bf16.mxu1 %v3905_v25 }
 0x3d1   : > { %1855 = vmatpush1.bf16.msra.mxu1 %v3903_v26 }
 0x417   : > { %v1544_v27 = vpop.xlane.xlu0 %1543 }
 0x418   : > { %4114 = vrcp.f32 %v1544_v27 }
 0x41b   : > { %v1547_v28 = vpop.xlane.xlu1 %1546  ;;  %v1386_v30 = vpop.xlane.xlu0 %1385 }
 0x41f   : > { %v1389_v32 = vpop.xlane.xlu1 %1388  ;;  %v1550_v33 = vpop.xlane.xlu0 %1549 }
 0x420   : > { %4116 = vrcp.f32 %v1550_v33 }
 0x422   : > { %v4115_v37 = vpop.eup %4114 }
 0x423   : > { %v1553_v34 = vpop.xlane.xlu1 %1552  ;;  %v1392_v35 = vpop.xlane.xlu0 %1391 }
 0x424   : > { %4118 = vrcp.f32 %v1553_v34 }
 0x425   : > { %4120 = vrcp.f32 %v1547_v28 }
 0x426   : > { %4122 = vrcp.f32 %v1386_v30 }
 0x427   : > { %v1395_v36 = vpop.xlane.xlu1 %1394  ;;  %4124 = vrcp.f32 %v1392_v35 }
 0x428   : > { %4126 = vrcp.f32 %v1395_v36  ;;  %v4151_v36 = vld [vmem:[%s4676_s25 + $0x28] sm:$0xff] }
 0x429   : > { %4128 = vrcp.f32 %v1389_v32  ;;  %v4150_v32 = vld [vmem:[%s4676_s25 + $0x20] sm:$0xff] }
 0x42a   : > { %v4117_v39 = vpop.eup %4116 }
 0x42e   : > { %v4119_v41 = vpop.eup %4118 }
 0x42f   : > { %v4121_v43 = vpop.eup %4120 }
 0x430   : > { %v4123_v51 = vpop.eup %4122 }
 0x431   : > { %v4125_v47 = vpop.eup %4124 }
 0x432   : > { %v4127_v57 = vpop.eup %4126 }
 0x433   : > { %v4129_v60 = vpop.eup %4128 }
 0x463   : > { %v3601_v38 = vpop.f32.mrb[12].mxu0 }
 0x464   : > { %v1596_v40 = vpop.f32.mrb[13].mxu0  ;;  %v1617_v44 = vmul.f32 %v4117_v39, %v3601_v38  ;;  %v4152_v39 = vld [vmem:[%s4676_s25 + $0x30] sm:$0xff] }
 0x465   : > { %v3602_v42 = vpop.f32.mrb[14].mxu0  ;;  %v1615_v52 = vmul.f32 %v4115_v37, %v1596_v40 }
 0x466   : > { %v1618_v49 = vmul.f32 %v4119_v41, %v3602_v42  ;;  %v1599_v50 = vpop.f32.mrb[15].mxu0  ;;  %v4153_v41 = vld [vmem:[%s4676_s25 + $0x38] sm:$0xff]  ;;  %s5023_s25 = sld [smem:[#allocation19_spill]] }
 0x467   : > { %v3585_v53 = vpop.f32.mrb[20].mxu1  ;;  %v1616_v54 = vmul.f32 %v4121_v43, %v1599_v50  ;;  %v3908_v50 = vld [vmem:[#allocation8 + $0x4] ss:$16 sps:$4 sm:$0xff]  }
 0x468   : > { %v1620_v55 = vpack.c.bf16 %v1618_v49, %v1617_v44  ;;  %v1438_v56 = vpop.f32.mrb[21].mxu1  ;;  %v1459_v61 = vmul.f32 %v4125_v47, %v3585_v53  ;;  %v3906_v49 = vld [vmem:[#allocation8] ss:$16 sps:$4 sm:$0xff]   ;;  %v3914_v53 = vld [vmem:[#allocation8 + $0x24] ss:$16 sps:$4 sm:$0xff]   ;;  %2397 = vmatprep.subr.bf16.mxu0 %v3908_v50 }
 0x469   : > { %v1619_v58 = vpack.c.bf16 %v1616_v54, %v1615_v52  ;;  %v3586_v59 = vpop.f32.mrb[22].mxu1  ;;  %v1457_v0 = vmul.f32 %v4123_v51, %v1438_v56  ;;  %v3909_v51 = vld [vmem:[#allocation8 + $0x8] ss:$16 sps:$4 sm:$0xff]   ;;  %v3911_v52 = vld [vmem:[#allocation8 + $0xc] ss:$16 sps:$4 sm:$0xff]   ;;  %2398 = vmatpush1.bf16.msra.mxu0 %v3906_v49 }
 0x46a   : > { %v1460_v62 = vmul.f32 %v4127_v57, %v3586_v59  ;;  %v1441_v63 = vpop.f32.mrb[23].mxu1  ;;  %v3917_v54 = vld [vmem:[#allocation8 + $0x2c] ss:$16 sps:$4 sm:$0xff]   ;;  %2450 = vmatprep.subr.bf16.mxu1 %v3911_v52  ;;  %v3912_v47 = vld [vmem:[#allocation8 + $0x20] ss:$16 sps:$4 sm:$0xff]   ;;  %2399 = vmatprep.subr.bf16.mxu0 %v3914_v53 }
 0x46b   : > { %v1458_v1 = vmul.f32 %v4129_v60, %v1441_v63  ;;  %1856 = vmatprep.mubr.bf16.mxu1 %v1619_v58  ;;  %v3920_v56 = vld [vmem:[#allocation8 + $0x44] ss:$16 sps:$4 sm:$0xff]   ;;  %v3923_v57 = vld [vmem:[#allocation8 + $0x4c] ss:$16 sps:$4 sm:$0xff]   ;;  %v3918_v58 = vld [vmem:[#allocation8 + $0x40] ss:$16 sps:$4 sm:$0xff]  }
 0x46c   : > { %v1462_v2 = vpack.c.bf16 %v1460_v62, %v1459_v61  ;;  %v3921_v59 = vld [vmem:[#allocation8 + $0x48] ss:$16 sps:$4 sm:$0xff]   ;;  %v3926_v60 = vld [vmem:[#allocation8 + $0x64] ss:$16 sps:$4 sm:$0xff]   ;;  %v3929_v61 = vld [vmem:[#allocation8 + $0x6c] ss:$16 sps:$4 sm:$0xff]  }
 0x46d   : > { %v1461_v3 = vpack.c.bf16 %v1458_v1, %v1457_v0  ;;  %2400 = vmatpush1.bf16.msra.mxu0 %v3912_v47  ;;  %v3924_v62 = vld [vmem:[#allocation8 + $0x60] ss:$16 sps:$4 sm:$0xff]   ;;  %v3927_v63 = vld [vmem:[#allocation8 + $0x68] ss:$16 sps:$4 sm:$0xff]   ;;  %v3932_v0 = vld [vmem:[#allocation8 + $0x84] ss:$16 sps:$4 sm:$0xff]  }
 0x46e   : > { %2401 = vmatprep.subr.bf16.mxu0 %v3920_v56  ;;  %v3935_v1 = vld [vmem:[#allocation8 + $0x8c] ss:$16 sps:$4 sm:$0xff]  }
 0x46f   : > { %1857 = vmatmul.mubr.bf16.vlgmr.msra.gmra.mrb[24].mxu1 %v1461_v3  ;;  %v3933_v3 = vld [vmem:[#allocation8 + $0x88] ss:$16 sps:$4 sm:$0xff]  }
 0x470   : > { %1866 = vmatprep.mubr.bf16.mxu1 %v1620_v55  ;;  %2451 = vmatpush1.bf16.msra.mxu1 %v3909_v51  ;;  %v3915_v55 = vld [vmem:[#allocation8 + $0x28] ss:$16 sps:$4 sm:$0xff]  }
 0x471   : > { %2452 = vmatprep.subr.bf16.mxu1 %v3917_v54  ;;  %2402 = vmatpush1.bf16.msra.mxu0 %v3918_v58 }
 0x472   : > { %2403 = vmatprep.subr.bf16.mxu0 %v3926_v60  ;;  %v3969_v60 = vld [vmem:[#allocation8 + $0x148] ss:$16 sps:$4 sm:$0xff]  }
 0x474   : > { %2453 = vmatpush1.bf16.msra.mxu1 %v3915_v55 }
 0x475   : > { %2454 = vmatprep.subr.bf16.mxu1 %v3923_v57  ;;  %2404 = vmatpush1.bf16.msra.mxu0 %v3924_v62  ;;  %v3977_v62 = vld [vmem:[#allocation8 + $0x16c] ss:$16 sps:$4 sm:$0xff]  }
 0x476   : > { %2405 = vmatprep.subr.bf16.mxu0 %v3932_v0  ;;  %v3975_v0 = vld [vmem:[#allocation8 + $0x168] ss:$16 sps:$4 sm:$0xff]  }
 0x477   : > { %1867 = vmatmul.mubr.bf16.gmra.mrb[28].mxu1 %v1462_v2  ;;  %v3930_v2 = vld [vmem:[#allocation8 + $0x80] ss:$16 sps:$4 sm:$0xff]  }
 0x478   : > { %2455 = vmatpush1.bf16.msra.mxu1 %v3921_v59  ;;  %v3971_v59 = vld [vmem:[#allocation8 + $0x14c] ss:$16 sps:$4 sm:$0xff]  }
 0x479   : > { %2456 = vmatprep.subr.bf16.mxu1 %v3929_v61  ;;  %2406 = vmatpush1.bf16.msra.mxu0 %v3930_v2  ;;  %v3974_v61 = vld [vmem:[#allocation8 + $0x164] ss:$16 sps:$4 sm:$0xff]   ;;  %v3983_v2 = vld [vmem:[#allocation8 + $0x18c] ss:$16 sps:$4 sm:$0xff]  }
 0x47a   : > { %2407 = vmatprep.subr.bf16.mxu0 %v3938_v4  ;;  %v3981_v4 = vld [vmem:[#allocation8 + $0x188] ss:$16 sps:$4 sm:$0xff]  }
 0x47c   : > { %2457 = vmatpush1.bf16.msra.mxu1 %v3927_v63  ;;  %v3972_v63 = vld [vmem:[#allocation8 + $0x160] ss:$16 sps:$4 sm:$0xff]  }
 0x47d   : > { %2458 = vmatprep.subr.bf16.mxu1 %v3935_v1  ;;  %v3980_v1 = vld [vmem:[#allocation8 + $0x184] ss:$16 sps:$4 sm:$0xff]  }
 0x480   : > { %2459 = vmatpush1.bf16.msra.mxu1 %v3933_v3  ;;  %v3978_v3 = vld [vmem:[#allocation8 + $0x180] ss:$16 sps:$4 sm:$0xff]  }
 0x542   : > { %v1858_v7 = vpop.f32.mrb[24].mxu1 }
 0x543   : > { %v1859_v8 = vadd.f32 %v1858_v7, %v1657_v5  ;;  %v1860_v9 = vpop.f32.mrb[25].mxu1  ;;  %v3939_v7 = vld [vmem:[#allocation8 + $0xa8] ss:$16 sps:$4 sm:$0xff]  }
 0x544   : > { %v1861_v10 = vadd.f32 %v1860_v9, %v1661_v6  ;;  %v1862_v11 = vpop.f32.mrb[26].mxu1  ;;  %v3947_v9 = vld [vmem:[#allocation8 + $0xcc] ss:$16 sps:$4 sm:$0xff]  }
 0x545   : > { %v4774_v13 = vadd.f32 %v4146_v12, %v1859_v8  ;;  %v1863_v14 = vadd.f32 %v1862_v11, %v1657_v5  ;;  %v1864_v16 = vpop.f32.mrb[27].mxu1  ;;  %v3944_v8 = vld [vmem:[#allocation8 + $0xc4] ss:$16 sps:$4 sm:$0xff]   ;;  %v3945_v11 = vld [vmem:[#allocation8 + $0xc8] ss:$16 sps:$4 sm:$0xff]  }
 0x546   : > { %v4777_v17 = vadd.f32 %v4147_v15, %v1861_v10  ;;  %v1865_v18 = vadd.f32 %v1864_v16, %v1661_v6  ;;  %v3942_v10 = vld [vmem:[#allocation8 + $0xc0] ss:$16 sps:$4 sm:$0xff]   ;;  %v3950_v12 = vld [vmem:[#allocation8 + $0xe4] ss:$16 sps:$4 sm:$0xff]   ;;  %v3951_v15 = vld [vmem:[#allocation8 + $0xe8] ss:$16 sps:$4 sm:$0xff]  }
 0x547   : > { %v4780_v20 = vadd.f32 %v4148_v19, %v1863_v14  ;;  %v3953_v14 = vld [vmem:[#allocation8 + $0xec] ss:$16 sps:$4 sm:$0xff]   ;;  %v3948_v16 = vld [vmem:[#allocation8 + $0xe0] ss:$16 sps:$4 sm:$0xff]  }
 0x548   : > { %v4783_v22 = vadd.f32 %v4149_v21, %v1865_v18  ;;  %v1885_v23 = vadd.f32 %v4777_v17, %v4774_v13  ;;  %v3956_v18 = vld [vmem:[#allocation8 + $0x104] ss:$16 sps:$4 sm:$0xff]   ;;  %v3959_v19 = vld [vmem:[#allocation8 + $0x10c] ss:$16 sps:$4 sm:$0xff]   ;;  %v3954_v21 = vld [vmem:[#allocation8 + $0x100] ss:$16 sps:$4 sm:$0xff]  }
 0x54a   : > { %1886 = vadd.xlane.f32.xlu0 %v1885_v23  ;;  %v1868_v24 = vpop.f32.mrb[28].mxu1  ;;  %v1888_v25 = vadd.f32 %v4783_v22, %v4780_v20  ;;  %v3957_v23 = vld [vmem:[#allocation8 + $0x108] ss:$16 sps:$4 sm:$0xff]  }
 0x54b   : > { %v1869_v26 = vadd.f32 %v1868_v24, %v1657_v5  ;;  %v1870_v27 = vpop.f32.mrb[29].mxu1  ;;  %v3962_v24 = vld [vmem:[#allocation8 + $0x124] ss:$16 sps:$4 sm:$0xff]  }
 0x54c   : > { %v1871_v28 = vadd.f32 %v1870_v27, %v1661_v6  ;;  %1889 = vadd.xlane.f32.xlu1 %v1888_v25  ;;  %v1872_v30 = vpop.f32.mrb[30].mxu1  ;;  %v3965_v25 = vld [vmem:[#allocation8 + $0x12c] ss:$16 sps:$4 sm:$0xff]   ;;  %v3963_v27 = vld [vmem:[#allocation8 + $0x128] ss:$16 sps:$4 sm:$0xff]  }
 0x54d   : > { %v4790_v33 = vadd.f32 %v4150_v32, %v1869_v26  ;;  %v1873_v34 = vadd.f32 %v1872_v30, %v1657_v5  ;;  %v1874_v35 = vpop.f32.mrb[31].mxu1  ;;  %v3941_v5 = vld [vmem:[#allocation8 + $0xac] ss:$16 sps:$4 sm:$0xff]   ;;  %v3960_v26 = vld [vmem:[#allocation8 + $0x120] ss:$16 sps:$4 sm:$0xff]  }
 0x54e   : > { %v4793_v37 = vadd.f32 %v4151_v36, %v1871_v28  ;;  %v1875_v38 = vadd.f32 %v1874_v35, %v1661_v6  ;;  %v3936_v6 = vld [vmem:[#allocation8 + $0xa0] ss:$16 sps:$4 sm:$0xff]   ;;  %2460 = vmatprep.subr.bf16.mxu1 %v3941_v5  ;;  %v3986_v5 = vld [vmem:[#allocation8 + $0x1a4] ss:$16 sps:$4 sm:$0xff]  }
 0x54f   : > { %v4796_v40 = vadd.f32 %v4152_v39, %v1873_v34  ;;  %2408 = vmatpush1.bf16.msra.mxu0 %v3936_v6  ;;  %2461 = vmatpush1.bf16.msra.mxu1 %v3939_v7  ;;  %v3989_v6 = vld [vmem:[#allocation8 + $0x1ac] ss:$16 sps:$4 sm:$0xff]   ;;  %v3984_v7 = vld [vmem:[#allocation8 + $0x1a0] ss:$16 sps:$4 sm:$0xff]  }
 0x550   : > { %v4799_v42 = vadd.f32 %v4153_v41, %v1875_v38  ;;  %v1891_v43 = vadd.f32 %v4793_v37, %v4790_v33  ;;  %2409 = vmatprep.subr.bf16.mxu0 %v3944_v8  ;;  %2462 = vmatprep.subr.bf16.mxu1 %v3947_v9  ;;  %v3987_v8 = vld [vmem:[#allocation8 + $0x1a8] ss:$16 sps:$4 sm:$0xff]   ;;  %v3992_v9 = vld [vmem:[#allocation8 + $0x1c4] ss:$16 sps:$4 sm:$0xff]  }
 0x552   : > { %1892 = vadd.xlane.f32.xlu0 %v1891_v43  ;;  %v1894_v44 = vadd.f32 %v4799_v42, %v4796_v40 }
 0x553   : > { %2410 = vmatpush1.bf16.msra.mxu0 %v3942_v10  ;;  %2463 = vmatpush1.bf16.msra.mxu1 %v3945_v11  ;;  %v3995_v10 = vld [vmem:[#allocation8 + $0x1cc] ss:$16 sps:$4 sm:$0xff]   ;;  %v3990_v11 = vld [vmem:[#allocation8 + $0x1c0] ss:$16 sps:$4 sm:$0xff]  }
 0x554   : > { %1895 = vadd.xlane.f32.xlu1 %v1894_v44  ;;  %2411 = vmatprep.subr.bf16.mxu0 %v3950_v12  ;;  %v3993_v12 = vld [vmem:[#allocation8 + $0x1c8] ss:$16 sps:$4 sm:$0xff]  }
 0x555   : > { %2464 = vmatprep.subr.bf16.mxu1 %v3953_v14  ;;  %v3998_v14 = vld [vmem:[#allocation8 + $0x1e4] ss:$16 sps:$4 sm:$0xff]  }
 0x557   : > { %2412 = vmatpush1.bf16.msra.mxu0 %v3948_v16  ;;  %2465 = vmatpush1.bf16.msra.mxu1 %v3951_v15  ;;  %v4001_v16 = vld [vmem:[#allocation8 + $0x1ec] ss:$16 sps:$4 sm:$0xff]   ;;  %v3996_v15 = vld [vmem:[#allocation8 + $0x1e0] ss:$16 sps:$4 sm:$0xff]  }
 0x558   : > { %2413 = vmatprep.subr.bf16.mxu0 %v3956_v18  ;;  %2466 = vmatprep.subr.bf16.mxu1 %v3959_v19  ;;  %v3999_v18 = vld [vmem:[#allocation8 + $0x1e8] ss:$16 sps:$4 sm:$0xff]   ;;  %v4004_v19 = vld [vmem:[#allocation10 + $0x4] ss:$8 sps:$4 sm:$0xff]  }
 0x55b   : > { %2414 = vmatpush1.bf16.msra.mxu0 %v3954_v21  ;;  %2467 = vmatpush1.bf16.msra.mxu1 %v3957_v23 }
 0x55c   : > { %2415 = vmatprep.subr.bf16.mxu0 %v3962_v24  ;;  %2468 = vmatprep.subr.bf16.mxu1 %v3965_v25 }
 0x55f   : > { %2416 = vmatpush1.bf16.msra.mxu0 %v3960_v26  ;;  %2469 = vmatpush1.bf16.msra.mxu1 %v3963_v27 }
 0x560   : > { %2470 = vmatprep.subr.bf16.mxu1 %v3971_v59 }
 0x563   : > { %2471 = vmatpush1.bf16.msra.mxu1 %v3969_v60 }
 0x564   : > { %2472 = vmatprep.subr.bf16.mxu1 %v3977_v62 }
 0x567   : > { %2473 = vmatpush1.bf16.msra.mxu1 %v3975_v0  ;;  %v4002_v0 = vld [vmem:[#allocation10] ss:$8 sps:$4 sm:$0xff]  }
 0x568   : > { %2474 = vmatprep.subr.bf16.mxu1 %v3983_v2  ;;  %v4007_v2 = vld [vmem:[#allocation10 + $0x14] ss:$8 sps:$4 sm:$0xff]  }
 0x56b   : > { %2475 = vmatpush1.bf16.msra.mxu1 %v3981_v4 }
 0x56c   : > { %2476 = vmatprep.subr.bf16.mxu1 %v3989_v6 }
 0x56f   : > { %2477 = vmatpush1.bf16.msra.mxu1 %v3987_v8 }
 0x570   : > { %2478 = vmatprep.subr.bf16.mxu1 %v3995_v10 }
 0x573   : > { %2479 = vmatpush1.bf16.msra.mxu1 %v3993_v12 }
 0x574   : > { %2480 = vmatprep.subr.bf16.mxu1 %v4001_v16  ;;  %v4013_v16 = vld [vmem:[#allocation10 + $0x34] ss:$8 sps:$4 sm:$0xff]  }
 0x577   : > { %2481 = vmatpush1.bf16.msra.mxu1 %v3999_v18  ;;  %v4016_v18 = vld [vmem:[#allocation10 + $0x44] ss:$8 sps:$4 sm:$0xff]  }
 0x5d7   : > { %v1887_v28 = vpop.xlane.xlu0 %1886 }
 0x5d8   : > { %v1898_v30 = vmul.f32 0.00390625, %v1887_v28 }
 0x5d9   : > { %v1890_v32 = vpop.xlane.xlu1 %1889 }
 0x5da   : > { %v4806_v34 = vsub.f32 %v4774_v13, %v1898_v30  ;;  %v4809_v35 = vsub.f32 %v4777_v17, %v1898_v30  ;;  %v1899_v36 = vmul.f32 0.00390625, %v1890_v32 }
 0x5dc   : > { %v4812_v38 = vsub.f32 %v4780_v20, %v1899_v36  ;;  %v4815_v39 = vsub.f32 %v4783_v22, %v1899_v36  ;;  %v1910_v41 = vmul.f32 %v4806_v34, %v4806_v34  ;;  %v1911_v43 = vmul.f32 %v4809_v35, %v4809_v35 }
 0x5de   : > { %v1918_v44 = vadd.f32 %v1911_v43, %v1910_v41  ;;  %v1912_v13 = vmul.f32 %v4812_v38, %v4812_v38  ;;  %v1913_v17 = vmul.f32 %v4815_v39, %v4815_v39  ;;  %v534_v43 = vld [vmem:[%s4986_s9] sm:$0x3] }
 0x5df   : > { %v1893_v49 = vpop.xlane.xlu0 %1892 }
 0x5e0   : > { %v1900_v50 = vmul.f32 0.00390625, %v1893_v49  ;;  %1919 = vadd.xlane.f32.xlu0 %v1918_v44  ;;  %v1921_v20 = vadd.f32 %v1913_v17, %v1912_v13  ;;  %v535_v13 = vld [vmem:[%s4987_s10] sm:$0x3]  ;;  %v1954_v17 = vrot.slane %v534_v43, %v4721_v46  ;;  %v1958_v49 = vrot.slane %v534_v43, %v4727_v48 }
 0x5e1   : > { %v1896_v51 = vpop.xlane.xlu1 %1895  ;;  %v4032_v43 = vld [vmem:[#allocation10 + $0xa0] ss:$8 sps:$4 sm:$0xff]  }
 0x5e2   : > { %v4826_v22 = vsub.f32 %v4790_v33, %v1900_v50  ;;  %v4829_v52 = vsub.f32 %v4793_v37, %v1900_v50  ;;  %v1901_v53 = vmul.f32 0.00390625, %v1896_v51  ;;  %1922 = vadd.xlane.f32.xlu1 %v1921_v20 }
 0x5e4   : > { %v4832_v54 = vsub.f32 %v4796_v40, %v1901_v53  ;;  %v4835_v47 = vsub.f32 %v4799_v42, %v1901_v53  ;;  %v1914_v55 = vmul.f32 %v4826_v22, %v4826_v22  ;;  %v1915_v56 = vmul.f32 %v4829_v52, %v4829_v52  ;;  %v3968_v40 = vld [vmem:[#allocation8 + $0x144] ss:$16 sps:$4 sm:$0xff]   ;;  %v3966_v42 = vld [vmem:[#allocation8 + $0x140] ss:$16 sps:$4 sm:$0xff]  }
 0x5e5   : > { %2417 = vmatprep.subr.bf16.mxu0 %v3968_v40 }
 0x5e6   : > { %v1924_v57 = vadd.f32 %v1915_v56, %v1914_v55  ;;  %v1916_v33 = vmul.f32 %v4832_v54, %v4832_v54  ;;  %v1917_v37 = vmul.f32 %v4835_v47, %v4835_v47  ;;  %2418 = vmatpush1.bf16.msra.mxu0 %v3966_v42  ;;  %v1973_v55 = vrot.slane %v535_v13, %v4721_v46 }
 0x5e7   : > { %2419 = vmatprep.subr.bf16.mxu0 %v3974_v61  ;;  %v1977_v56 = vrot.slane %v535_v13, %v4727_v48  ;;  %v4035_v13 = vld [vmem:[#allocation10 + $0xb0] ss:$8 sps:$4 sm:$0xff]  }
 0x5e8   : > { %1925 = vadd.xlane.f32.xlu0 %v1924_v57  ;;  %v1927_v58 = vadd.f32 %v1917_v37, %v1916_v33 }
 0x5ea   : > { %1928 = vadd.xlane.f32.xlu1 %v1927_v58  ;;  %2420 = vmatpush1.bf16.msra.mxu0 %v3972_v63 }
 0x5eb   : > { %2421 = vmatprep.subr.bf16.mxu0 %v3980_v1 }
 0x5ee   : > { %2422 = vmatpush1.bf16.msra.mxu0 %v3978_v3 }
 0x5ef   : > { %2423 = vmatprep.subr.bf16.mxu0 %v3986_v5 }
 0x5f2   : > { %2424 = vmatpush1.bf16.msra.mxu0 %v3984_v7 }
 0x5f3   : > { %2425 = vmatprep.subr.bf16.mxu0 %v3992_v9  ;;  %v4005_v9 = vld [vmem:[#allocation10 + $0x10] ss:$8 sps:$4 sm:$0xff]  }
 0x5f6   : > { %2426 = vmatpush1.bf16.msra.mxu0 %v3990_v11 }
 0x5f7   : > { %2427 = vmatprep.subr.bf16.mxu0 %v3998_v14  ;;  %v4008_v14 = vld [vmem:[#allocation10 + $0x20] ss:$8 sps:$4 sm:$0xff]  }
 0x5fa   : > { %2428 = vmatpush1.bf16.msra.mxu0 %v3996_v15  ;;  %v4011_v15 = vld [vmem:[#allocation10 + $0x30] ss:$8 sps:$4 sm:$0xff]  }
 0x5fb   : > { %2922 = vmatprep.subr.bf16.mxu0 %v4004_v19  ;;  %v4014_v19 = vld [vmem:[#allocation10 + $0x40] ss:$8 sps:$4 sm:$0xff]  }
 0x66d   : > { %v1920_v21 = vpop.xlane.xlu0 %1919 }
 0x66e   : > { %v1930_v23 = vmul.f32 0.00390625, %v1920_v21  ;;  %v4019_v21 = vld [vmem:[#allocation10 + $0x54] ss:$8 sps:$4 sm:$0xff]  }
 0x66f   : > { %v1923_v24 = vpop.xlane.xlu1 %1922 }
 0x670   : > { %v1934_v25 = vadd.f32 1e-05, %v1930_v23  ;;  %v1931_v26 = vmul.f32 0.00390625, %v1923_v24  ;;  %v4017_v23 = vld [vmem:[#allocation10 + $0x50] ss:$8 sps:$4 sm:$0xff]  }
 0x671   : > { %v4022_v24 = vld [vmem:[#allocation10 + $0x64] ss:$8 sps:$4 sm:$0xff]  }
 0x672   : > { %4130 = vrsqrt.f32 %v1934_v25  ;;  %v1935_v27 = vadd.f32 1e-05, %v1931_v26  ;;  %v4020_v25 = vld [vmem:[#allocation10 + $0x60] ss:$8 sps:$4 sm:$0xff]   ;;  %v4025_v26 = vld [vmem:[#allocation10 + $0x74] ss:$8 sps:$4 sm:$0xff]  }
 0x674   : > { %4132 = vrsqrt.f32 %v1935_v27  ;;  %v4023_v27 = vld [vmem:[#allocation10 + $0x70] ss:$8 sps:$4 sm:$0xff]  }
 0x675   : > { %v1926_v28 = vpop.xlane.xlu0 %1925 }
 0x676   : > { %v1932_v30 = vmul.f32 0.00390625, %v1926_v28  ;;  %v4028_v28 = vld [vmem:[#allocation10 + $0x84] ss:$8 sps:$4 sm:$0xff]  }
 0x677   : > { %v1929_v32 = vpop.xlane.xlu1 %1928 }
 0x678   : > { %v1936_v36 = vadd.f32 1e-05, %v1932_v30  ;;  %v1933_v41 = vmul.f32 0.00390625, %v1929_v32  ;;  %v4026_v30 = vld [vmem:[#allocation10 + $0x80] ss:$8 sps:$4 sm:$0xff]  }
 0x679   : > { %v4031_v32 = vld [vmem:[#allocation10 + $0x94] ss:$8 sps:$4 sm:$0xff]  }
 0x67a   : > { %4134 = vrsqrt.f32 %v1936_v36  ;;  %v1937_v44 = vadd.f32 1e-05, %v1933_v41  ;;  %v4029_v36 = vld [vmem:[#allocation10 + $0x90] ss:$8 sps:$4 sm:$0xff]   ;;  %v4034_v41 = vld [vmem:[#allocation10 + $0xa4] ss:$8 sps:$4 sm:$0xff]  }
 0x67c   : > { %v4131_v50 = vpop.eup %4130  ;;  %4136 = vrsqrt.f32 %v1937_v44  ;;  %v4037_v44 = vld [vmem:[#allocation10 + $0xb4] ss:$8 sps:$4 sm:$0xff]  }
 0x67d   : > { %v1942_v20 = vmul.f32 %v4131_v50, %v4806_v34  ;;  %v1943_v51 = vmul.f32 %v4131_v50, %v4809_v35  ;;  %v4043_v50 = vld [vmem:[#allocation10 + $0xd4] ss:$8 sps:$4 sm:$0xff]  }
 0x67e   : > { %v4133_v53 = vpop.eup %4132 }
 0x67f   : > { %v1944_v57 = vmul.f32 %v4133_v53, %v4812_v38  ;;  %v1945_v33 = vmul.f32 %v4133_v53, %v4815_v39  ;;  %v1962_v37 = vmul.f32 %v1958_v49, %v1943_v51  ;;  %v1961_v58 = vmul.f32 %v1954_v17, %v1942_v20  ;;  %v4041_v20 = vld [vmem:[#allocation10 + $0xd0] ss:$8 sps:$4 sm:$0xff]   ;;  %v4046_v51 = vld [vmem:[#allocation10 + $0xe4] ss:$8 sps:$4 sm:$0xff]   ;;  %v4044_v53 = vld [vmem:[#allocation10 + $0xe0] ss:$8 sps:$4 sm:$0xff]  }
 0x681   : > { %v1964_v40 = vmul.f32 %v1958_v49, %v1945_v33  ;;  %v1963_v59 = vmul.f32 %v1954_v17, %v1944_v57  ;;  %v4859_v42 = vadd.f32 %v1977_v56, %v1962_v37  ;;  %v4863_v34 = vadd.f32 %v1973_v55, %v1961_v58  ;;  %v4052_v57 = vld [vmem:[#allocation10 + $0x104] ss:$8 sps:$4 sm:$0xff]   ;;  %v532_v33 = vld [vmem:[%s4983_s6] sm:$0xf] }
 0x682   : > { %v2060_v37 = vrot.slane %v532_v33, %v4721_v46  ;;  %v2068_v58 = vrot.slane %v532_v33, %v645_v29 }
 0x683   : > { %v4861_v60 = vadd.f32 %v1977_v56, %v1964_v40  ;;  %v4865_v35 = vadd.f32 %v1973_v55, %v1963_v59  ;;  %v2064_v40 = vrot.slane %v532_v33, %v4727_v48  ;;  %v2072_v59 = vrot.slane %v532_v33, %v649_v31 }
 0x684   : > { %v4135_v61 = vpop.eup %4134 }
 0x685   : > { %v1989_v62 = vpack.c.bf16 %v4861_v60, %v4859_v42  ;;  %v1988_v38 = vpack.c.bf16 %v4865_v35, %v4863_v34  ;;  %v1947_v39 = vmul.f32 %v4135_v61, %v4829_v52  ;;  %v1946_v63 = vmul.f32 %v4135_v61, %v4826_v22  ;;  %v4010_v52 = vld [vmem:[#allocation10 + $0x24] ss:$8 sps:$4 sm:$0xff]  }
 0x686   : > { %v4137_v1 = vpop.eup %4136 }
 0x687   : > { %2429 = vmatprep.mubr.bf16.mxu0 %v1989_v62  ;;  %2482 = vmatprep.mubr.bf16.mxu1 %v1989_v62  ;;  %v1949_v3 = vmul.f32 %v4137_v1, %v4835_v47  ;;  %v1966_v4 = vmul.f32 %v1958_v49, %v1947_v39  ;;  %v1948_v5 = vmul.f32 %v4137_v1, %v4832_v54 }
 0x688   : > { %2430 = vmatmul.mubr.bf16.vlgmr.msra.gmra.mrb[16].mxu0 %v1988_v38  ;;  %2483 = vmatmul.mubr.bf16.vlgmr.msra.gmra.mrb[32].mxu1 %v1988_v38  ;;  %v1965_v6 = vmul.f32 %v1954_v17, %v1946_v63 }
 0x689   : > { %v1968_v7 = vmul.f32 %v1958_v49, %v1949_v3  ;;  %v1967_v8 = vmul.f32 %v1954_v17, %v1948_v5  ;;  %2923 = vmatpush1.bf16.msra.mxu0 %v4002_v0  ;;  %v4875_v22 = vadd.f32 %v1977_v56, %v1966_v4  ;;  %v4040_v17 = vld [vmem:[#allocation10 + $0xc4] ss:$8 sps:$4 sm:$0xff]   ;;  %v4038_v49 = vld [vmem:[#allocation10 + $0xc0] ss:$8 sps:$4 sm:$0xff]  }
 0x68a   : > { %2924 = vmatprep.subr.bf16.mxu0 %v4007_v2  ;;  %v4879_v11 = vadd.f32 %v1973_v55, %v1965_v6 }
 0x68b   : > { %v4877_v10 = vadd.f32 %v1977_v56, %v1968_v7  ;;  %v4881_v12 = vadd.f32 %v1973_v55, %v1967_v8  ;;  %v4049_v55 = vld [vmem:[#allocation10 + $0xf4] ss:$8 sps:$4 sm:$0xff]   ;;  %v4047_v56 = vld [vmem:[#allocation10 + $0xf0] ss:$8 sps:$4 sm:$0xff]  }
 0x68d   : > { %v1991_v54 = vpack.c.bf16 %v4877_v10, %v4875_v22  ;;  %v1990_v47 = vpack.c.bf16 %v4881_v12, %v4879_v11  ;;  %2925 = vmatpush1.bf16.msra.mxu0 %v4005_v9 }
 0x68e   : > { %2926 = vmatprep.subr.bf16.mxu0 %v4010_v52 }
 0x68f   : > { %2439 = vmatprep.mubr.bf16.mxu0 %v1991_v54  ;;  %2492 = vmatprep.mubr.bf16.mxu1 %v1991_v54 }
 0x690   : > { %2440 = vmatmul.mubr.bf16.gmra.mrb[20].mxu0 %v1990_v47  ;;  %2493 = vmatmul.mubr.bf16.gmra.mrb[36].mxu1 %v1990_v47 }
 0x691   : > { %2927 = vmatpush1.bf16.msra.mxu0 %v4008_v14 }
 0x692   : > { %2928 = vmatprep.subr.bf16.mxu0 %v4013_v16 }
 0x695   : > { %2929 = vmatpush1.bf16.msra.mxu0 %v4011_v15 }
 0x696   : > { %2930 = vmatprep.subr.bf16.mxu0 %v4016_v18 }
 0x699   : > { %2931 = vmatpush1.bf16.msra.mxu0 %v4014_v19 }
 0x69a   : > { %2932 = vmatprep.subr.bf16.mxu0 %v4019_v21 }
 0x69d   : > { %2933 = vmatpush1.bf16.msra.mxu0 %v4017_v23 }
 0x69e   : > { %2934 = vmatprep.subr.bf16.mxu0 %v4022_v24 }
 0x6a1   : > { %2935 = vmatpush1.bf16.msra.mxu0 %v4020_v25 }
 0x6a2   : > { %2936 = vmatprep.subr.bf16.mxu0 %v4025_v26  ;;  %v4050_v26 = vld [vmem:[#allocation10 + $0x100] ss:$8 sps:$4 sm:$0xff]  }
 0x6a5   : > { %2937 = vmatpush1.bf16.msra.mxu0 %v4023_v27 }
 0x6a6   : > { %2938 = vmatprep.subr.bf16.mxu0 %v4028_v28 }
 0x6a9   : > { %2939 = vmatpush1.bf16.msra.mxu0 %v4026_v30 }
 0x6aa   : > { %2940 = vmatprep.subr.bf16.mxu0 %v4031_v32 }
 0x6ad   : > { %2941 = vmatpush1.bf16.msra.mxu0 %v4029_v36  ;;  %v4055_v36 = vld [vmem:[#allocation10 + $0x114] ss:$8 sps:$4 sm:$0xff]  }
 0x6ae   : > { %2942 = vmatprep.subr.bf16.mxu0 %v4034_v41 }
 0x6b1   : > { %2943 = vmatpush1.bf16.msra.mxu0 %v4032_v43 }
 0x6b2   : > { %2944 = vmatprep.subr.bf16.mxu0 %v4037_v44 }
 0x6b5   : > { %2945 = vmatpush1.bf16.msra.mxu0 %v4035_v13 }
 0x6b6   : > { %2946 = vmatprep.subr.bf16.mxu0 %v4040_v17 }
 0x6b9   : > { %2947 = vmatpush1.bf16.msra.mxu0 %v4038_v49 }
 0x6ba   : > { %2948 = vmatprep.subr.bf16.mxu0 %v4043_v50 }
 0x6bd   : > { %2949 = vmatpush1.bf16.msra.mxu0 %v4041_v20 }
 0x6be   : > { %2950 = vmatprep.subr.bf16.mxu0 %v4046_v51 }
 0x6c1   : > { %2951 = vmatpush1.bf16.msra.mxu0 %v4044_v53 }
 0x6c2   : > { %2952 = vmatprep.subr.bf16.mxu0 %v4049_v55  ;;  %v4053_v55 = vld [vmem:[#allocation10 + $0x110] ss:$8 sps:$4 sm:$0xff]  }
 0x6c5   : > { %2953 = vmatpush1.bf16.msra.mxu0 %v4047_v56 }
 0x6c6   : > { %2975 = vmatprep.subr.bf16.mxu0 %v4052_v57 }
 0x75b   : > { %v2431_v61 = vpop.f32.mrb[16].mxu0  ;;  %v2484_v62 = vpop.f32.mrb[32].mxu1 }
 0x75c   : > { %v2432_v38 = vadd.f32 %v2431_v61, %v2060_v37  ;;  %v2485_v39 = vadd.f32 %v2484_v62, %v2068_v58  ;;  %v2433_v63 = vpop.f32.mrb[17].mxu0  ;;  %v2486_v0 = vpop.f32.mrb[33].mxu1  ;;  %v4058_v62 = vld [vmem:[#allocation10 + $0x124] ss:$8 sps:$4 sm:$0xff]  }
 0x75d   : > { %v2434_v1 = vadd.f32 %v2433_v63, %v2064_v40  ;;  %v2487_v2 = vadd.f32 %v2486_v0, %v2072_v59  ;;  %v2435_v3 = vpop.f32.mrb[18].mxu0  ;;  %v2488_v4 = vpop.f32.mrb[34].mxu1 }
 0x75e   : > { %v2436_v5 = vadd.f32 %v2435_v3, %v2060_v37  ;;  %v2489_v6 = vadd.f32 %v2488_v4, %v2068_v58  ;;  %v2437_v7 = vpop.f32.mrb[19].mxu0  ;;  %v2490_v8 = vpop.f32.mrb[35].mxu1  ;;  %v2503_v52 = vmax.f32 %v2432_v38, 0.0  ;;  %v2505_v54 = vmax.f32 %v2485_v39, 0.0  ;;  %v4059_v3 = vld [vmem:[#allocation10 + $0x130] ss:$8 sps:$4 sm:$0xff]  }
 0x75f   : > { %v2438_v29 = vadd.f32 %v2437_v7, %v2064_v40  ;;  %v2491_v9 = vadd.f32 %v2490_v8, %v2072_v59  ;;  %v2504_v47 = vmax.f32 %v2434_v1, 0.0  ;;  %v2506_v14 = vmax.f32 %v2487_v2, 0.0  ;;  %v4064_v4 = vld [vmem:[#allocation10 + $0x144] ss:$8 sps:$4 sm:$0xff]   ;;  %v4065_v7 = vld [vmem:[#allocation10 + $0x150] ss:$8 sps:$4 sm:$0xff]  }
 0x760   : > { %v2507_v45 = vmax.f32 %v2436_v5, 0.0  ;;  %v2509_v31 = vmax.f32 %v2489_v6, 0.0  ;;  %v4062_v5 = vld [vmem:[#allocation10 + $0x140] ss:$8 sps:$4 sm:$0xff]   ;;  %v4067_v6 = vld [vmem:[#allocation10 + $0x154] ss:$8 sps:$4 sm:$0xff]  }
 0x761   : > { %v2508_v16 = vmax.f32 %v2438_v29, 0.0  ;;  %v2510_v15 = vmax.f32 %v2491_v9, 0.0  ;;  %v4070_v8 = vld [vmem:[#allocation10 + $0x164] ss:$8 sps:$4 sm:$0xff]   ;;  %v4068_v29 = vld [vmem:[#allocation10 + $0x160] ss:$8 sps:$4 sm:$0xff]  }
 0x762   : > { %v2519_v18 = vpack.c.bf16 %v2507_v45, %v2503_v52  ;;  %v4896_v19 = vpack.c.bf16 %v2509_v31, %v2505_v54  ;;  %v4073_v9 = vld [vmem:[#allocation10 + $0x174] ss:$8 sps:$4 sm:$0xff]   ;;  %v4071_v52 = vld [vmem:[#allocation10 + $0x170] ss:$8 sps:$4 sm:$0xff]   ;;  %v4076_v54 = vld [vmem:[#allocation10 + $0x184] ss:$8 sps:$4 sm:$0xff]  }
 0x763   : > { %v2520_v21 = vpack.c.bf16 %v2508_v16, %v2504_v47  ;;  %v2522_v23 = vpack.c.bf16 %v2510_v15, %v2506_v14  ;;  %v2441_v24 = vpop.f32.mrb[20].mxu0  ;;  %v2494_v25 = vpop.f32.mrb[36].mxu1  ;;  %v4074_v45 = vld [vmem:[#allocation10 + $0x180] ss:$8 sps:$4 sm:$0xff]   ;;  %v4079_v31 = vld [vmem:[#allocation10 + $0x194] ss:$8 sps:$4 sm:$0xff]  }
 0x764   : > { %v2442_v27 = vadd.f32 %v2441_v24, %v2060_v37  ;;  %v2495_v28 = vadd.f32 %v2494_v25, %v2068_v58  ;;  %v2443_v30 = vpop.f32.mrb[21].mxu0  ;;  %v2496_v32 = vpop.f32.mrb[37].mxu1  ;;  %v4077_v47 = vld [vmem:[#allocation10 + $0x190] ss:$8 sps:$4 sm:$0xff]   ;;  %v4082_v14 = vld [vmem:[#allocation10 + $0x1a4] ss:$8 sps:$4 sm:$0xff]  }
 0x765   : > { %v2444_v41 = vadd.f32 %v2443_v30, %v2064_v40  ;;  %v2497_v43 = vadd.f32 %v2496_v32, %v2072_v59  ;;  %v2445_v44 = vpop.f32.mrb[22].mxu0  ;;  %v2498_v13 = vpop.f32.mrb[38].mxu1  ;;  %2954 = vmatprep.mubr.bf16.mxu0 %v2520_v21  ;;  %v4080_v16 = vld [vmem:[#allocation10 + $0x1a0] ss:$8 sps:$4 sm:$0xff]   ;;  %v4085_v15 = vld [vmem:[#allocation10 + $0x1b4] ss:$8 sps:$4 sm:$0xff]  }
 0x766   : > { %v2446_v17 = vadd.f32 %v2445_v44, %v2060_v37  ;;  %v2499_v49 = vadd.f32 %v2498_v13, %v2068_v58  ;;  %v2447_v50 = vpop.f32.mrb[23].mxu0  ;;  %v2500_v20 = vpop.f32.mrb[39].mxu1  ;;  %2955 = vmatmul.mubr.bf16.vlgmr.msra.gmra.mrb[24].mxu0 %v2519_v18  ;;  %v2511_v56 = vmax.f32 %v2442_v27, 0.0  ;;  %v2513_v57 = vmax.f32 %v2495_v28, 0.0  ;;  %v4083_v18 = vld [vmem:[#allocation10 + $0x1b0] ss:$8 sps:$4 sm:$0xff]  }
 0x767   : > { %v2448_v51 = vadd.f32 %v2447_v50, %v2064_v40  ;;  %v2501_v53 = vadd.f32 %v2500_v20, %v2072_v59  ;;  %2976 = vmatpush1.bf16.msra.mxu0 %v4050_v26  ;;  %v2512_v38 = vmax.f32 %v2444_v41, 0.0  ;;  %v2514_v39 = vmax.f32 %v2497_v43, 0.0  ;;  %v4056_v40 = vld [vmem:[#allocation10 + $0x120] ss:$8 sps:$4 sm:$0xff]   ;;  %v4061_v59 = vld [vmem:[#allocation10 + $0x134] ss:$8 sps:$4 sm:$0xff]  }
 0x768   : > { %v2515_v33 = vmax.f32 %v2446_v17, 0.0  ;;  %v2517_v61 = vmax.f32 %v2499_v49, 0.0  ;;  %2977 = vmatprep.subr.bf16.mxu0 %v4055_v36  ;;  %v4088_v21 = vld [vmem:[#allocation10 + $0x1c4] ss:$8 sps:$4 sm:$0xff]   ;;  %v4091_v24 = vld [vmem:[#allocation10 + $0x1d4] ss:$8 sps:$4 sm:$0xff]  }
 0x769   : > { %v2516_v63 = vmax.f32 %v2448_v51, 0.0  ;;  %v2518_v0 = vmax.f32 %v2501_v53, 0.0  ;;  %v4089_v25 = vld [vmem:[#allocation10 + $0x1d0] ss:$8 sps:$4 sm:$0xff]   ;;  %v4094_v26 = vld [vmem:[#allocation10 + $0x1e4] ss:$8 sps:$4 sm:$0xff]  }
 0x76a   : > { %v2523_v1 = vpack.c.bf16 %v2515_v33, %v2511_v56  ;;  %v4898_v37 = vpack.c.bf16 %v2517_v61, %v2513_v57  ;;  %v4092_v27 = vld [vmem:[#allocation10 + $0x1e0] ss:$8 sps:$4 sm:$0xff]   ;;  %v4097_v28 = vld [vmem:[#allocation10 + $0x1f4] ss:$8 sps:$4 sm:$0xff]   ;;  %v4095_v30 = vld [vmem:[#allocation10 + $0x1f0] ss:$8 sps:$4 sm:$0xff]  }
 0x76b   : > { %v2524_v58 = vpack.c.bf16 %v2516_v63, %v2512_v38  ;;  %v2526_v2 = vpack.c.bf16 %v2518_v0, %v2514_v39  ;;  %2978 = vmatpush1.bf16.msra.mxu0 %v4053_v55  ;;  %v533_v32 = vld [vmem:[%s5023_s25] sm:$0x3]  ;;  %s4296_s25 = scalar_lea.vmem %s4933_s11, 1024 }
 0x76c   : > { %2979 = vmatprep.subr.bf16.mxu0 %v4058_v62  ;;  %v2595_v36 = vrot.slane %v533_v32, %v4721_v46  ;;  %v2599_v41 = vrot.slane %v533_v32, %v4727_v48  ;;  %p4297_p3 = scmp.ne.s32.totalorder %s4933_s11, %s4296_s25 }
 0x76d   : > { %2964 = vmatprep.mubr.bf16.mxu0 %v2524_v58 }
 0x76e   : > { %2965 = vmatmul.mubr.bf16.gmra.mrb[28].mxu0 %v2523_v1  ;;  %p4298_p5 = pnand %p4297_p3, %p4615_p10 }
 0x76f   : > { %2980 = vmatpush1.bf16.msra.mxu0 %v4056_v40  ;;  %3007 = vmatprep.mubr.bf16.mxu0 %v2522_v23  ;;  %v4086_v23 = vld [vmem:[#allocation10 + $0x1c0] ss:$8 sps:$4 sm:$0xff]  }
 0x770   : > { %2981 = vmatprep.subr.bf16.mxu0 %v4061_v59  ;;  %p4299_p7 = pneg %p4298_p5 }
 0x773   : > { %2982 = vmatpush1.bf16.msra.mxu0 %v4059_v3 }
 0x774   : > { %2983 = vmatprep.subr.bf16.mxu0 %v4064_v4 }
 0x777   : > { %2984 = vmatpush1.bf16.msra.mxu0 %v4062_v5 }
 0x778   : > { %2985 = vmatprep.subr.bf16.mxu0 %v4067_v6 }
 0x77b   : > { %2986 = vmatpush1.bf16.msra.mxu0 %v4065_v7 }
 0x77c   : > { %2987 = vmatprep.subr.bf16.mxu0 %v4070_v8 }
 0x77f   : > { %2988 = vmatpush1.bf16.msra.mxu0 %v4068_v29 }
 0x780   : > { %2989 = vmatprep.subr.bf16.mxu0 %v4073_v9 }
 0x783   : > { %2990 = vmatpush1.bf16.msra.mxu0 %v4071_v52 }
 0x784   : > { %2991 = vmatprep.subr.bf16.mxu0 %v4076_v54 }
 0x787   : > { %2992 = vmatpush1.bf16.msra.mxu0 %v4074_v45 }
 0x788   : > { %2993 = vmatprep.subr.bf16.mxu0 %v4079_v31 }
 0x78b   : > { %2994 = vmatpush1.bf16.msra.mxu0 %v4077_v47 }
 0x78c   : > { %2995 = vmatprep.subr.bf16.mxu0 %v4082_v14 }
 0x78f   : > { %2996 = vmatpush1.bf16.msra.mxu0 %v4080_v16 }
 0x790   : > { %2997 = vmatprep.subr.bf16.mxu0 %v4085_v15 }
 0x793   : > { %2998 = vmatpush1.bf16.msra.mxu0 %v4083_v18 }
 0x794   : > { %2999 = vmatprep.subr.bf16.mxu0 %v4088_v21 }
 0x797   : > { %3000 = vmatpush1.bf16.msra.mxu0 %v4086_v23 }
 0x798   : > { %3001 = vmatprep.subr.bf16.mxu0 %v4091_v24 }
 0x79b   : > { %3002 = vmatpush1.bf16.msra.mxu0 %v4089_v25 }
 0x79c   : > { %3003 = vmatprep.subr.bf16.mxu0 %v4094_v26 }
 0x79f   : > { %3004 = vmatpush1.bf16.msra.mxu0 %v4092_v27 }
 0x7a0   : > { %3005 = vmatprep.subr.bf16.mxu0 %v4097_v28 }
 0x7a3   : > { %3006 = vmatpush1.bf16.msra.mxu0 %v4095_v30 }
 0x7a6   : > { %3008 = vmatmul.mubr.bf16.vlgmr.msra.gmra.mrb[24].mxu0 %v4896_v19 }
 0x7a7   : > { %3017 = vmatprep.mubr.bf16.mxu0 %v2526_v2 }
 0x7ae   : > { %3018 = vmatmul.mubr.bf16.gmra.mrb[28].mxu0 %v4898_v37 }
 0x879   : > { %v3009_v43 = vpop.f32.mrb[24].mxu0 }
 0x87a   : > { %v3603_v44 = vadd.f32 %v3009_v43, %v2595_v36  ;;  %v3011_v13 = vpop.f32.mrb[25].mxu0 }
 0x87b   : > { %v3604_v17 = vadd.f32 %v3011_v13, %v2599_v41  ;;  %v3013_v49 = vpop.f32.mrb[26].mxu0 }
 0x87c   : > { %v3028_v50 = vadd.f32 %v3603_v44, %v4863_v34  ;;  %v3605_v20 = vadd.f32 %v3013_v49, %v2595_v36  ;;  %v3015_v19 = vpop.f32.mrb[27].mxu0 }
 0x87d   : > { %v3029_v51 = vadd.f32 %v3604_v17, %v4859_v42  ;;  %v3606_v53 = vadd.f32 %v3015_v19, %v2599_v41  ;;  %v536_v17 = vld [vmem:[%s5024_s22] sm:$0x3]  ;;  %s4302_s22 = scalar_lea.vmem %s4301_s16, 2048 }
 0x87e   : > { %v3030_v55 = vadd.f32 %v3605_v20, %v4865_v35  ;;  %v537_v20 = vld [vmem:[%s5025_s17] sm:$0x3]  ;;  %p4304_p2 = scmp.lt.s32.totalorder %s4302_s22, %s4296_s25 }
 0x87f   : > { %v3031_v56 = vadd.f32 %v3606_v53, %v4861_v60  ;;  %v3036_v57 = vadd.f32 %v3029_v51, %v3028_v50  ;;  %v3108_v53 = vrot.slane %v536_v17, %v4727_v48 }
 0x880   : > { %p4305_p1 = por %p4304_p2, %p4303_p12 }
 0x881   : > { %v3019_v33 = vpop.f32.mrb[28].mxu0  ;;  %3037 = vadd.xlane.f32.xlu0 %v3036_v57  ;;  %v3039_v61 = vadd.f32 %v3031_v56, %v3030_v55  ;;  %v3127_v57 = vrot.slane %v537_v20, %v4727_v48 }
 0x882   : > { %v3607_v62 = vadd.f32 %v3019_v33, %v2595_v36  ;;  %v3021_v38 = vpop.f32.mrb[29].mxu0  ;;  %p4306_p13 = pnand %p4305_p1, %p4299_p7 }
 0x883   : > { %v3608_v39 = vadd.f32 %v3021_v38, %v2599_v41  ;;  %v3023_v63 = vpop.f32.mrb[30].mxu0  ;;  %3040 = vadd.xlane.f32.xlu1 %v3039_v61 }
 0x884   : > { %v3032_v34 = vadd.f32 %v3607_v62, %v4879_v11  ;;  %v3609_v0 = vadd.f32 %v3023_v63, %v2595_v36  ;;  %v3025_v1 = vpop.f32.mrb[31].mxu0 }
 0x885   : > { %v3033_v42 = vadd.f32 %v3608_v39, %v4875_v22  ;;  %v3610_v37 = vadd.f32 %v3025_v1, %v2599_v41 }
 0x886   : > { %v3034_v35 = vadd.f32 %v3609_v0, %v4881_v12 }
 0x887   : > { %v3035_v60 = vadd.f32 %v3610_v37, %v4877_v10  ;;  %v3042_v58 = vadd.f32 %v3033_v42, %v3032_v34 }
 0x889   : > { %3043 = vadd.xlane.f32.xlu0 %v3042_v58  ;;  %v3045_v2 = vadd.f32 %v3035_v60, %v3034_v35 }
 0x88b   : > { %3046 = vadd.xlane.f32.xlu1 %v3045_v2 }
 0x90e   : > { %v3038_v40 = vpop.xlane.xlu0 %3037 }
 0x90f   : > { %v3048_v59 = vmul.f32 0.00390625, %v3038_v40 }
 0x910   : > { %v3041_v3 = vpop.xlane.xlu1 %3040 }
 0x911   : > { %v3052_v4 = vsub.f32 %v3028_v50, %v3048_v59  ;;  %v3053_v5 = vsub.f32 %v3029_v51, %v3048_v59  ;;  %v3049_v6 = vmul.f32 0.00390625, %v3041_v3  ;;  %v3104_v51 = vrot.slane %v536_v17, %v4721_v46 }
 0x913   : > { %v3054_v11 = vsub.f32 %v3030_v55, %v3049_v6  ;;  %v3055_v7 = vsub.f32 %v3031_v56, %v3049_v6  ;;  %v3060_v8 = vmul.f32 %v3052_v4, %v3052_v4  ;;  %v3061_v29 = vmul.f32 %v3053_v5, %v3053_v5 }
 0x914   : > { %v3123_v56 = vrot.slane %v537_v20, %v4721_v46 }
 0x915   : > { %v3068_v22 = vadd.f32 %v3061_v29, %v3060_v8  ;;  %v3062_v9 = vmul.f32 %v3054_v11, %v3054_v11  ;;  %v3063_v52 = vmul.f32 %v3055_v7, %v3055_v7 }
 0x916   : > { %v3044_v12 = vpop.xlane.xlu0 %3043 }
 0x917   : > { %v3050_v54 = vmul.f32 0.00390625, %v3044_v12  ;;  %3069 = vadd.xlane.f32.xlu0 %v3068_v22  ;;  %v3071_v10 = vadd.f32 %v3063_v52, %v3062_v9 }
 0x918   : > { %v3047_v45 = vpop.xlane.xlu1 %3046 }
 0x919   : > { %v3056_v31 = vsub.f32 %v3032_v34, %v3050_v54  ;;  %v3057_v47 = vsub.f32 %v3033_v42, %v3050_v54  ;;  %v3051_v14 = vmul.f32 0.00390625, %v3047_v45  ;;  %3072 = vadd.xlane.f32.xlu1 %v3071_v10 }
 0x91b   : > { %v3058_v16 = vsub.f32 %v3034_v35, %v3051_v14  ;;  %v3059_v15 = vsub.f32 %v3035_v60, %v3051_v14  ;;  %v3064_v18 = vmul.f32 %v3056_v31, %v3056_v31  ;;  %v3065_v21 = vmul.f32 %v3057_v47, %v3057_v47 }
 0x91d   : > { %v3074_v23 = vadd.f32 %v3065_v21, %v3064_v18  ;;  %v3066_v24 = vmul.f32 %v3058_v16, %v3058_v16  ;;  %v3067_v25 = vmul.f32 %v3059_v15, %v3059_v15 }
 0x91f   : > { %3075 = vadd.xlane.f32.xlu0 %v3074_v23  ;;  %v3077_v26 = vadd.f32 %v3067_v25, %v3066_v24 }
 0x921   : > { %3078 = vadd.xlane.f32.xlu1 %v3077_v26 }
 0x9a4   : > { %v3070_v27 = vpop.xlane.xlu0 %3069 }
 0x9a5   : > { %v3080_v28 = vmul.f32 0.00390625, %v3070_v27 }
 0x9a6   : > { %v3073_v30 = vpop.xlane.xlu1 %3072 }
 0x9a7   : > { %v3084_v32 = vadd.f32 1e-05, %v3080_v28  ;;  %v3081_v36 = vmul.f32 0.00390625, %v3073_v30 }
 0x9a9   : > { %4138 = vrsqrt.f32 %v3084_v32  ;;  %v3085_v41 = vadd.f32 1e-05, %v3081_v36 }
 0x9ab   : > { %4140 = vrsqrt.f32 %v3085_v41 }
 0x9ac   : > { %v3076_v43 = vpop.xlane.xlu0 %3075 }
 0x9ad   : > { %v3082_v44 = vmul.f32 0.00390625, %v3076_v43 }
 0x9ae   : > { %v3079_v13 = vpop.xlane.xlu1 %3078 }
 0x9af   : > { %v3086_v49 = vadd.f32 1e-05, %v3082_v44  ;;  %v3083_v50 = vmul.f32 0.00390625, %v3079_v13 }
 0x9b1   : > { %4142 = vrsqrt.f32 %v3086_v49  ;;  %v3087_v19 = vadd.f32 1e-05, %v3083_v50 }
 0x9b3   : > { %v4139_v55 = vpop.eup %4138  ;;  %4144 = vrsqrt.f32 %v3087_v19 }
 0x9b4   : > { %v3092_v33 = vmul.f32 %v4139_v55, %v3052_v4  ;;  %v3093_v61 = vmul.f32 %v4139_v55, %v3053_v5 }
 0x9b5   : > { %v4141_v62 = vpop.eup %4140 }
 0x9b6   : > { %v3111_v38 = vmul.f32 %v3104_v51, %v3092_v33  ;;  %v3112_v39 = vmul.f32 %v3108_v53, %v3093_v61  ;;  %v3094_v63 = vmul.f32 %v4141_v62, %v3054_v11  ;;  %v3095_v34 = vmul.f32 %v4141_v62, %v3055_v7 }
 0x9b8   : > { %v3130_v0 = vadd.f32 %v3123_v56, %v3111_v38  ;;  %v3131_v1 = vadd.f32 %v3127_v57, %v3112_v39  ;;  %v3113_v42 = vmul.f32 %v3104_v51, %v3094_v63  ;;  %v3114_v37 = vmul.f32 %v3108_v53, %v3095_v34 }
 0x9ba   : > { %3138 = vst [vmem:[%s516_s30] sm:$0xff] %v3130_v0  ;;  %3139 = vst [vmem:[%s516_s30 + $0x8] sm:$0xff] %v3131_v1  ;;  %v3132_v35 = vadd.f32 %v3123_v56, %v3113_v42  ;;  %v3133_v46 = vadd.f32 %v3127_v57, %v3114_v37 }
 0x9bb   : > { %v4143_v60 = vpop.eup %4142 }
 0x9bc   : > { %3140 = vst [vmem:[%s516_s30 + $0x10] sm:$0xff] %v3132_v35  ;;  %3141 = vst [vmem:[%s516_s30 + $0x18] sm:$0xff] %v3133_v46  ;;  %v3096_v48 = vmul.f32 %v4143_v60, %v3056_v31  ;;  %v3097_v58 = vmul.f32 %v4143_v60, %v3057_v47 }
 0x9bd   : > { %v4145_v2 = vpop.eup %4144 }
 0x9be   : > { %v3115_v40 = vmul.f32 %v3104_v51, %v3096_v48  ;;  %v3116_v59 = vmul.f32 %v3108_v53, %v3097_v58  ;;  %v3098_v3 = vmul.f32 %v4145_v2, %v3058_v16  ;;  %v3099_v4 = vmul.f32 %v4145_v2, %v3059_v15 }
 0x9c0   : > { %v3134_v5 = vadd.f32 %v3123_v56, %v3115_v40  ;;  %v3135_v6 = vadd.f32 %v3127_v57, %v3116_v59  ;;  %v3117_v11 = vmul.f32 %v3104_v51, %v3098_v3  ;;  %v3118_v7 = vmul.f32 %v3108_v53, %v3099_v4 }
 0x9c2   : > { %3142 = vst [vmem:[%s516_s30 + $0x20] sm:$0xff] %v3134_v5  ;;  %3143 = vst [vmem:[%s516_s30 + $0x28] sm:$0xff] %v3135_v6  ;;  %v3136_v8 = vadd.f32 %v3123_v56, %v3117_v11  ;;  %v3137_v29 = vadd.f32 %v3127_v57, %v3118_v7 }
 0x9c4   : > { %3144 = vst [vmem:[%s516_s30 + $0x30] sm:$0xff] %v3136_v8  ;;  %3145 = vst [vmem:[%s516_s30 + $0x38] sm:$0xff] %v3137_v29 }
 0x9c5   : > { %4309 = shalt.err (!%p4306_p13)
}
 0x9c6   : > { %s4310_s21 = scalar_lea.hbm %s4931_s13, 1024  ;;  %s4314_s30 = scalar_lea.hbm %s5026_s19, 2048 }
 0x9c7   : > { %p4311_p9 = scmp.ne.s32.totalorder %s4931_s13, %s4310_s21  ;;  %p4315_p4 = scmp.lt.u32.totalorder %s4931_s13, %s5026_s19 }
 0x9c8   : > { %p4316_p8 = scmp.lt.u32.totalorder %s4314_s30, %s4310_s21  ;;  %p4318_p3 = scmp.lt.u32.totalorder %s4310_s21, %s4931_s13 }
 0x9c9   : > { %p4312_p0 = pnand %p4311_p9, %p4615_p10 }
 0x9ca   : > { %p4317_p6 = por %p4316_p8, %p4315_p4 }
 0x9cb   : > { %p4313_p11 = pneg %p4312_p0 }
 0x9cc   : > { %p4319_p5 = por %p4318_p3, %p4317_p6 }
 0x9ce   : > { %p4320_p7 = pnand %p4319_p5, %p4313_p11 }
 0x9d0   : > { %4323 = shalt.err (!%p4320_p7)
}
 0x9d1   : > { %s4384_s23 = smov 256   ;;  %s4385_s25 = smov 16  }
 0x9d2   : > { %3637 = dma.vmem_to_hbm [thread:$0]  (%p4615_p10), %s4933_s11, 1024, %s4931_s13, %s3147_s29, %s4384_s23, %s4384_s23, %s4385_s25  }
 0x9d3 PF: > { %s5027_s14 = sld [smem:[#allocation16_spill]]  ;;  %s5028_s16 = sld [smem:[#allocation17_spill]] }
 0x9d4   : > { %p5030_p2 = scmp.ge.s32.totalorder %s4370_s28, 2 }
 0x9d9   : > { %s3175_s22 = sand.u32 1, %s5027_s14   ;;  %p5029_p12 = scmp.ne.s32.totalorder %s5028_s16, 0 }
 0x9da   : > { %s3176_s21 = scalar_lea.sflag [#allocation4], %s3175_s22 }
 0x9db   : > { %p3657_p1 = pnand %p5030_p2, %p5029_p12 }
 0x9dd   : > { %4353 = dma.done.wait (!%p3657_p1), %s3176_s21, 1024  }
 0x9de   : > { %4355 = vsyncadd (!%p3657_p1), %s3176_s21, 4294966272  ;;  %p28_p13 = scmp.ge.s32.totalorder %s4605_s15, 4   ;;  %s5031_s25 = smov %s4362_s26 }
 0x9df   : > { %s5032_s26 = smov %s4366_s27  ;;  %s5033_s27 = smov %s4621_s24 }
 0x9e0   : > { %s5034_s28 = smov %s4605_s15  ;;  %30 = sbr.rel (!%p28_p13) target bundleno = 13 (0xd), region = 133 }
 0x9e7   :  { %3181 = vsyncpa [#allocation3], 1 }
 0x9e8   :  { %3183 = vsyncpa [#allocation3 + $0x1], 1 }
 0x9e9   :  { %3184 = vsyncpa [#allocation6], 1 }
 0x9ea   :  { %3185 = vsyncpa [#allocation9], 1 }
 0x9eb   :  { %3186 = vsyncpa [#allocation4], 1 }
 0x9ec   :  { %3188 = vsyncpa [#allocation4 + $0x1], 1 }

// kernel: tpu_custom_call.1
= control target key start
LH: loop header
LB: loop body
LE: loop exit
PB: predicated region body
PF: predicated region fallthrough
CT: control target
= control target key end

     0   :  { %s4977_s0 = inlined_call_operand.hbm [shape: f32[2,32,256], index: 0, kind: input, shape index: {}]   ;;  %s4978_s1 = inlined_call_operand.hbm [shape: bf16[256,768], index: 1, kind: input, shape index: {}]   ;;  %s4979_s2 = inlined_call_operand.vmem [shape: f32[1,768], index: 2, kind: input, shape index: {}]   ;;  %s4980_s3 = inlined_call_operand.hbm [shape: bf16[256,256], index: 3, kind: input, shape index: {}]   ;;  %s4981_s4 = inlined_call_operand.vmem [shape: f32[1,256], index: 4, kind: input, shape index: {}]   ;;  %s4982_s5 = inlined_call_operand.hbm [shape: bf16[256,512], index: 5, kind: input, shape index: {}]   ;;  %s4983_s6 = inlined_call_operand.vmem [shape: f32[1,512], index: 6, kind: input, shape index: {}]   ;;  %s4984_s7 = inlined_call_operand.hbm [shape: bf16[512,256], index: 7, kind: input, shape index: {}]   ;;  %s4985_s8 = inlined_call_operand.vmem [shape: f32[1,256], index: 8, kind: input, shape index: {}]   ;;  %s4986_s9 = inlined_call_operand.vmem [shape: f32[1,256], index: 9, kind: input, shape index: {}]   ;;  %s4987_s10 = inlined_call_operand.vmem [shape: f32[1,256], index: 10, kind: input, shape index: {}]   ;;  %s4988_s11 = inlined_call_operand.vmem [shape: f32[1,256], index: 11, kind: input, shape index: {}]   ;;  %s4989_s12 = inlined_call_operand.vmem [shape: f32[1,256], index: 12, kind: input, shape index: {}]   ;;  %s4990_s13 = inlined_call_operand.hbm [shape: f32[2,32,256], index: 13, kind: output, shape index: {}]  }
   0x1   :  { %4999 = sst [smem:[#allocation18_spill]] %s4978_s1 }
   0x2   :  { %5000 = sst [smem:[#allocation19_spill]] %s4985_s8 }
   0x3   :  { %5001 = sst [smem:[#allocation20_spill]] %s4988_s11 }
   0x4   :  { %5002 = sst [smem:[#allocation21_spill]] %s4989_s12 }
   0x5   :  { %5003 = sst [smem:[#allocation22_spill]] %s4990_s13 }
   0x6   :  { %18 = vsyncpa [#allocation3], 0 }
   0x7   :  { %20 = vsyncpa [#allocation3 + $0x1], 0 }
   0x8   :  { %21 = vsyncpa [#allocation6], 0 }
   0x9   :  { %22 = vsyncpa [#allocation9], 0 }
   0xa   :  { %23 = vsyncpa [#allocation4], 0 }
   0xb   :  { %25 = vsyncpa [#allocation4 + $0x1], 0  ;;  %s4456_s25 = smov 0   ;;  %s4458_s26 = smov 0  }
   0xc   :  { %s4460_s27 = smov 0   ;;  %s4462_s28 = smov 0  }
   0xd LB: > { %5004 = sst [smem:[#allocation16_spill]] %s4358_s25  ;;  %s4477_s29 = sadd.s32 4294967295, %s4370_s28   ;;  %s4370_s28 = sphi %s4462_s28, %s5034_s28   ;;  %s4366_s27 = sphi %s4460_s27, %s5033_s27   ;;  %s4362_s26 = sphi %s4458_s26, %s5032_s26   ;;  %s4358_s25 = sphi %s4456_s25, %s5031_s25  }
   0xe   : > { %s3271_s30 = sadd.s32 4294967294, %s4370_s28   ;;  %p51_p0 = scmp.ne.s32.totalorder %s4362_s26, %s4358_s25 }
   0xf   : > { %p4993_p1 = scmp.eq.s32.totalorder %s4477_s29, 0  ;;  %p333_p3 = scmp.eq.s32.totalorder %s3271_s30, 1 }
  0x10   : > { %p3272_p5 = scmp.ge.s32.totalorder %s4370_s28, 1  ;;  %p340_p7 = scmp.lt.s32.totalorder %s4370_s28, 3 }
  0x11   : > { %p4486_p4 = por %p4993_p1, %p51_p0  ;;  %p4491_p6 = por %p333_p3, %p51_p0 }
  0x12   : > { %p4496_p8 = pnand %p3272_p5, %p340_p7  ;;  %s4372_s17 = smov [#allocation5]  }
  0x13   : > { %s5005_s14 = scalar_select %p4486_p4, 1, 0 }
  0x14   : > { %s5006_s15 = scalar_select %p4491_p6, 1, 0 }
  0x15   : > { %s5008_s16 = scalar_select %p4496_p8, 1, 0 }
  0x16   : > { %5007 = sst [smem:[#allocation17_spill]] %s5006_s15  ;;  %s352_s18 = sshll.u32 %s4372_s17, 4  ;;  %s4500_s18 = int_to_ptr.vmem [resolvable:$true] %s352_s18 }
  0x17   : > { %p3639_p9 = pneg %p4496_p8  ;;  %s4373_s20 = smov [#allocation8]  }
  0x18   : > { %s384_s21 = sshll.u32 %s4373_s20, 4  ;;  %s5010_s1 = sld [smem:[#allocation18_spill]]  ;;  %s4511_s21 = int_to_ptr.vmem [resolvable:$true] %s384_s21 }
  0x19   : > { %p4507_p11 = pnand %p3639_p9, %p4993_p1 }
  0x1b   : > { %p4521_p13 = pneg %p4507_p11 }
  0x1e   : > { %s4154_s24 = scalar_lea.hbm %s5010_s1, 12288 }
  0x1f   : > { %p4155_p12 = scmp.ne.s32.totalorder %s5010_s1, %s4154_s24  ;;  %p4161_p5 = scmp.lt.u32.totalorder %s4154_s24, %s5010_s1 }
  0x21   : > { %p4157_p0 = pnand %p4521_p13, %p4155_p12 }
  0x23   : > { %p4158_p3 = pneg %p4157_p0 }
  0x25   : > { %p4163_p7 = pnand %p4161_p5, %p4158_p3 }
  0x27   : > { %4166 = shalt.err (!%p4163_p7)
}
  0x28   : > { %s4167_s22 = scalar_lea.vmem %s4500_s18, 12288  ;;  %p4175_p2 = scmp.lt.s32.totalorder %s4500_s18, %s4500_s18 }
  0x29   : > { %p4168_p9 = scmp.ne.s32.totalorder %s4500_s18, %s4167_s22  ;;  %p4176_p6 = scmp.lt.s32.totalorder %s4167_s22, %s4167_s22 }
  0x2b   : > { %p4170_p10 = pnand %p4168_p9, %p4521_p13  ;;  %p4177_p12 = por %p4176_p6, %p4175_p2 }
  0x2d   : > { %p4171_p1 = pneg %p4170_p10 }
  0x2f   : > { %p4178_p0 = pnand %p4177_p12, %p4171_p1 }
  0x31   : > { %4181 = shalt.err (!%p4178_p0)
}
  0x32   : > { %s4374_s23 = smov 384   ;;  %s4375_s25 = smov 24  }
  0x33   : > { %3642 = dma.hbm_to_vmem [thread:$0]  (!%p4507_p11), %s5010_s1, 12288, %s4500_s18, [#allocation6], %s4374_s23, %s4374_s23, %s4375_s25  }
  0x34   : > { %s4182_s13 = scalar_lea.hbm %s4982_s5, 8192 }
  0x35   : > { %p4183_p2 = scmp.ne.s32.totalorder %s4982_s5, %s4182_s13  ;;  %p4189_p10 = scmp.lt.u32.totalorder %s4182_s13, %s4982_s5 }
  0x37   : > { %p4185_p1 = pnand %p4183_p2, %p4521_p13 }
  0x39   : > { %p4186_p6 = pneg %p4185_p1 }
  0x3b   : > { %p4191_p3 = pnand %p4189_p10, %p4186_p6 }
  0x3d   : > { %4194 = shalt.err (!%p4191_p3)
}
  0x3e   : > { %s4195_s18 = scalar_lea.vmem %s4511_s21, 8192  ;;  %p4203_p12 = scmp.lt.s32.totalorder %s4511_s21, %s4511_s21 }
  0x3f   : > { %p4196_p5 = scmp.ne.s32.totalorder %s4511_s21, %s4195_s18  ;;  %p4204_p0 = scmp.lt.s32.totalorder %s4195_s18, %s4195_s18 }
  0x41   : > { %p4198_p7 = pnand %p4196_p5, %p4521_p13  ;;  %p4205_p2 = por %p4204_p0, %p4203_p12 }
  0x43   : > { %p4199_p9 = pneg %p4198_p7 }
  0x45   : > { %p4206_p1 = pnand %p4205_p2, %p4199_p9 }
  0x47   : > { %4209 = shalt.err (!%p4206_p1)
}
  0x48   : > { %s4997_s11 = smov 256   ;;  %s4998_s8 = smov 16  }
  0x49   : > { %3648 = dma.hbm_to_vmem [thread:$0]  (!%p4507_p11), %s4982_s5, 8192, %s4511_s21, [#allocation9], %s4997_s11, %s4997_s11, %s4998_s8  }
  0x4a   : > { %s4378_s23 = smov [#allocation7]   ;;  %s4210_s17 = scalar_lea.hbm %s4980_s3, 4096 }
  0x4b   : > { %s368_s25 = sshll.u32 %s4378_s23, 4  ;;  %p4211_p6 = scmp.ne.s32.totalorder %s4980_s3, %s4210_s17  ;;  %s369_s25 = int_to_ptr.vmem [resolvable:$true] %s368_s25 }
  0x4c   : > { %p4217_p5 = scmp.lt.u32.totalorder %s4210_s17, %s4980_s3 }
  0x4d   : > { %p4213_p10 = pnand %p4211_p6, %p4521_p13 }
  0x4f   : > { %p4214_p3 = pneg %p4213_p10 }
  0x51   : > { %p4219_p7 = pnand %p4217_p5, %p4214_p3 }
  0x53   : > { %4222 = shalt.err (!%p4219_p7)
}
  0x54   : > { %s4223_s21 = scalar_lea.vmem %s369_s25, 4096  ;;  %p4231_p2 = scmp.lt.s32.totalorder %s369_s25, %s369_s25 }
  0x55   : > { %p4224_p9 = scmp.ne.s32.totalorder %s369_s25, %s4223_s21  ;;  %p4232_p1 = scmp.lt.s32.totalorder %s4223_s21, %s4223_s21 }
  0x57   : > { %p4226_p12 = pnand %p4224_p9, %p4521_p13  ;;  %p4233_p4 = por %p4232_p1, %p4231_p2 }
  0x59   : > { %p4227_p0 = pneg %p4226_p12 }
  0x5b   : > { %p4234_p8 = pnand %p4233_p4, %p4227_p0 }
  0x5d   : > { %4237 = shalt.err (!%p4234_p8)
}
  0x5e   : > { %s4379_s12 = smov 128   ;;  %s4380_s13 = smov 8  }
  0x5f   : > { %3645 = dma.hbm_to_vmem [thread:$0]  (!%p4507_p11), %s4980_s3, 4096, %s369_s25, [#allocation6], %s4379_s12, %s4379_s12, %s4380_s13  }
  0x60   : > { %s4381_s24 = smov [#allocation10]   ;;  %s4238_s22 = scalar_lea.hbm %s4984_s7, 8192 }
  0x61   : > { %s400_s30 = sshll.u32 %s4381_s24, 4  ;;  %p4239_p4 = scmp.ne.s32.totalorder %s4984_s7, %s4238_s22  ;;  %s401_s30 = int_to_ptr.vmem [resolvable:$true] %s400_s30 }
  0x62   : > { %p4245_p10 = scmp.lt.u32.totalorder %s4238_s22, %s4984_s7 }
  0x63   : > { %p4241_p8 = pnand %p4239_p4, %p4521_p13 }
  0x65   : > { %p4242_p6 = pneg %p4241_p8 }
  0x67   : > { %p4247_p3 = pnand %p4245_p10, %p4242_p6 }
  0x69   : > { %4250 = shalt.err (!%p4247_p3)
}
  0x6a   : > { %s4251_s25 = scalar_lea.vmem %s401_s30, 8192  ;;  %p4259_p12 = scmp.lt.s32.totalorder %s401_s30, %s401_s30 }
  0x6b   : > { %p4252_p5 = scmp.ne.s32.totalorder %s401_s30, %s4251_s25  ;;  %p4260_p0 = scmp.lt.s32.totalorder %s4251_s25, %s4251_s25 }
  0x6d   : > { %p4254_p7 = pnand %p4252_p5, %p4521_p13  ;;  %p4261_p2 = por %p4260_p0, %p4259_p12 }
  0x6f   : > { %p4255_p9 = pneg %p4254_p7 }
  0x71   : > { %p4262_p1 = pnand %p4261_p2, %p4255_p9 }
  0x73   : > { %4265 = shalt.err (!%p4262_p1)
}
  0x74   : > { %3651 = dma.hbm_to_vmem [thread:$0]  (!%p4507_p11), %s4984_s7, 8192, %s401_s30, [#allocation9], %s4379_s12, %s4379_s12, %s4380_s13  }
  0x75   : > { %s4605_s15 = sadd.s32 1, %s4370_s28   ;;  %s38_s11 = sadd.s32 1, %s4366_s27 }
  0x76   : > { %s35_s19 = ssub.s32 %s4370_s28, %s4605_s15  ;;  %p45_p13 = scmp.ne.s32.totalorder %s4366_s27, %s4362_s26 }
  0x77   : > { %p36_p4 = scmp.eq.s32.totalorder %s35_s19, 0  ;;  %p46_p8 = scmp.eq.s32.totalorder %s4370_s28, 0 }
  0x78   : > { %p5012_p6 = scmp.eq.s32.totalorder %s4477_s29, 1  ;;  %p3664_p3 = scmp.lt.s32.totalorder %s4370_s28, 2 }
  0x79   : > { %s4621_s24 = scalar_select %p36_p4, %s4366_s27, %s38_s11  }
  0x7a   : > { %p4615_p10 = por %p5012_p6, %p45_p13  ;;  %p47_p5 = por %p46_p8, %p45_p13 }
  0x7b   : > { %s429_s17 = sand.u32 1, %s4366_s27   ;;  %s3553_s12 = sshll.u32 %s4370_s28, 10 }
  0x7c   : > { %s3278_s20 = sshll.u32 %s429_s17, 6  ;;  %s4628_s22 = scalar_lea.hbm %s4977_s0, %s3553_s12 }
  0x7d   : > { %s433_s18 = scalar_lea.vmem [#allocation2], %s3278_s20  ;;  %p4632_p11 = pnand %p3664_p3, %p47_p5 }
  0x7e   : > { %s440_s21 = sshll.u32 %s433_s18, 4  ;;  %s4636_s1 = scalar_lea.sflag [#allocation3], %s429_s17  ;;  %s4630_s21 = int_to_ptr.vmem [resolvable:$true] %s440_s21 }
  0x7f   : > { %s4266_s23 = scalar_lea.hbm %s4628_s22, 1024  ;;  %p4268_p9 = pneg %p4632_p11 }
  0x80   : > { %p4267_p7 = scmp.ne.s32.totalorder %s4628_s22, %s4266_s23  ;;  %s4271_s20 = scalar_lea.hbm %s4977_s0, 2048 }
  0x81   : > { %p4272_p2 = scmp.lt.u32.totalorder %s4628_s22, %s4977_s0  ;;  %p4273_p1 = scmp.lt.u32.totalorder %s4271_s20, %s4266_s23 }
  0x82   : > { %p4269_p12 = pnand %p4268_p9, %p4267_p7  ;;  %p4275_p4 = scmp.lt.u32.totalorder %s4266_s23, %s4628_s22 }
  0x83   : > { %p4274_p13 = por %p4273_p1, %p4272_p2 }
  0x84   : > { %p4270_p0 = pneg %p4269_p12 }
  0x85   : > { %p4276_p8 = por %p4275_p4, %p4274_p13 }
  0x87   : > { %p4277_p6 = pnand %p4276_p8, %p4270_p0 }
  0x89   : > { %4280 = shalt.err (!%p4277_p6)
}
  0x8a   : > { %s4281_s17 = scalar_lea.vmem %s4630_s21, 1024  ;;  %s4382_s30 = smov [#allocation2]  }
  0x8b   : > { %p4282_p3 = scmp.ne.s32.totalorder %s4630_s21, %s4281_s17  ;;  %s4286_s18 = sshll.u32 %s4382_s30, 4  ;;  %s4287_s18 = int_to_ptr.vmem [resolvable:$false] %s4286_s18 }
  0x8c   : > { %s4288_s11 = scalar_lea.vmem %s4287_s18, 2048  ;;  %p4289_p12 = scmp.lt.s32.totalorder %s4630_s21, %s4287_s18 }
  0x8d   : > { %p4284_p5 = pnand %p4282_p3, %p4268_p9  ;;  %p4290_p2 = scmp.lt.s32.totalorder %s4288_s11, %s4281_s17 }
  0x8f   : > { %p4285_p7 = pneg %p4284_p5  ;;  %p4291_p1 = por %p4290_p2, %p4289_p12 }
  0x91   : > { %p4292_p13 = pnand %p4291_p1, %p4285_p7 }
  0x93   : > { %4295 = shalt.err (!%p4292_p13)
}
  0x94   : > { %s5015_s23 = smov 16   ;;  %s5016_s19 = smov 256  }
  0x95   : > { %3655 = dma.hbm_to_vmem [thread:$0]  (!%p4632_p11), %s4628_s22, 1024, %s4630_s21, %s4636_s1, %s5016_s19, %s5016_s19, %s5015_s23  }
  0x96   : > { %p5017_p9 = scmp.ne.s32.totalorder %s5008_s16, 0 }
  0x97   : > { %s4670_s20 = sand.u32 (!%p5017_p9), 1, %s4362_s26   ;;  %p5018_p0 = scmp.ne.s32.totalorder (!%p5017_p9), %s5005_s14, 0 }
  0x98   : > { %452 = sbr.rel (%p5017_p9) target bundleno = 2515 (0x9d3), region = 72  ;;  %s3282_s12 = sshll.u32 (!%p5017_p9), %s4670_s20, 6 }
  0x99   : > { %s455_s13 = scalar_lea.sflag (!%p5017_p9), [#allocation3], %s4670_s20  ;;  %s4676_s25 = scalar_lea.vmem (!%p5017_p9), [#allocation2], %s3282_s12 }
  0x9f   : > { %4341 = dma.done.wait (%p5018_p0), %s455_s13, 1024  }
  0xa0   : > { %4343 = vsyncadd (%p5018_p0), %s455_s13, 4294966272  ;;  %p5019_p11 = scmp.eq.s32.totalorder %s4477_s29, 0 }
  0xa2   : > { %4345 = dma.done.wait (%p5019_p11), [#allocation6], 16384   ;;  %p5020_p4 = pmov %p5019_p11 }
  0xa4   : > { %4347 = vsyncadd (%p5020_p4), [#allocation6], 4294950912  ;;  %p5021_p8 = pmov %p5020_p4 }
  0xa5   : > { %p5022_p6 = pmov %p5020_p4 }
  0xa6   : > { %4349 = dma.done.wait (%p5021_p8), [#allocation9], 16384  }
  0xa7   : > { %4351 = vsyncadd (%p5022_p6), [#allocation9], 4294950912  ;;  %v3714_v0 = vld [vmem:[#allocation5 + $0x4] ss:$24 sps:$4 sm:$0xff]   ;;  %v3716_v1 = vld [vmem:[#allocation5] ss:$24 sps:$4 sm:$0xff]  }
  0xa8   : > { %1145 = vmatprep.subr.bf16.mxu1 %v3714_v0  ;;  %v3717_v2 = vld [vmem:[#allocation5 + $0x34] ss:$24 sps:$4 sm:$0xff]   ;;  %v3719_v3 = vld [vmem:[#allocation5 + $0x30] ss:$24 sps:$4 sm:$0xff]   ;;  %v3720_v4 = vld [vmem:[#allocation5 + $0x64] ss:$24 sps:$4 sm:$0xff]  }
  0xa9   : > { %1146 = vmatpush1.bf16.msra.mxu1 %v3716_v1  ;;  %v3722_v5 = vld [vmem:[#allocation5 + $0x60] ss:$24 sps:$4 sm:$0xff]   ;;  %v3723_v6 = vld [vmem:[#allocation5 + $0x94] ss:$24 sps:$4 sm:$0xff]   ;;  %v3725_v7 = vld [vmem:[#allocation5 + $0x90] ss:$24 sps:$4 sm:$0xff]  }
  0xaa   : > { %1147 = vmatprep.subr.bf16.mxu1 %v3717_v2  ;;  %v3726_v8 = vld [vmem:[#allocation5 + $0xc4] ss:$24 sps:$4 sm:$0xff]   ;;  %v3728_v9 = vld [vmem:[#allocation5 + $0xc0] ss:$24 sps:$4 sm:$0xff]   ;;  %v3729_v10 = vld [vmem:[#allocation5 + $0xf4] ss:$24 sps:$4 sm:$0xff]  }
  0xab   : > { %v3731_v11 = vld [vmem:[#allocation5 + $0xf0] ss:$24 sps:$4 sm:$0xff]   ;;  %v3732_v12 = vld [vmem:[#allocation5 + $0x124] ss:$24 sps:$4 sm:$0xff]   ;;  %v3734_v16 = vld [vmem:[#allocation5 + $0x120] ss:$24 sps:$4 sm:$0xff]  }
  0xac   : > { %v519_v13 = vld [vmem:[%s4676_s25 + $0x8] sm:$0xff]  ;;  %v521_v14 = vld [vmem:[%s4676_s25 + $0x18] sm:$0xff]  ;;  %v518_v42 = vld [vmem:[%s4676_s25] sm:$0xff]  ;;  %vm1359_vm0 = vcmask 261120   ;;  %s5024_s22 = sld [smem:[#allocation20_spill]]  ;;  %s5025_s17 = sld [smem:[#allocation21_spill]] }
  0xad   : > { %1148 = vmatpush1.bf16.msra.mxu1 %v3719_v3  ;;  %v4692_v15 = vpack.c.bf16 %v521_v14, %v519_v13  ;;  %v3735_v17 = vld [vmem:[#allocation5 + $0x154] ss:$24 sps:$4 sm:$0xff]   ;;  %v3737_v18 = vld [vmem:[#allocation5 + $0x150] ss:$24 sps:$4 sm:$0xff]   ;;  %v3738_v19 = vld [vmem:[#allocation5 + $0x184] ss:$24 sps:$4 sm:$0xff]  }
  0xae   : > { %1149 = vmatprep.subr.bf16.mxu1 %v3720_v4  ;;  %v3740_v20 = vld [vmem:[#allocation5 + $0x180] ss:$24 sps:$4 sm:$0xff]   ;;  %v3741_v21 = vld [vmem:[#allocation5 + $0x1b4] ss:$24 sps:$4 sm:$0xff]   ;;  %v3743_v22 = vld [vmem:[#allocation5 + $0x1b0] ss:$24 sps:$4 sm:$0xff]  }
  0xaf   : > { %1177 = vmatprep.mubr.bf16.mxu1 %v4692_v15  ;;  %1283 = vmatprep.mubr.bf16.mxu0 %v4692_v15  ;;  %v3744_v23 = vld [vmem:[#allocation5 + $0x1e4] ss:$24 sps:$4 sm:$0xff]   ;;  %v3746_v24 = vld [vmem:[#allocation5 + $0x1e0] ss:$24 sps:$4 sm:$0xff]   ;;  %v3747_v25 = vld [vmem:[#allocation5 + $0x214] ss:$24 sps:$4 sm:$0xff]  }
  0xb0   : > { %v3749_v26 = vld [vmem:[#allocation5 + $0x210] ss:$24 sps:$4 sm:$0xff]   ;;  %v3750_v27 = vld [vmem:[#allocation5 + $0x244] ss:$24 sps:$4 sm:$0xff]   ;;  %v3810_v28 = vld [vmem:[#allocation5 + $0x14] ss:$24 sps:$4 sm:$0xff]  }
  0xb1   : > { %1150 = vmatpush1.bf16.msra.mxu1 %v3722_v5  ;;  %v3812_v29 = vld [vmem:[#allocation5 + $0x10] ss:$24 sps:$4 sm:$0xff]   ;;  %v3752_v30 = vld [vmem:[#allocation5 + $0x240] ss:$24 sps:$4 sm:$0xff]   ;;  %v3813_v31 = vld [vmem:[#allocation5 + $0x44] ss:$24 sps:$4 sm:$0xff]   ;;  %1251 = vmatprep.subr.bf16.mxu0 %v3810_v28 }
  0xb2   : > { %1151 = vmatprep.subr.bf16.mxu1 %v3723_v6  ;;  %v3753_v32 = vld [vmem:[#allocation5 + $0x274] ss:$24 sps:$4 sm:$0xff]   ;;  %1252 = vmatpush1.bf16.msra.mxu0 %v3812_v29  ;;  %v3815_v33 = vld [vmem:[#allocation5 + $0x40] ss:$24 sps:$4 sm:$0xff]   ;;  %v3755_v35 = vld [vmem:[#allocation5 + $0x270] ss:$24 sps:$4 sm:$0xff]  }
  0xb3   : > { %1253 = vmatprep.subr.bf16.mxu0 %v3813_v31  ;;  %v3816_v34 = vld [vmem:[#allocation5 + $0x74] ss:$24 sps:$4 sm:$0xff]   ;;  %v3756_v36 = vld [vmem:[#allocation5 + $0x2a4] ss:$24 sps:$4 sm:$0xff]   ;;  %v3818_v37 = vld [vmem:[#allocation5 + $0x70] ss:$24 sps:$4 sm:$0xff]  }
  0xb4   : > { %v3819_v38 = vld [vmem:[#allocation5 + $0xa4] ss:$24 sps:$4 sm:$0xff]   ;;  %v3758_v39 = vld [vmem:[#allocation5 + $0x2a0] ss:$24 sps:$4 sm:$0xff]   ;;  %v3759_v40 = vld [vmem:[#allocation5 + $0x2d4] ss:$24 sps:$4 sm:$0xff]  }
  0xb5   : > { %1152 = vmatpush1.bf16.msra.mxu1 %v3725_v7  ;;  %v3761_v41 = vld [vmem:[#allocation5 + $0x2d0] ss:$24 sps:$4 sm:$0xff]   ;;  %v3821_v43 = vld [vmem:[#allocation5 + $0xa0] ss:$24 sps:$4 sm:$0xff]   ;;  %v3822_v45 = vld [vmem:[#allocation5 + $0xd4] ss:$24 sps:$4 sm:$0xff]  }
  0xb6   : > { %1153 = vmatprep.subr.bf16.mxu1 %v3726_v8  ;;  %1254 = vmatpush1.bf16.msra.mxu0 %v3815_v33  ;;  %v520_v44 = vld [vmem:[%s4676_s25 + $0x10] sm:$0xff]  ;;  %v3764_v46 = vld [vmem:[#allocation5 + $0xc] ss:$24 sps:$4 sm:$0xff]   ;;  %v525_v48 = vld [vmem:[%s4676_s25 + $0x38] sm:$0xff]  ;;  %s516_s30 = scalar_lea.vmem [#allocation11], %s3282_s12  ;;  %s3554_s18 = sshll.u32 %s4477_s29, 10 }
  0xb7   : > { %1255 = vmatprep.subr.bf16.mxu0 %v3816_v34  ;;  %v523_v47 = vld [vmem:[%s4676_s25 + $0x28] sm:$0xff]  ;;  %v4700_v50 = vpack.c.bf16 %v520_v44, %v518_v42  ;;  %v3825_v51 = vld [vmem:[#allocation5 + $0x104] ss:$24 sps:$4 sm:$0xff]   ;;  %v3765_v55 = vld [vmem:[#allocation5 + $0x38] ss:$24 sps:$4 sm:$0xff]   ;;  %v635_v44 = vlaneseq  ;;  %s3160_s11 = sshll.u32 %s516_s30, 4  ;;  %s4933_s11 = int_to_ptr.vmem [resolvable:$true] %s3160_s11 }
  0xb8   : > { %v3824_v49 = vld [vmem:[#allocation5 + $0xd0] ss:$24 sps:$4 sm:$0xff]   ;;  %v4702_v53 = vpack.c.bf16 %v525_v48, %v523_v47  ;;  %v3767_v54 = vld [vmem:[#allocation5 + $0x3c] ss:$24 sps:$4 sm:$0xff]   ;;  %v3827_v56 = vld [vmem:[#allocation5 + $0x100] ss:$24 sps:$4 sm:$0xff]  }
  0xb9   : > { %1154 = vmatpush1.bf16.msra.mxu1 %v3728_v9  ;;  %v3762_v52 = vld [vmem:[#allocation5 + $0x8] ss:$24 sps:$4 sm:$0xff]   ;;  %v3770_v57 = vld [vmem:[#allocation5 + $0x6c] ss:$24 sps:$4 sm:$0xff]   ;;  %v524_v59 = vld [vmem:[%s4676_s25 + $0x30] sm:$0xff]  ;;  %s5026_s19 = sld [smem:[#allocation22_spill]] }
  0xba   : > { %1155 = vmatprep.subr.bf16.mxu1 %v3729_v10  ;;  %1256 = vmatpush1.bf16.msra.mxu0 %v3818_v37  ;;  %v522_v58 = vld [vmem:[%s4676_s25 + $0x20] sm:$0xff]  ;;  %v3828_v60 = vld [vmem:[#allocation5 + $0x134] ss:$24 sps:$4 sm:$0xff]   ;;  %v3830_v61 = vld [vmem:[#allocation5 + $0x130] ss:$24 sps:$4 sm:$0xff]   ;;  %s3147_s29 = scalar_lea.sflag [#allocation4], %s4670_s20 }
  0xbb   : > { %1257 = vmatprep.subr.bf16.mxu0 %v3819_v38  ;;  %v3831_v62 = vld [vmem:[#allocation5 + $0x164] ss:$24 sps:$4 sm:$0xff]   ;;  %v3768_v63 = vld [vmem:[#allocation5 + $0x68] ss:$24 sps:$4 sm:$0xff]   ;;  %v4708_v1 = vpack.c.bf16 %v524_v59, %v522_v58  ;;  %v3834_v3 = vld [vmem:[#allocation5 + $0x194] ss:$24 sps:$4 sm:$0xff]  }
  0xbc   : > { %v3773_v0 = vld [vmem:[#allocation5 + $0x9c] ss:$24 sps:$4 sm:$0xff]   ;;  %v3833_v2 = vld [vmem:[#allocation5 + $0x160] ss:$24 sps:$4 sm:$0xff]   ;;  %v3776_v5 = vld [vmem:[#allocation5 + $0xcc] ss:$24 sps:$4 sm:$0xff]  }
  0xbd   : > { %1156 = vmatpush1.bf16.msra.mxu1 %v3731_v11  ;;  %v3771_v4 = vld [vmem:[#allocation5 + $0x98] ss:$24 sps:$4 sm:$0xff]   ;;  %v3837_v7 = vld [vmem:[#allocation5 + $0x1c4] ss:$24 sps:$4 sm:$0xff]   ;;  %v3774_v8 = vld [vmem:[#allocation5 + $0xc8] ss:$24 sps:$4 sm:$0xff]  }
  0xbe   : > { %1157 = vmatprep.subr.bf16.mxu1 %v3732_v12  ;;  %1258 = vmatpush1.bf16.msra.mxu0 %v3821_v43  ;;  %v3836_v6 = vld [vmem:[#allocation5 + $0x190] ss:$24 sps:$4 sm:$0xff]   ;;  %v3779_v9 = vld [vmem:[#allocation5 + $0xfc] ss:$24 sps:$4 sm:$0xff]   ;;  %v3839_v10 = vld [vmem:[#allocation5 + $0x1c0] ss:$24 sps:$4 sm:$0xff]  }
  0xbf   : > { %1259 = vmatprep.subr.bf16.mxu0 %v3822_v45  ;;  %v3840_v11 = vld [vmem:[#allocation5 + $0x1f4] ss:$24 sps:$4 sm:$0xff]   ;;  %v3777_v12 = vld [vmem:[#allocation5 + $0xf8] ss:$24 sps:$4 sm:$0xff]   ;;  %v3855_v31 = vld [vmem:[#allocation5 + $0x2e4] ss:$24 sps:$4 sm:$0xff]   ;;  %s4931_s13 = scalar_lea.hbm %s5026_s19, %s3554_s18 }
  0xc0   : > { %v3782_v13 = vld [vmem:[#allocation5 + $0x12c] ss:$24 sps:$4 sm:$0xff]   ;;  %v3842_v14 = vld [vmem:[#allocation5 + $0x1f0] ss:$24 sps:$4 sm:$0xff]   ;;  %v3797_v33 = vld [vmem:[#allocation5 + $0x21c] ss:$24 sps:$4 sm:$0xff]  }
  0xc1   : > { %1158 = vmatpush1.bf16.msra.mxu1 %v3734_v16  ;;  %v3843_v16 = vld [vmem:[#allocation5 + $0x224] ss:$24 sps:$4 sm:$0xff]   ;;  %v3789_v28 = vld [vmem:[#allocation5 + $0x1b8] ss:$24 sps:$4 sm:$0xff]   ;;  %v3798_v37 = vld [vmem:[#allocation5 + $0x248] ss:$24 sps:$4 sm:$0xff]  }
  0xc2   : > { %1159 = vmatprep.subr.bf16.mxu1 %v3735_v17  ;;  %1260 = vmatpush1.bf16.msra.mxu0 %v3824_v49  ;;  %v3785_v17 = vld [vmem:[#allocation5 + $0x15c] ss:$24 sps:$4 sm:$0xff]   ;;  %v3794_v29 = vld [vmem:[#allocation5 + $0x1ec] ss:$24 sps:$4 sm:$0xff]   ;;  %v3857_v34 = vld [vmem:[#allocation5 + $0x2e0] ss:$24 sps:$4 sm:$0xff]  }
  0xc3   : > { %1261 = vmatprep.subr.bf16.mxu0 %v3825_v51  ;;  %v3803_v38 = vld [vmem:[#allocation5 + $0x27c] ss:$24 sps:$4 sm:$0xff]   ;;  %v3807_v43 = vld [vmem:[#allocation5 + $0x2d8] ss:$24 sps:$4 sm:$0xff]   ;;  %v4718_v45 = vshrl.u32 %v635_v44, 7  ;;  %s4383_s14 = smov [#allocation11]  }
  0xc4   : > { %v3809_v42 = vld [vmem:[#allocation5 + $0x2dc] ss:$24 sps:$4 sm:$0xff]   ;;  %v530_v47 = vld [vmem:[%s4979_s2] sm:$0x3f]  ;;  %s4300_s16 = sshll.u32 %s4383_s14, 4  ;;  %s4301_s16 = int_to_ptr.vmem [resolvable:$false] %s4300_s16 }
  0xc5   : > { %1160 = vmatpush1.bf16.msra.mxu1 %v3737_v18  ;;  %v3845_v18 = vld [vmem:[#allocation5 + $0x220] ss:$24 sps:$4 sm:$0xff]   ;;  %v4727_v48 = vsub.s32 1, %v4718_v45  ;;  %p4303_p12 = scmp.lt.s32.totalorder %s4933_s11, %s4301_s16 }
  0xc6   : > { %1161 = vmatprep.subr.bf16.mxu1 %v3738_v19  ;;  %1262 = vmatpush1.bf16.msra.mxu0 %v3827_v56  ;;  %v3846_v19 = vld [vmem:[#allocation5 + $0x254] ss:$24 sps:$4 sm:$0xff]  }
  0xc7   : > { %1263 = vmatprep.subr.bf16.mxu0 %v3828_v60  ;;  %v642_v51 = vrot.slane %v530_v47, %v4727_v48 }
  0xc9   : > { %1162 = vmatpush1.bf16.msra.mxu1 %v3740_v20  ;;  %v3783_v20 = vld [vmem:[#allocation5 + $0x158] ss:$24 sps:$4 sm:$0xff]  }
  0xca   : > { %1163 = vmatprep.subr.bf16.mxu1 %v3741_v21  ;;  %1264 = vmatpush1.bf16.msra.mxu0 %v3830_v61  ;;  %v3788_v21 = vld [vmem:[#allocation5 + $0x18c] ss:$24 sps:$4 sm:$0xff]  }
  0xcb   : > { %1265 = vmatprep.subr.bf16.mxu0 %v3831_v62 }
  0xcd   : > { %1164 = vmatpush1.bf16.msra.mxu1 %v3743_v22  ;;  %v3848_v22 = vld [vmem:[#allocation5 + $0x250] ss:$24 sps:$4 sm:$0xff]  }
  0xce   : > { %1165 = vmatprep.subr.bf16.mxu1 %v3744_v23  ;;  %1266 = vmatpush1.bf16.msra.mxu0 %v3833_v2  ;;  %v3849_v23 = vld [vmem:[#allocation5 + $0x284] ss:$24 sps:$4 sm:$0xff]  }
  0xcf   : > { %1267 = vmatprep.subr.bf16.mxu0 %v3834_v3 }
  0xd1   : > { %1166 = vmatpush1.bf16.msra.mxu1 %v3746_v24  ;;  %v3786_v24 = vld [vmem:[#allocation5 + $0x188] ss:$24 sps:$4 sm:$0xff]  }
  0xd2   : > { %1167 = vmatprep.subr.bf16.mxu1 %v3747_v25  ;;  %1268 = vmatpush1.bf16.msra.mxu0 %v3836_v6  ;;  %v3791_v25 = vld [vmem:[#allocation5 + $0x1bc] ss:$24 sps:$4 sm:$0xff]  }
  0xd3   : > { %1269 = vmatprep.subr.bf16.mxu0 %v3837_v7  ;;  %v653_v7 = vsub.s32 4, %v4718_v45 }
  0xd5   : > { %1168 = vmatpush1.bf16.msra.mxu1 %v3749_v26  ;;  %v3851_v26 = vld [vmem:[#allocation5 + $0x280] ss:$24 sps:$4 sm:$0xff]  }
  0xd6   : > { %1169 = vmatprep.subr.bf16.mxu1 %v3750_v27  ;;  %1270 = vmatpush1.bf16.msra.mxu0 %v3839_v10  ;;  %v3852_v27 = vld [vmem:[#allocation5 + $0x2b4] ss:$24 sps:$4 sm:$0xff]  }
  0xd7   : > { %1271 = vmatprep.subr.bf16.mxu0 %v3840_v11 }
  0xd9   : > { %1170 = vmatpush1.bf16.msra.mxu1 %v3752_v30  ;;  %v3854_v30 = vld [vmem:[#allocation5 + $0x2b0] ss:$24 sps:$4 sm:$0xff]  }
  0xda   : > { %1171 = vmatprep.subr.bf16.mxu1 %v3753_v32  ;;  %1272 = vmatpush1.bf16.msra.mxu0 %v3842_v14  ;;  %v3792_v32 = vld [vmem:[#allocation5 + $0x1e8] ss:$24 sps:$4 sm:$0xff]  }
  0xdb   : > { %1273 = vmatprep.subr.bf16.mxu0 %v3843_v16 }
  0xdd   : > { %1172 = vmatpush1.bf16.msra.mxu1 %v3755_v35  ;;  %v3795_v35 = vld [vmem:[#allocation5 + $0x218] ss:$24 sps:$4 sm:$0xff]  }
  0xde   : > { %1173 = vmatprep.subr.bf16.mxu1 %v3756_v36  ;;  %1274 = vmatpush1.bf16.msra.mxu0 %v3845_v18  ;;  %v3800_v36 = vld [vmem:[#allocation5 + $0x24c] ss:$24 sps:$4 sm:$0xff]  }
  0xdf   : > { %1275 = vmatprep.subr.bf16.mxu0 %v3846_v19 }
  0xe1   : > { %1174 = vmatpush1.bf16.msra.mxu1 %v3758_v39  ;;  %v3801_v39 = vld [vmem:[#allocation5 + $0x278] ss:$24 sps:$4 sm:$0xff]  }
  0xe2   : > { %1175 = vmatprep.subr.bf16.mxu1 %v3759_v40  ;;  %1276 = vmatpush1.bf16.msra.mxu0 %v3848_v22  ;;  %v3806_v40 = vld [vmem:[#allocation5 + $0x2ac] ss:$24 sps:$4 sm:$0xff]  }
  0xe3   : > { %1277 = vmatprep.subr.bf16.mxu0 %v3849_v23 }
  0xe5   : > { %1176 = vmatpush1.bf16.msra.mxu1 %v3761_v41  ;;  %v3804_v41 = vld [vmem:[#allocation5 + $0x2a8] ss:$24 sps:$4 sm:$0xff]  }
  0xe6   : > { %1198 = vmatprep.subr.bf16.mxu1 %v3764_v46  ;;  %1278 = vmatpush1.bf16.msra.mxu0 %v3851_v26  ;;  %v4721_v46 = vsub.s32 0, %v4718_v45 }
  0xe7   : > { %1279 = vmatprep.subr.bf16.mxu0 %v3852_v27 }
  0xe8   : > { %1178 = vmatmul.mubr.bf16.vlgmr.msra.gmra.mrb[0].mxu1 %v4700_v50  ;;  %v638_v49 = vrot.slane %v530_v47, %v4721_v46 }
  0xe9   : > { %1199 = vmatpush1.bf16.msra.mxu1 %v3762_v52  ;;  %1187 = vmatprep.mubr.bf16.mxu1 %v4702_v53 }
  0xea   : > { %1200 = vmatprep.subr.bf16.mxu1 %v3767_v54  ;;  %1280 = vmatpush1.bf16.msra.mxu0 %v3854_v30 }
  0xeb   : > { %1281 = vmatprep.subr.bf16.mxu0 %v3855_v31  ;;  %v649_v31 = vsub.s32 3, %v4718_v45 }
  0xed   : > { %1201 = vmatpush1.bf16.msra.mxu1 %v3765_v55 }
  0xee   : > { %1202 = vmatprep.subr.bf16.mxu1 %v3770_v57  ;;  %1282 = vmatpush1.bf16.msra.mxu0 %v3857_v34 }
  0xf0   : > { %1188 = vmatmul.mubr.bf16.gmra.mrb[4].mxu1 %v4708_v1 }
  0xf1   : > { %1203 = vmatpush1.bf16.msra.mxu1 %v3768_v63  ;;  %1230 = vmatprep.mubr.bf16.mxu1 %v4692_v15  ;;  %v3780_v15 = vld [vmem:[#allocation5 + $0x128] ss:$24 sps:$4 sm:$0xff]  }
  0xf2   : > { %1204 = vmatprep.subr.bf16.mxu1 %v3773_v0  ;;  %1284 = vmatmul.mubr.bf16.vlgmr.msra.gmra.mrb[0].mxu0 %v4700_v50 }
  0xf3   : > { %1293 = vmatprep.mubr.bf16.mxu0 %v4702_v53 }
  0xf5   : > { %1205 = vmatpush1.bf16.msra.mxu1 %v3771_v4 }
  0xf6   : > { %1206 = vmatprep.subr.bf16.mxu1 %v3776_v5 }
  0xf9   : > { %1207 = vmatpush1.bf16.msra.mxu1 %v3774_v8  ;;  %v657_v8 = vsub.s32 5, %v4718_v45 }
  0xfa   : > { %1208 = vmatprep.subr.bf16.mxu1 %v3779_v9  ;;  %1294 = vmatmul.mubr.bf16.gmra.mrb[4].mxu0 %v4708_v1  ;;  %v654_v9 = vrot.slane %v530_v47, %v653_v7 }
  0xfb   : > { %v658_v10 = vrot.slane %v530_v47, %v657_v8 }
  0xfd   : > { %1209 = vmatpush1.bf16.msra.mxu1 %v3777_v12 }
  0xfe   : > { %1210 = vmatprep.subr.bf16.mxu1 %v3782_v13 }
 0x101   : > { %1211 = vmatpush1.bf16.msra.mxu1 %v3780_v15 }
 0x102   : > { %1212 = vmatprep.subr.bf16.mxu1 %v3785_v17 }
 0x105   : > { %1213 = vmatpush1.bf16.msra.mxu1 %v3783_v20 }
 0x106   : > { %1214 = vmatprep.subr.bf16.mxu1 %v3788_v21 }
 0x109   : > { %1215 = vmatpush1.bf16.msra.mxu1 %v3786_v24 }
 0x10a   : > { %1216 = vmatprep.subr.bf16.mxu1 %v3791_v25 }
 0x10d   : > { %1217 = vmatpush1.bf16.msra.mxu1 %v3789_v28 }
 0x10e   : > { %1218 = vmatprep.subr.bf16.mxu1 %v3794_v29  ;;  %v645_v29 = vsub.s32 2, %v4718_v45 }
 0x111   : > { %1219 = vmatpush1.bf16.msra.mxu1 %v3792_v32 }
 0x112   : > { %1220 = vmatprep.subr.bf16.mxu1 %v3797_v33  ;;  %v646_v33 = vrot.slane %v530_v47, %v645_v29 }
 0x115   : > { %1221 = vmatpush1.bf16.msra.mxu1 %v3795_v35  ;;  %v650_v35 = vrot.slane %v530_v47, %v649_v31 }
 0x116   : > { %1222 = vmatprep.subr.bf16.mxu1 %v3800_v36 }
 0x119   : > { %1223 = vmatpush1.bf16.msra.mxu1 %v3798_v37 }
 0x11a   : > { %1224 = vmatprep.subr.bf16.mxu1 %v3803_v38 }
 0x11d   : > { %1225 = vmatpush1.bf16.msra.mxu1 %v3801_v39 }
 0x11e   : > { %1226 = vmatprep.subr.bf16.mxu1 %v3806_v40 }
 0x121   : > { %1227 = vmatpush1.bf16.msra.mxu1 %v3804_v41 }
 0x122   : > { %1228 = vmatprep.subr.bf16.mxu1 %v3809_v42 }
 0x125   : > { %1229 = vmatpush1.bf16.msra.mxu1 %v3807_v43 }
 0x128   : > { %1231 = vmatmul.mubr.bf16.vlgmr.msra.gmra.mrb[8].mxu1 %v4700_v50 }
 0x129   : > { %1240 = vmatprep.mubr.bf16.mxu1 %v4702_v53 }
 0x130   : > { %1241 = vmatmul.mubr.bf16.gmra.mrb[12].mxu1 %v4708_v1 }
 0x1bb   : > { %v1179_v50 = vpop.f32.mrb[0].mxu1 }
 0x1bc   : > { %v1180_v52 = vadd.f32 %v1179_v50, %v638_v49  ;;  %v1181_v53 = vpop.f32.mrb[1].mxu1 }
 0x1bd   : > { %v1183_v54 = vpop.f32.mrb[2].mxu1  ;;  %v1182_v57 = vadd.f32 %v1181_v53, %v642_v51 }
 0x1be   : > { %v1184_v55 = vadd.f32 %v1183_v54, %v638_v49  ;;  %v1185_v56 = vpop.f32.mrb[3].mxu1 }
 0x1bf   : > { %v1186_v58 = vadd.f32 %v1185_v56, %v642_v51 }
 0x1c0   : > { %v1304_v59 = vpack.c.bf16 %v1184_v55, %v1180_v52 }
 0x1c1   : > { %v1463_v60 = vpack.c.bf16 %v1186_v58, %v1182_v57 }
 0x1c2   : > { %3575 = vmatprep.mubr.bf16.mxu1 %v1304_v59 }
 0x1c3   : > { %3591 = vmatprep.mubr.bf16.mxu0 %v1463_v60  ;;  %v1189_v61 = vpop.f32.mrb[4].mxu1 }
 0x1c4   : > { %v4731_v62 = vadd.f32 %v1189_v61, %v638_v49  ;;  %v1191_v63 = vpop.f32.mrb[5].mxu1 }
 0x1c5   : > { %v4733_v0 = vadd.f32 %v1191_v63, %v642_v51  ;;  %v1193_v1 = vpop.f32.mrb[6].mxu1  ;;  %v1285_v11 = vpop.f32.mrb[0].mxu0 }
 0x1c6   : > { %v4735_v2 = vadd.f32 %v1193_v1, %v638_v49  ;;  %v1195_v3 = vpop.f32.mrb[7].mxu1  ;;  %v1286_v12 = vadd.f32 %v1285_v11, %v654_v9  ;;  %v1287_v13 = vpop.f32.mrb[1].mxu0 }
 0x1c7   : > { %v1196_v4 = vadd.f32 %v1195_v3, %v642_v51  ;;  %v1288_v14 = vadd.f32 %v1287_v13, %v658_v10  ;;  %v1289_v16 = vpop.f32.mrb[2].mxu0 }
 0x1c8   : > { %v1305_v5 = vpack.c.bf16 %v4735_v2, %v4731_v62  ;;  %v1290_v15 = vadd.f32 %v1289_v16, %v654_v9  ;;  %v1291_v17 = vpop.f32.mrb[3].mxu0 }
 0x1c9   : > { %v1464_v6 = vpack.c.bf16 %v1196_v4, %v4733_v0  ;;  %v1292_v18 = vadd.f32 %v1291_v17, %v658_v10 }
 0x1ca   : > { %v1308_v19 = vpack.c.bf16 %v1290_v15, %v1286_v12 }
 0x1cb   : > { %v1467_v20 = vpack.c.bf16 %v1292_v18, %v1288_v14 }
 0x1cd   : > { %v1295_v21 = vpop.f32.mrb[4].mxu0 }
 0x1ce   : > { %v1296_v22 = vadd.f32 %v1295_v21, %v654_v9  ;;  %v1297_v23 = vpop.f32.mrb[5].mxu0 }
 0x1cf   : > { %v1298_v24 = vadd.f32 %v1297_v23, %v658_v10  ;;  %v1299_v25 = vpop.f32.mrb[6].mxu0 }
 0x1d0   : > { %v1300_v26 = vadd.f32 %v1299_v25, %v654_v9  ;;  %v1301_v27 = vpop.f32.mrb[7].mxu0 }
 0x1d1   : > { %v1302_v28 = vadd.f32 %v1301_v27, %v658_v10 }
 0x1d2   : > { %v1309_v30 = vpack.c.bf16 %v1300_v26, %v1296_v22 }
 0x1d3   : > { %v1468_v32 = vpack.c.bf16 %v1302_v28, %v1298_v24 }
 0x1fb   : > { %v1232_v34 = vpop.f32.mrb[8].mxu1 }
 0x1fc   : > { %v1234_v36 = vpop.f32.mrb[9].mxu1  ;;  %v1233_v38 = vadd.f32 %v1232_v34, %v646_v33 }
 0x1fd   : > { %v1236_v37 = vpop.f32.mrb[10].mxu1  ;;  %v1235_v41 = vadd.f32 %v1234_v36, %v650_v35 }
 0x1fe   : > { %v1237_v39 = vadd.f32 %v1236_v37, %v646_v33  ;;  %v1238_v40 = vpop.f32.mrb[11].mxu1 }
 0x1ff   : > { %v1239_v42 = vadd.f32 %v1238_v40, %v650_v35 }
 0x200   : > { %v1306_v43 = vpack.c.bf16 %v1237_v39, %v1233_v38 }
 0x201   : > { %v1465_v44 = vpack.c.bf16 %v1239_v42, %v1235_v41 }
 0x202   : > { %3571 = vmatprep.subr.bf16.mxu1 %v1306_v43 }
 0x203   : > { %v1242_v49 = vpop.f32.mrb[12].mxu1  ;;  %3572 = vmatpush3.bf16.xpose.msra.mxu1 %v1306_v43  ;;  %3587 = vmatprep.subr.bf16.mxu0 %v1465_v44 }
 0x204   : > { %v1244_v50 = vpop.f32.mrb[13].mxu1  ;;  %3588 = vmatpush3.bf16.xpose.msra.mxu0 %v1465_v44  ;;  %v1243_v52 = vadd.f32 %v1242_v49, %v646_v33 }
 0x205   : > { %v1246_v51 = vpop.f32.mrb[14].mxu1  ;;  %v1245_v47 = vadd.f32 %v1244_v50, %v650_v35 }
 0x206   : > { %v1247_v53 = vadd.f32 %v1246_v51, %v646_v33  ;;  %v1248_v54 = vpop.f32.mrb[15].mxu1 }
 0x207   : > { %v1249_v55 = vadd.f32 %v1248_v54, %v650_v35 }
 0x208   : > { %v1307_v56 = vpack.c.bf16 %v1247_v53, %v1243_v52 }
 0x209   : > { %v1466_v57 = vpack.c.bf16 %v1249_v55, %v1245_v47 }
 0x20a   : > { %3573 = vmatprep.subr.bf16.mxu1 %v1307_v56 }
 0x20b   : > { %3574 = vmatpush3.bf16.xpose.msra.mxu1 %v1307_v56  ;;  %3589 = vmatprep.subr.bf16.mxu0 %v1466_v57 }
 0x20c   : > { %3590 = vmatpush3.bf16.xpose.msra.mxu0 %v1466_v57  ;;  %3579 = vmatprep.subr.bf16.mxu1 %v1308_v19 }
 0x20d   : > { %3595 = vmatprep.subr.bf16.mxu0 %v1467_v20 }
 0x212   : > { %3576 = vmatmul.mubr.bf16.vlgmr.msra.gmra.mrb[16].mxu1 %v1305_v5 }
 0x213   : > { %3592 = vmatmul.mubr.bf16.vlgmr.msra.gmra.mrb[8].mxu0 %v1464_v6  ;;  %3580 = vmatpush3.bf16.msra.mxu1 %v1308_v19 }
 0x214   : > { %3596 = vmatpush3.bf16.msra.mxu0 %v1467_v20  ;;  %3581 = vmatprep.subr.bf16.mxu1 %v1309_v30 }
 0x215   : > { %3597 = vmatprep.subr.bf16.mxu0 %v1468_v32 }
 0x217   : > { %3582 = vmatpush3.bf16.msra.mxu1 %v1309_v30 }
 0x218   : > { %3598 = vmatpush3.bf16.msra.mxu0 %v1468_v32 }
 0x2e5   : > { %v3577_v58 = vpop.f32.mrb[16].mxu1 }
 0x2e6   : > { %v1344_v59 = vpop.f32.mrb[17].mxu1  ;;  %v3593_v60 = vpop.f32.mrb[8].mxu0  ;;  %v1366_v8 = vsel %vm1359_vm0, %v3577_v58, -inf }
 0x2e7   : > { %v3578_v61 = vpop.f32.mrb[18].mxu1  ;;  %v1503_v62 = vpop.f32.mrb[9].mxu0  ;;  %v1524_v63 = vsel %vm1359_vm0, %v3593_v60, -inf  ;;  %v1360_v0 = vsel %vm1359_vm0, %v1344_v59, -inf }
 0x2e8   : > { %1525 = vmax.xlane.f32.xlu0 %v1524_v63  ;;  %v3594_v1 = vpop.f32.mrb[10].mxu0  ;;  %1361 = vmax.xlane.f32.xlu1 %v1360_v0  ;;  %v1347_v2 = vpop.f32.mrb[19].mxu1  ;;  %v1518_v4 = vsel %vm1359_vm0, %v1503_v62, -inf  ;;  %v1369_v9 = vsel %vm1359_vm0, %v3578_v61, -inf  ;;  %v3866_v63 = vld [vmem:[#allocation7 + $0x24] ss:$8 sps:$4 sm:$0xff]  }
 0x2e9   : > { %v1506_v3 = vpop.f32.mrb[11].mxu0  ;;  %v1363_v5 = vsel %vm1359_vm0, %v1347_v2, -inf  ;;  %v1527_v7 = vsel %vm1359_vm0, %v3594_v1, -inf  ;;  %v3864_v0 = vld [vmem:[#allocation7 + $0x20] ss:$8 sps:$4 sm:$0xff]  }
 0x2ea   : > { %v1521_v6 = vsel %vm1359_vm0, %v1506_v3, -inf }
 0x2ec   : > { %1519 = vmax.xlane.f32.xlu0 %v1518_v4  ;;  %1364 = vmax.xlane.f32.xlu1 %v1363_v5  ;;  %v3870_v4 = vld [vmem:[#allocation7 + $0x40] ss:$8 sps:$4 sm:$0xff]   ;;  %v3875_v5 = vld [vmem:[#allocation7 + $0x54] ss:$8 sps:$4 sm:$0xff]  }
 0x2f0   : > { %1522 = vmax.xlane.f32.xlu0 %v1521_v6  ;;  %1528 = vmax.xlane.f32.xlu1 %v1527_v7  ;;  %v3873_v6 = vld [vmem:[#allocation7 + $0x50] ss:$8 sps:$4 sm:$0xff]   ;;  %v3878_v7 = vld [vmem:[#allocation7 + $0x64] ss:$8 sps:$4 sm:$0xff]  }
 0x2f4   : > { %1367 = vmax.xlane.f32.xlu0 %v1366_v8  ;;  %1370 = vmax.xlane.f32.xlu1 %v1369_v9  ;;  %v3876_v8 = vld [vmem:[#allocation7 + $0x60] ss:$8 sps:$4 sm:$0xff]   ;;  %v3881_v9 = vld [vmem:[#allocation7 + $0x74] ss:$8 sps:$4 sm:$0xff]  }
 0x375   : > { %v1526_v10 = vpop.xlane.xlu0 %1525  ;;  %v1362_v11 = vpop.xlane.xlu1 %1361 }
 0x376   : > { %v1372_v12 = vsub.f32 %v1344_v59, %v1362_v11  ;;  %v1532_v13 = vsub.f32 %v3593_v60, %v1526_v10  ;;  %v3858_v59 = vld [vmem:[#allocation7] ss:$8 sps:$4 sm:$0xff]   ;;  %v3860_v60 = vld [vmem:[#allocation7 + $0x4] ss:$8 sps:$4 sm:$0xff]   ;;  %v3879_v10 = vld [vmem:[#allocation7 + $0x70] ss:$8 sps:$4 sm:$0xff]  }
 0x377   : > { %1824 = vmatprep.subr.bf16.mxu1 %v3860_v60  ;;  %v3884_v11 = vld [vmem:[#allocation7 + $0x84] ss:$8 sps:$4 sm:$0xff]  }
 0x378   : > { %v1376_v14 = vmul.f32 1.442695, %v1372_v12  ;;  %v1538_v21 = vmul.f32 1.442695, %v1532_v13  ;;  %v3882_v12 = vld [vmem:[#allocation7 + $0x80] ss:$8 sps:$4 sm:$0xff]  }
 0x379   : > { %v1520_v16 = vpop.xlane.xlu0 %1519  ;;  %v1365_v15 = vpop.xlane.xlu1 %1364  ;;  %v3887_v13 = vld [vmem:[#allocation7 + $0x94] ss:$8 sps:$4 sm:$0xff]  }
 0x37a   : > { %v1530_v17 = vsub.f32 %v1503_v62, %v1520_v16  ;;  %v1373_v18 = vsub.f32 %v1347_v2, %v1365_v15  ;;  %4098 = vpow2.f32 %v1376_v14  ;;  %v3861_v62 = vld [vmem:[#allocation7 + $0x10] ss:$8 sps:$4 sm:$0xff]   ;;  %v3890_v16 = vld [vmem:[#allocation7 + $0xa4] ss:$8 sps:$4 sm:$0xff]   ;;  %v3888_v15 = vld [vmem:[#allocation7 + $0xa0] ss:$8 sps:$4 sm:$0xff]  }
 0x37b   : > { %v3867_v2 = vld [vmem:[#allocation7 + $0x30] ss:$8 sps:$4 sm:$0xff]  }
 0x37c   : > { %v1534_v19 = vmul.f32 1.442695, %v1530_v17  ;;  %v1378_v20 = vmul.f32 1.442695, %v1373_v18  ;;  %v3885_v14 = vld [vmem:[#allocation7 + $0x90] ss:$8 sps:$4 sm:$0xff]  }
 0x37d   : > { %v1523_v22 = vpop.xlane.xlu0 %1522  ;;  %v1529_v23 = vpop.xlane.xlu1 %1528  ;;  %v3893_v17 = vld [vmem:[#allocation7 + $0xb4] ss:$8 sps:$4 sm:$0xff]   ;;  %v3891_v18 = vld [vmem:[#allocation7 + $0xb0] ss:$8 sps:$4 sm:$0xff]  }
 0x37e   : > { %4100 = vpow2.f32 %v1534_v19  ;;  %v1531_v24 = vsub.f32 %v1506_v3, %v1523_v22  ;;  %v1533_v25 = vsub.f32 %v3594_v1, %v1529_v23  ;;  %v3869_v1 = vld [vmem:[#allocation7 + $0x34] ss:$8 sps:$4 sm:$0xff]   ;;  %v3872_v3 = vld [vmem:[#allocation7 + $0x44] ss:$8 sps:$4 sm:$0xff]   ;;  %v3897_v22 = vld [vmem:[#allocation7 + $0xd0] ss:$8 sps:$4 sm:$0xff]  }
 0x37f   : > { %4102 = vpow2.f32 %v1378_v20  ;;  %v3896_v19 = vld [vmem:[#allocation7 + $0xc4] ss:$8 sps:$4 sm:$0xff]   ;;  %v3894_v20 = vld [vmem:[#allocation7 + $0xc0] ss:$8 sps:$4 sm:$0xff]  }
 0x380   : > { %v1536_v26 = vmul.f32 1.442695, %v1531_v24  ;;  %v1540_v27 = vmul.f32 1.442695, %v1533_v25  ;;  %4104 = vpow2.f32 %v1538_v21  ;;  %v3899_v21 = vld [vmem:[#allocation7 + $0xd4] ss:$8 sps:$4 sm:$0xff]  }
 0x381   : > { %v1368_v28 = vpop.xlane.xlu0 %1367  ;;  %v1371_v30 = vpop.xlane.xlu1 %1370  ;;  %v3902_v23 = vld [vmem:[#allocation7 + $0xe4] ss:$8 sps:$4 sm:$0xff]   ;;  %v3900_v24 = vld [vmem:[#allocation7 + $0xe0] ss:$8 sps:$4 sm:$0xff]   ;;  %v3905_v25 = vld [vmem:[#allocation7 + $0xf4] ss:$8 sps:$4 sm:$0xff]  }
 0x382   : > { %4106 = vpow2.f32 %v1536_v26  ;;  %v1374_v32 = vsub.f32 %v3577_v58, %v1368_v28  ;;  %v1375_v33 = vsub.f32 %v3578_v61, %v1371_v30  ;;  %v3863_v61 = vld [vmem:[#allocation7 + $0x14] ss:$8 sps:$4 sm:$0xff]   ;;  %v3903_v26 = vld [vmem:[#allocation7 + $0xf0] ss:$8 sps:$4 sm:$0xff]  }
 0x383   : > { %4108 = vpow2.f32 %v1540_v27 }
 0x384   : > { %v1380_v34 = vmul.f32 1.442695, %v1374_v32  ;;  %v1382_v35 = vmul.f32 1.442695, %v1375_v33  ;;  %v4099_v36 = vpop.eup %4098 }
 0x385   : > { %v1384_v44 = vsel %vm1359_vm0, %v4099_v36, 0.0 }
 0x386   : > { %4110 = vpow2.f32 %v1380_v34 }
 0x387   : > { %4112 = vpow2.f32 %v1382_v35 }
 0x388   : > { %v4101_v37 = vpop.eup %4100 }
 0x389   : > { %v4103_v38 = vpop.eup %4102  ;;  %v1542_v39 = vsel %vm1359_vm0, %v4101_v37, 0.0 }
 0x38a   : > { %1543 = vadd.xlane.f32.xlu0 %v1542_v39  ;;  %v1396_v40 = vpack.c.bf16 %v4103_v38, %v4099_v36  ;;  %v4105_v41 = vpop.eup %4104  ;;  %v1387_v47 = vsel %vm1359_vm0, %v4103_v38, 0.0 }
 0x38b   : > { %v1548_v54 = vsel %vm1359_vm0, %v4105_v41, 0.0 }
 0x38c   : > { %v4107_v42 = vpop.eup %4106  ;;  %3583 = vmatprep.mubr.msk.bf16.mxu1 %vm1359_vm0, %v1396_v40 }
 0x38d   : > { %v4109_v43 = vpop.eup %4108  ;;  %v1545_v49 = vsel %vm1359_vm0, %v4107_v42, 0.0  ;;  %v1554_v50 = vpack.c.bf16 %v4107_v42, %v4101_v37 }
 0x38e   : > { %1385 = vadd.xlane.f32.xlu0 %v1384_v44  ;;  %1546 = vadd.xlane.f32.xlu1 %v1545_v49  ;;  %v1555_v51 = vpack.c.bf16 %v4109_v43, %v4105_v41  ;;  %v1551_v57 = vsel %vm1359_vm0, %v4109_v43, 0.0 }
 0x38f   : > { %3599 = vmatprep.mubr.msk.bf16.mxu0 %vm1359_vm0, %v1554_v50 }
 0x390   : > { %v4111_v52 = vpop.eup %4110  ;;  %3600 = vmatmul.mubr.msk.bf16.vlgmr.msra.gmra.mrb[12].mxu0 %vm1359_vm0, %v1555_v51 }
 0x391   : > { %v4113_v53 = vpop.eup %4112  ;;  %v1390_v56 = vsel %vm1359_vm0, %v4111_v52, 0.0 }
 0x392   : > { %1549 = vadd.xlane.f32.xlu0 %v1548_v54  ;;  %1388 = vadd.xlane.f32.xlu1 %v1387_v47  ;;  %v1397_v55 = vpack.c.bf16 %v4113_v53, %v4111_v52  ;;  %v1393_v58 = vsel %vm1359_vm0, %v4113_v53, 0.0 }
 0x394   : > { %3584 = vmatmul.mubr.msk.bf16.vlgmr.msra.gmra.mrb[20].mxu1 %vm1359_vm0, %v1397_v55 }
 0x395   : > { %1825 = vmatpush1.bf16.msra.mxu1 %v3858_v59 }
 0x396   : > { %1391 = vadd.xlane.f32.xlu0 %v1390_v56  ;;  %1552 = vadd.xlane.f32.xlu1 %v1551_v57 }
 0x397   : > { %1826 = vmatprep.subr.bf16.mxu1 %v3863_v61 }
 0x399   : > { %1827 = vmatpush1.bf16.msra.mxu1 %v3861_v62 }
 0x39a   : > { %1394 = vadd.xlane.f32.xlu1 %v1393_v58  ;;  %1828 = vmatprep.subr.bf16.mxu1 %v3866_v63 }
 0x39d   : > { %1829 = vmatpush1.bf16.msra.mxu1 %v3864_v0 }
 0x39e   : > { %1830 = vmatprep.subr.bf16.mxu1 %v3869_v1 }
 0x3a1   : > { %1831 = vmatpush1.bf16.msra.mxu1 %v3867_v2 }
 0x3a2   : > { %1832 = vmatprep.subr.bf16.mxu1 %v3872_v3 }
 0x3a5   : > { %1833 = vmatpush1.bf16.msra.mxu1 %v3870_v4  ;;  %v531_v4 = vld [vmem:[%s4981_s4] sm:$0x3] }
 0x3a6   : > { %1834 = vmatprep.subr.bf16.mxu1 %v3875_v5  ;;  %v1657_v5 = vrot.slane %v531_v4, %v4721_v46 }
 0x3a9   : > { %1835 = vmatpush1.bf16.msra.mxu1 %v3873_v6  ;;  %v1661_v6 = vrot.slane %v531_v4, %v4727_v48  ;;  %v3938_v4 = vld [vmem:[#allocation8 + $0xa4] ss:$16 sps:$4 sm:$0xff]  }
 0x3aa   : > { %1836 = vmatprep.subr.bf16.mxu1 %v3878_v7 }
 0x3ad   : > { %1837 = vmatpush1.bf16.msra.mxu1 %v3876_v8 }
 0x3ae   : > { %1838 = vmatprep.subr.bf16.mxu1 %v3881_v9 }
 0x3b1   : > { %1839 = vmatpush1.bf16.msra.mxu1 %v3879_v10 }
 0x3b2   : > { %1840 = vmatprep.subr.bf16.mxu1 %v3884_v11 }
 0x3b5   : > { %1841 = vmatpush1.bf16.msra.mxu1 %v3882_v12  ;;  %v4146_v12 = vld [vmem:[%s4676_s25] sm:$0xff] }
 0x3b6   : > { %1842 = vmatprep.subr.bf16.mxu1 %v3887_v13 }
 0x3b9   : > { %1843 = vmatpush1.bf16.msra.mxu1 %v3885_v14 }
 0x3ba   : > { %1844 = vmatprep.subr.bf16.mxu1 %v3890_v16 }
 0x3bd   : > { %1845 = vmatpush1.bf16.msra.mxu1 %v3888_v15  ;;  %v4147_v15 = vld [vmem:[%s4676_s25 + $0x8] sm:$0xff] }
 0x3be   : > { %1846 = vmatprep.subr.bf16.mxu1 %v3893_v17 }
 0x3c1   : > { %1847 = vmatpush1.bf16.msra.mxu1 %v3891_v18 }
 0x3c2   : > { %1848 = vmatprep.subr.bf16.mxu1 %v3896_v19  ;;  %v4148_v19 = vld [vmem:[%s4676_s25 + $0x10] sm:$0xff] }
 0x3c5   : > { %1849 = vmatpush1.bf16.msra.mxu1 %v3894_v20 }
 0x3c6   : > { %1850 = vmatprep.subr.bf16.mxu1 %v3899_v21  ;;  %v4149_v21 = vld [vmem:[%s4676_s25 + $0x18] sm:$0xff] }
 0x3c9   : > { %1851 = vmatpush1.bf16.msra.mxu1 %v3897_v22 }
 0x3ca   : > { %1852 = vmatprep.subr.bf16.mxu1 %v3902_v23 }
 0x3cd   : > { %1853 = vmatpush1.bf16.msra.mxu1 %v3900_v24 }
 0x3ce   : > { %1854 = vmatprep.subr.bf16.mxu1 %v3905_v25 }
 0x3d1   : > { %1855 = vmatpush1.bf16.msra.mxu1 %v3903_v26 }
 0x417   : > { %v1544_v27 = vpop.xlane.xlu0 %1543 }
 0x418   : > { %4114 = vrcp.f32 %v1544_v27 }
 0x41b   : > { %v1547_v28 = vpop.xlane.xlu1 %1546  ;;  %v1386_v30 = vpop.xlane.xlu0 %1385 }
 0x41f   : > { %v1389_v32 = vpop.xlane.xlu1 %1388  ;;  %v1550_v33 = vpop.xlane.xlu0 %1549 }
 0x420   : > { %4116 = vrcp.f32 %v1550_v33 }
 0x422   : > { %v4115_v37 = vpop.eup %4114 }
 0x423   : > { %v1553_v34 = vpop.xlane.xlu1 %1552  ;;  %v1392_v35 = vpop.xlane.xlu0 %1391 }
 0x424   : > { %4118 = vrcp.f32 %v1553_v34 }
 0x425   : > { %4120 = vrcp.f32 %v1547_v28 }
 0x426   : > { %4122 = vrcp.f32 %v1386_v30 }
 0x427   : > { %v1395_v36 = vpop.xlane.xlu1 %1394  ;;  %4124 = vrcp.f32 %v1392_v35 }
 0x428   : > { %4126 = vrcp.f32 %v1395_v36  ;;  %v4151_v36 = vld [vmem:[%s4676_s25 + $0x28] sm:$0xff] }
 0x429   : > { %4128 = vrcp.f32 %v1389_v32  ;;  %v4150_v32 = vld [vmem:[%s4676_s25 + $0x20] sm:$0xff] }
 0x42a   : > { %v4117_v39 = vpop.eup %4116 }
 0x42e   : > { %v4119_v41 = vpop.eup %4118 }
 0x42f   : > { %v4121_v43 = vpop.eup %4120 }
 0x430   : > { %v4123_v51 = vpop.eup %4122 }
 0x431   : > { %v4125_v47 = vpop.eup %4124 }
 0x432   : > { %v4127_v57 = vpop.eup %4126 }
 0x433   : > { %v4129_v60 = vpop.eup %4128 }
 0x463   : > { %v3601_v38 = vpop.f32.mrb[12].mxu0 }
 0x464   : > { %v1596_v40 = vpop.f32.mrb[13].mxu0  ;;  %v1617_v44 = vmul.f32 %v4117_v39, %v3601_v38  ;;  %v4152_v39 = vld [vmem:[%s4676_s25 + $0x30] sm:$0xff] }
 0x465   : > { %v3602_v42 = vpop.f32.mrb[14].mxu0  ;;  %v1615_v52 = vmul.f32 %v4115_v37, %v1596_v40 }
 0x466   : > { %v1618_v49 = vmul.f32 %v4119_v41, %v3602_v42  ;;  %v1599_v50 = vpop.f32.mrb[15].mxu0  ;;  %v4153_v41 = vld [vmem:[%s4676_s25 + $0x38] sm:$0xff]  ;;  %s5023_s25 = sld [smem:[#allocation19_spill]] }
 0x467   : > { %v3585_v53 = vpop.f32.mrb[20].mxu1  ;;  %v1616_v54 = vmul.f32 %v4121_v43, %v1599_v50  ;;  %v3908_v50 = vld [vmem:[#allocation8 + $0x4] ss:$16 sps:$4 sm:$0xff]  }
 0x468   : > { %v1620_v55 = vpack.c.bf16 %v1618_v49, %v1617_v44  ;;  %v1438_v56 = vpop.f32.mrb[21].mxu1  ;;  %v1459_v61 = vmul.f32 %v4125_v47, %v3585_v53  ;;  %v3906_v49 = vld [vmem:[#allocation8] ss:$16 sps:$4 sm:$0xff]   ;;  %v3914_v53 = vld [vmem:[#allocation8 + $0x24] ss:$16 sps:$4 sm:$0xff]   ;;  %2397 = vmatprep.subr.bf16.mxu0 %v3908_v50 }
 0x469   : > { %v1619_v58 = vpack.c.bf16 %v1616_v54, %v1615_v52  ;;  %v3586_v59 = vpop.f32.mrb[22].mxu1  ;;  %v1457_v0 = vmul.f32 %v4123_v51, %v1438_v56  ;;  %v3909_v51 = vld [vmem:[#allocation8 + $0x8] ss:$16 sps:$4 sm:$0xff]   ;;  %v3911_v52 = vld [vmem:[#allocation8 + $0xc] ss:$16 sps:$4 sm:$0xff]   ;;  %2398 = vmatpush1.bf16.msra.mxu0 %v3906_v49 }
 0x46a   : > { %v1460_v62 = vmul.f32 %v4127_v57, %v3586_v59  ;;  %v1441_v63 = vpop.f32.mrb[23].mxu1  ;;  %v3917_v54 = vld [vmem:[#allocation8 + $0x2c] ss:$16 sps:$4 sm:$0xff]   ;;  %2450 = vmatprep.subr.bf16.mxu1 %v3911_v52  ;;  %v3912_v47 = vld [vmem:[#allocation8 + $0x20] ss:$16 sps:$4 sm:$0xff]   ;;  %2399 = vmatprep.subr.bf16.mxu0 %v3914_v53 }
 0x46b   : > { %v1458_v1 = vmul.f32 %v4129_v60, %v1441_v63  ;;  %1856 = vmatprep.mubr.bf16.mxu1 %v1619_v58  ;;  %v3920_v56 = vld [vmem:[#allocation8 + $0x44] ss:$16 sps:$4 sm:$0xff]   ;;  %v3923_v57 = vld [vmem:[#allocation8 + $0x4c] ss:$16 sps:$4 sm:$0xff]   ;;  %v3918_v58 = vld [vmem:[#allocation8 + $0x40] ss:$16 sps:$4 sm:$0xff]  }
 0x46c   : > { %v1462_v2 = vpack.c.bf16 %v1460_v62, %v1459_v61  ;;  %v3921_v59 = vld [vmem:[#allocation8 + $0x48] ss:$16 sps:$4 sm:$0xff]   ;;  %v3926_v60 = vld [vmem:[#allocation8 + $0x64] ss:$16 sps:$4 sm:$0xff]   ;;  %v3929_v61 = vld [vmem:[#allocation8 + $0x6c] ss:$16 sps:$4 sm:$0xff]  }
 0x46d   : > { %v1461_v3 = vpack.c.bf16 %v1458_v1, %v1457_v0  ;;  %2400 = vmatpush1.bf16.msra.mxu0 %v3912_v47  ;;  %v3924_v62 = vld [vmem:[#allocation8 + $0x60] ss:$16 sps:$4 sm:$0xff]   ;;  %v3927_v63 = vld [vmem:[#allocation8 + $0x68] ss:$16 sps:$4 sm:$0xff]   ;;  %v3932_v0 = vld [vmem:[#allocation8 + $0x84] ss:$16 sps:$4 sm:$0xff]  }
 0x46e   : > { %2401 = vmatprep.subr.bf16.mxu0 %v3920_v56  ;;  %v3935_v1 = vld [vmem:[#allocation8 + $0x8c] ss:$16 sps:$4 sm:$0xff]  }
 0x46f   : > { %1857 = vmatmul.mubr.bf16.vlgmr.msra.gmra.mrb[24].mxu1 %v1461_v3  ;;  %v3933_v3 = vld [vmem:[#allocation8 + $0x88] ss:$16 sps:$4 sm:$0xff]  }
 0x470   : > { %1866 = vmatprep.mubr.bf16.mxu1 %v1620_v55  ;;  %2451 = vmatpush1.bf16.msra.mxu1 %v3909_v51  ;;  %v3915_v55 = vld [vmem:[#allocation8 + $0x28] ss:$16 sps:$4 sm:$0xff]  }
 0x471   : > { %2452 = vmatprep.subr.bf16.mxu1 %v3917_v54  ;;  %2402 = vmatpush1.bf16.msra.mxu0 %v3918_v58 }
 0x472   : > { %2403 = vmatprep.subr.bf16.mxu0 %v3926_v60  ;;  %v3969_v60 = vld [vmem:[#allocation8 + $0x148] ss:$16 sps:$4 sm:$0xff]  }
 0x474   : > { %2453 = vmatpush1.bf16.msra.mxu1 %v3915_v55 }
 0x475   : > { %2454 = vmatprep.subr.bf16.mxu1 %v3923_v57  ;;  %2404 = vmatpush1.bf16.msra.mxu0 %v3924_v62  ;;  %v3977_v62 = vld [vmem:[#allocation8 + $0x16c] ss:$16 sps:$4 sm:$0xff]  }
 0x476   : > { %2405 = vmatprep.subr.bf16.mxu0 %v3932_v0  ;;  %v3975_v0 = vld [vmem:[#allocation8 + $0x168] ss:$16 sps:$4 sm:$0xff]  }
 0x477   : > { %1867 = vmatmul.mubr.bf16.gmra.mrb[28].mxu1 %v1462_v2  ;;  %v3930_v2 = vld [vmem:[#allocation8 + $0x80] ss:$16 sps:$4 sm:$0xff]  }
 0x478   : > { %2455 = vmatpush1.bf16.msra.mxu1 %v3921_v59  ;;  %v3971_v59 = vld [vmem:[#allocation8 + $0x14c] ss:$16 sps:$4 sm:$0xff]  }
 0x479   : > { %2456 = vmatprep.subr.bf16.mxu1 %v3929_v61  ;;  %2406 = vmatpush1.bf16.msra.mxu0 %v3930_v2  ;;  %v3974_v61 = vld [vmem:[#allocation8 + $0x164] ss:$16 sps:$4 sm:$0xff]   ;;  %v3983_v2 = vld [vmem:[#allocation8 + $0x18c] ss:$16 sps:$4 sm:$0xff]  }
 0x47a   : > { %2407 = vmatprep.subr.bf16.mxu0 %v3938_v4  ;;  %v3981_v4 = vld [vmem:[#allocation8 + $0x188] ss:$16 sps:$4 sm:$0xff]  }
 0x47c   : > { %2457 = vmatpush1.bf16.msra.mxu1 %v3927_v63  ;;  %v3972_v63 = vld [vmem:[#allocation8 + $0x160] ss:$16 sps:$4 sm:$0xff]  }
 0x47d   : > { %2458 = vmatprep.subr.bf16.mxu1 %v3935_v1  ;;  %v3980_v1 = vld [vmem:[#allocation8 + $0x184] ss:$16 sps:$4 sm:$0xff]  }
 0x480   : > { %2459 = vmatpush1.bf16.msra.mxu1 %v3933_v3  ;;  %v3978_v3 = vld [vmem:[#allocation8 + $0x180] ss:$16 sps:$4 sm:$0xff]  }
 0x542   : > { %v1858_v7 = vpop.f32.mrb[24].mxu1 }
 0x543   : > { %v1859_v8 = vadd.f32 %v1858_v7, %v1657_v5  ;;  %v1860_v9 = vpop.f32.mrb[25].mxu1  ;;  %v3939_v7 = vld [vmem:[#allocation8 + $0xa8] ss:$16 sps:$4 sm:$0xff]  }
 0x544   : > { %v1861_v10 = vadd.f32 %v1860_v9, %v1661_v6  ;;  %v1862_v11 = vpop.f32.mrb[26].mxu1  ;;  %v3947_v9 = vld [vmem:[#allocation8 + $0xcc] ss:$16 sps:$4 sm:$0xff]  }
 0x545   : > { %v4774_v13 = vadd.f32 %v4146_v12, %v1859_v8  ;;  %v1863_v14 = vadd.f32 %v1862_v11, %v1657_v5  ;;  %v1864_v16 = vpop.f32.mrb[27].mxu1  ;;  %v3944_v8 = vld [vmem:[#allocation8 + $0xc4] ss:$16 sps:$4 sm:$0xff]   ;;  %v3945_v11 = vld [vmem:[#allocation8 + $0xc8] ss:$16 sps:$4 sm:$0xff]  }
 0x546   : > { %v4777_v17 = vadd.f32 %v4147_v15, %v1861_v10  ;;  %v1865_v18 = vadd.f32 %v1864_v16, %v1661_v6  ;;  %v3942_v10 = vld [vmem:[#allocation8 + $0xc0] ss:$16 sps:$4 sm:$0xff]   ;;  %v3950_v12 = vld [vmem:[#allocation8 + $0xe4] ss:$16 sps:$4 sm:$0xff]   ;;  %v3951_v15 = vld [vmem:[#allocation8 + $0xe8] ss:$16 sps:$4 sm:$0xff]  }
 0x547   : > { %v4780_v20 = vadd.f32 %v4148_v19, %v1863_v14  ;;  %v3953_v14 = vld [vmem:[#allocation8 + $0xec] ss:$16 sps:$4 sm:$0xff]   ;;  %v3948_v16 = vld [vmem:[#allocation8 + $0xe0] ss:$16 sps:$4 sm:$0xff]  }
 0x548   : > { %v4783_v22 = vadd.f32 %v4149_v21, %v1865_v18  ;;  %v1885_v23 = vadd.f32 %v4777_v17, %v4774_v13  ;;  %v3956_v18 = vld [vmem:[#allocation8 + $0x104] ss:$16 sps:$4 sm:$0xff]   ;;  %v3959_v19 = vld [vmem:[#allocation8 + $0x10c] ss:$16 sps:$4 sm:$0xff]   ;;  %v3954_v21 = vld [vmem:[#allocation8 + $0x100] ss:$16 sps:$4 sm:$0xff]  }
 0x54a   : > { %1886 = vadd.xlane.f32.xlu0 %v1885_v23  ;;  %v1868_v24 = vpop.f32.mrb[28].mxu1  ;;  %v1888_v25 = vadd.f32 %v4783_v22, %v4780_v20  ;;  %v3957_v23 = vld [vmem:[#allocation8 + $0x108] ss:$16 sps:$4 sm:$0xff]  }
 0x54b   : > { %v1869_v26 = vadd.f32 %v1868_v24, %v1657_v5  ;;  %v1870_v27 = vpop.f32.mrb[29].mxu1  ;;  %v3962_v24 = vld [vmem:[#allocation8 + $0x124] ss:$16 sps:$4 sm:$0xff]  }
 0x54c   : > { %v1871_v28 = vadd.f32 %v1870_v27, %v1661_v6  ;;  %1889 = vadd.xlane.f32.xlu1 %v1888_v25  ;;  %v1872_v30 = vpop.f32.mrb[30].mxu1  ;;  %v3965_v25 = vld [vmem:[#allocation8 + $0x12c] ss:$16 sps:$4 sm:$0xff]   ;;  %v3963_v27 = vld [vmem:[#allocation8 + $0x128] ss:$16 sps:$4 sm:$0xff]  }
 0x54d   : > { %v4790_v33 = vadd.f32 %v4150_v32, %v1869_v26  ;;  %v1873_v34 = vadd.f32 %v1872_v30, %v1657_v5  ;;  %v1874_v35 = vpop.f32.mrb[31].mxu1  ;;  %v3941_v5 = vld [vmem:[#allocation8 + $0xac] ss:$16 sps:$4 sm:$0xff]   ;;  %v3960_v26 = vld [vmem:[#allocation8 + $0x120] ss:$16 sps:$4 sm:$0xff]  }
 0x54e   : > { %v4793_v37 = vadd.f32 %v4151_v36, %v1871_v28  ;;  %v1875_v38 = vadd.f32 %v1874_v35, %v1661_v6  ;;  %v3936_v6 = vld [vmem:[#allocation8 + $0xa0] ss:$16 sps:$4 sm:$0xff]   ;;  %2460 = vmatprep.subr.bf16.mxu1 %v3941_v5  ;;  %v3986_v5 = vld [vmem:[#allocation8 + $0x1a4] ss:$16 sps:$4 sm:$0xff]  }
 0x54f   : > { %v4796_v40 = vadd.f32 %v4152_v39, %v1873_v34  ;;  %2408 = vmatpush1.bf16.msra.mxu0 %v3936_v6  ;;  %2461 = vmatpush1.bf16.msra.mxu1 %v3939_v7  ;;  %v3989_v6 = vld [vmem:[#allocation8 + $0x1ac] ss:$16 sps:$4 sm:$0xff]   ;;  %v3984_v7 = vld [vmem:[#allocation8 + $0x1a0] ss:$16 sps:$4 sm:$0xff]  }
 0x550   : > { %v4799_v42 = vadd.f32 %v4153_v41, %v1875_v38  ;;  %v1891_v43 = vadd.f32 %v4793_v37, %v4790_v33  ;;  %2409 = vmatprep.subr.bf16.mxu0 %v3944_v8  ;;  %2462 = vmatprep.subr.bf16.mxu1 %v3947_v9  ;;  %v3987_v8 = vld [vmem:[#allocation8 + $0x1a8] ss:$16 sps:$4 sm:$0xff]   ;;  %v3992_v9 = vld [vmem:[#allocation8 + $0x1c4] ss:$16 sps:$4 sm:$0xff]  }
 0x552   : > { %1892 = vadd.xlane.f32.xlu0 %v1891_v43  ;;  %v1894_v44 = vadd.f32 %v4799_v42, %v4796_v40 }
 0x553   : > { %2410 = vmatpush1.bf16.msra.mxu0 %v3942_v10  ;;  %2463 = vmatpush1.bf16.msra.mxu1 %v3945_v11  ;;  %v3995_v10 = vld [vmem:[#allocation8 + $0x1cc] ss:$16 sps:$4 sm:$0xff]   ;;  %v3990_v11 = vld [vmem:[#allocation8 + $0x1c0] ss:$16 sps:$4 sm:$0xff]  }
 0x554   : > { %1895 = vadd.xlane.f32.xlu1 %v1894_v44  ;;  %2411 = vmatprep.subr.bf16.mxu0 %v3950_v12  ;;  %v3993_v12 = vld [vmem:[#allocation8 + $0x1c8] ss:$16 sps:$4 sm:$0xff]  }
 0x555   : > { %2464 = vmatprep.subr.bf16.mxu1 %v3953_v14  ;;  %v3998_v14 = vld [vmem:[#allocation8 + $0x1e4] ss:$16 sps:$4 sm:$0xff]  }
 0x557   : > { %2412 = vmatpush1.bf16.msra.mxu0 %v3948_v16  ;;  %2465 = vmatpush1.bf16.msra.mxu1 %v3951_v15  ;;  %v4001_v16 = vld [vmem:[#allocation8 + $0x1ec] ss:$16 sps:$4 sm:$0xff]   ;;  %v3996_v15 = vld [vmem:[#allocation8 + $0x1e0] ss:$16 sps:$4 sm:$0xff]  }
 0x558   : > { %2413 = vmatprep.subr.bf16.mxu0 %v3956_v18  ;;  %2466 = vmatprep.subr.bf16.mxu1 %v3959_v19  ;;  %v3999_v18 = vld [vmem:[#allocation8 + $0x1e8] ss:$16 sps:$4 sm:$0xff]   ;;  %v4004_v19 = vld [vmem:[#allocation10 + $0x4] ss:$8 sps:$4 sm:$0xff]  }
 0x55b   : > { %2414 = vmatpush1.bf16.msra.mxu0 %v3954_v21  ;;  %2467 = vmatpush1.bf16.msra.mxu1 %v3957_v23 }
 0x55c   : > { %2415 = vmatprep.subr.bf16.mxu0 %v3962_v24  ;;  %2468 = vmatprep.subr.bf16.mxu1 %v3965_v25 }
 0x55f   : > { %2416 = vmatpush1.bf16.msra.mxu0 %v3960_v26  ;;  %2469 = vmatpush1.bf16.msra.mxu1 %v3963_v27 }
 0x560   : > { %2470 = vmatprep.subr.bf16.mxu1 %v3971_v59 }
 0x563   : > { %2471 = vmatpush1.bf16.msra.mxu1 %v3969_v60 }
 0x564   : > { %2472 = vmatprep.subr.bf16.mxu1 %v3977_v62 }
 0x567   : > { %2473 = vmatpush1.bf16.msra.mxu1 %v3975_v0  ;;  %v4002_v0 = vld [vmem:[#allocation10] ss:$8 sps:$4 sm:$0xff]  }
 0x568   : > { %2474 = vmatprep.subr.bf16.mxu1 %v3983_v2  ;;  %v4007_v2 = vld [vmem:[#allocation10 + $0x14] ss:$8 sps:$4 sm:$0xff]  }
 0x56b   : > { %2475 = vmatpush1.bf16.msra.mxu1 %v3981_v4 }
 0x56c   : > { %2476 = vmatprep.subr.bf16.mxu1 %v3989_v6 }
 0x56f   : > { %2477 = vmatpush1.bf16.msra.mxu1 %v3987_v8 }
 0x570   : > { %2478 = vmatprep.subr.bf16.mxu1 %v3995_v10 }
 0x573   : > { %2479 = vmatpush1.bf16.msra.mxu1 %v3993_v12 }
 0x574   : > { %2480 = vmatprep.subr.bf16.mxu1 %v4001_v16  ;;  %v4013_v16 = vld [vmem:[#allocation10 + $0x34] ss:$8 sps:$4 sm:$0xff]  }
 0x577   : > { %2481 = vmatpush1.bf16.msra.mxu1 %v3999_v18  ;;  %v4016_v18 = vld [vmem:[#allocation10 + $0x44] ss:$8 sps:$4 sm:$0xff]  }
 0x5d7   : > { %v1887_v28 = vpop.xlane.xlu0 %1886 }
 0x5d8   : > { %v1898_v30 = vmul.f32 0.00390625, %v1887_v28 }
 0x5d9   : > { %v1890_v32 = vpop.xlane.xlu1 %1889 }
 0x5da   : > { %v4806_v34 = vsub.f32 %v4774_v13, %v1898_v30  ;;  %v4809_v35 = vsub.f32 %v4777_v17, %v1898_v30  ;;  %v1899_v36 = vmul.f32 0.00390625, %v1890_v32 }
 0x5dc   : > { %v4812_v38 = vsub.f32 %v4780_v20, %v1899_v36  ;;  %v4815_v39 = vsub.f32 %v4783_v22, %v1899_v36  ;;  %v1910_v41 = vmul.f32 %v4806_v34, %v4806_v34  ;;  %v1911_v43 = vmul.f32 %v4809_v35, %v4809_v35 }
 0x5de   : > { %v1918_v44 = vadd.f32 %v1911_v43, %v1910_v41  ;;  %v1912_v13 = vmul.f32 %v4812_v38, %v4812_v38  ;;  %v1913_v17 = vmul.f32 %v4815_v39, %v4815_v39  ;;  %v534_v43 = vld [vmem:[%s4986_s9] sm:$0x3] }
 0x5df   : > { %v1893_v49 = vpop.xlane.xlu0 %1892 }
 0x5e0   : > { %v1900_v50 = vmul.f32 0.00390625, %v1893_v49  ;;  %1919 = vadd.xlane.f32.xlu0 %v1918_v44  ;;  %v1921_v20 = vadd.f32 %v1913_v17, %v1912_v13  ;;  %v535_v13 = vld [vmem:[%s4987_s10] sm:$0x3]  ;;  %v1954_v17 = vrot.slane %v534_v43, %v4721_v46  ;;  %v1958_v49 = vrot.slane %v534_v43, %v4727_v48 }
 0x5e1   : > { %v1896_v51 = vpop.xlane.xlu1 %1895  ;;  %v4032_v43 = vld [vmem:[#allocation10 + $0xa0] ss:$8 sps:$4 sm:$0xff]  }
 0x5e2   : > { %v4826_v22 = vsub.f32 %v4790_v33, %v1900_v50  ;;  %v4829_v52 = vsub.f32 %v4793_v37, %v1900_v50  ;;  %v1901_v53 = vmul.f32 0.00390625, %v1896_v51  ;;  %1922 = vadd.xlane.f32.xlu1 %v1921_v20 }
 0x5e4   : > { %v4832_v54 = vsub.f32 %v4796_v40, %v1901_v53  ;;  %v4835_v47 = vsub.f32 %v4799_v42, %v1901_v53  ;;  %v1914_v55 = vmul.f32 %v4826_v22, %v4826_v22  ;;  %v1915_v56 = vmul.f32 %v4829_v52, %v4829_v52  ;;  %v3968_v40 = vld [vmem:[#allocation8 + $0x144] ss:$16 sps:$4 sm:$0xff]   ;;  %v3966_v42 = vld [vmem:[#allocation8 + $0x140] ss:$16 sps:$4 sm:$0xff]  }
 0x5e5   : > { %2417 = vmatprep.subr.bf16.mxu0 %v3968_v40 }
 0x5e6   : > { %v1924_v57 = vadd.f32 %v1915_v56, %v1914_v55  ;;  %v1916_v33 = vmul.f32 %v4832_v54, %v4832_v54  ;;  %v1917_v37 = vmul.f32 %v4835_v47, %v4835_v47  ;;  %2418 = vmatpush1.bf16.msra.mxu0 %v3966_v42  ;;  %v1973_v55 = vrot.slane %v535_v13, %v4721_v46 }
 0x5e7   : > { %2419 = vmatprep.subr.bf16.mxu0 %v3974_v61  ;;  %v1977_v56 = vrot.slane %v535_v13, %v4727_v48  ;;  %v4035_v13 = vld [vmem:[#allocation10 + $0xb0] ss:$8 sps:$4 sm:$0xff]  }
 0x5e8   : > { %1925 = vadd.xlane.f32.xlu0 %v1924_v57  ;;  %v1927_v58 = vadd.f32 %v1917_v37, %v1916_v33 }
 0x5ea   : > { %1928 = vadd.xlane.f32.xlu1 %v1927_v58  ;;  %2420 = vmatpush1.bf16.msra.mxu0 %v3972_v63 }
 0x5eb   : > { %2421 = vmatprep.subr.bf16.mxu0 %v3980_v1 }
 0x5ee   : > { %2422 = vmatpush1.bf16.msra.mxu0 %v3978_v3 }
 0x5ef   : > { %2423 = vmatprep.subr.bf16.mxu0 %v3986_v5 }
 0x5f2   : > { %2424 = vmatpush1.bf16.msra.mxu0 %v3984_v7 }
 0x5f3   : > { %2425 = vmatprep.subr.bf16.mxu0 %v3992_v9  ;;  %v4005_v9 = vld [vmem:[#allocation10 + $0x10] ss:$8 sps:$4 sm:$0xff]  }
 0x5f6   : > { %2426 = vmatpush1.bf16.msra.mxu0 %v3990_v11 }
 0x5f7   : > { %2427 = vmatprep.subr.bf16.mxu0 %v3998_v14  ;;  %v4008_v14 = vld [vmem:[#allocation10 + $0x20] ss:$8 sps:$4 sm:$0xff]  }
 0x5fa   : > { %2428 = vmatpush1.bf16.msra.mxu0 %v3996_v15  ;;  %v4011_v15 = vld [vmem:[#allocation10 + $0x30] ss:$8 sps:$4 sm:$0xff]  }
 0x5fb   : > { %2922 = vmatprep.subr.bf16.mxu0 %v4004_v19  ;;  %v4014_v19 = vld [vmem:[#allocation10 + $0x40] ss:$8 sps:$4 sm:$0xff]  }
 0x66d   : > { %v1920_v21 = vpop.xlane.xlu0 %1919 }
 0x66e   : > { %v1930_v23 = vmul.f32 0.00390625, %v1920_v21  ;;  %v4019_v21 = vld [vmem:[#allocation10 + $0x54] ss:$8 sps:$4 sm:$0xff]  }
 0x66f   : > { %v1923_v24 = vpop.xlane.xlu1 %1922 }
 0x670   : > { %v1934_v25 = vadd.f32 1e-05, %v1930_v23  ;;  %v1931_v26 = vmul.f32 0.00390625, %v1923_v24  ;;  %v4017_v23 = vld [vmem:[#allocation10 + $0x50] ss:$8 sps:$4 sm:$0xff]  }
 0x671   : > { %v4022_v24 = vld [vmem:[#allocation10 + $0x64] ss:$8 sps:$4 sm:$0xff]  }
 0x672   : > { %4130 = vrsqrt.f32 %v1934_v25  ;;  %v1935_v27 = vadd.f32 1e-05, %v1931_v26  ;;  %v4020_v25 = vld [vmem:[#allocation10 + $0x60] ss:$8 sps:$4 sm:$0xff]   ;;  %v4025_v26 = vld [vmem:[#allocation10 + $0x74] ss:$8 sps:$4 sm:$0xff]  }
 0x674   : > { %4132 = vrsqrt.f32 %v1935_v27  ;;  %v4023_v27 = vld [vmem:[#allocation10 + $0x70] ss:$8 sps:$4 sm:$0xff]  }
 0x675   : > { %v1926_v28 = vpop.xlane.xlu0 %1925 }
 0x676   : > { %v1932_v30 = vmul.f32 0.00390625, %v1926_v28  ;;  %v4028_v28 = vld [vmem:[#allocation10 + $0x84] ss:$8 sps:$4 sm:$0xff]  }
 0x677   : > { %v1929_v32 = vpop.xlane.xlu1 %1928 }
 0x678   : > { %v1936_v36 = vadd.f32 1e-05, %v1932_v30  ;;  %v1933_v41 = vmul.f32 0.00390625, %v1929_v32  ;;  %v4026_v30 = vld [vmem:[#allocation10 + $0x80] ss:$8 sps:$4 sm:$0xff]  }
 0x679   : > { %v4031_v32 = vld [vmem:[#allocation10 + $0x94] ss:$8 sps:$4 sm:$0xff]  }
 0x67a   : > { %4134 = vrsqrt.f32 %v1936_v36  ;;  %v1937_v44 = vadd.f32 1e-05, %v1933_v41  ;;  %v4029_v36 = vld [vmem:[#allocation10 + $0x90] ss:$8 sps:$4 sm:$0xff]   ;;  %v4034_v41 = vld [vmem:[#allocation10 + $0xa4] ss:$8 sps:$4 sm:$0xff]  }
 0x67c   : > { %v4131_v50 = vpop.eup %4130  ;;  %4136 = vrsqrt.f32 %v1937_v44  ;;  %v4037_v44 = vld [vmem:[#allocation10 + $0xb4] ss:$8 sps:$4 sm:$0xff]  }
 0x67d   : > { %v1942_v20 = vmul.f32 %v4131_v50, %v4806_v34  ;;  %v1943_v51 = vmul.f32 %v4131_v50, %v4809_v35  ;;  %v4043_v50 = vld [vmem:[#allocation10 + $0xd4] ss:$8 sps:$4 sm:$0xff]  }
 0x67e   : > { %v4133_v53 = vpop.eup %4132 }
 0x67f   : > { %v1944_v57 = vmul.f32 %v4133_v53, %v4812_v38  ;;  %v1945_v33 = vmul.f32 %v4133_v53, %v4815_v39  ;;  %v1962_v37 = vmul.f32 %v1958_v49, %v1943_v51  ;;  %v1961_v58 = vmul.f32 %v1954_v17, %v1942_v20  ;;  %v4041_v20 = vld [vmem:[#allocation10 + $0xd0] ss:$8 sps:$4 sm:$0xff]   ;;  %v4046_v51 = vld [vmem:[#allocation10 + $0xe4] ss:$8 sps:$4 sm:$0xff]   ;;  %v4044_v53 = vld [vmem:[#allocation10 + $0xe0] ss:$8 sps:$4 sm:$0xff]  }
 0x681   : > { %v1964_v40 = vmul.f32 %v1958_v49, %v1945_v33  ;;  %v1963_v59 = vmul.f32 %v1954_v17, %v1944_v57  ;;  %v4859_v42 = vadd.f32 %v1977_v56, %v1962_v37  ;;  %v4863_v34 = vadd.f32 %v1973_v55, %v1961_v58  ;;  %v4052_v57 = vld [vmem:[#allocation10 + $0x104] ss:$8 sps:$4 sm:$0xff]   ;;  %v532_v33 = vld [vmem:[%s4983_s6] sm:$0xf] }
 0x682   : > { %v2060_v37 = vrot.slane %v532_v33, %v4721_v46  ;;  %v2068_v58 = vrot.slane %v532_v33, %v645_v29 }
 0x683   : > { %v4861_v60 = vadd.f32 %v1977_v56, %v1964_v40  ;;  %v4865_v35 = vadd.f32 %v1973_v55, %v1963_v59  ;;  %v2064_v40 = vrot.slane %v532_v33, %v4727_v48  ;;  %v2072_v59 = vrot.slane %v532_v33, %v649_v31 }
 0x684   : > { %v4135_v61 = vpop.eup %4134 }
 0x685   : > { %v1989_v62 = vpack.c.bf16 %v4861_v60, %v4859_v42  ;;  %v1988_v38 = vpack.c.bf16 %v4865_v35, %v4863_v34  ;;  %v1947_v39 = vmul.f32 %v4135_v61, %v4829_v52  ;;  %v1946_v63 = vmul.f32 %v4135_v61, %v4826_v22  ;;  %v4010_v52 = vld [vmem:[#allocation10 + $0x24] ss:$8 sps:$4 sm:$0xff]  }
 0x686   : > { %v4137_v1 = vpop.eup %4136 }
 0x687   : > { %2429 = vmatprep.mubr.bf16.mxu0 %v1989_v62  ;;  %2482 = vmatprep.mubr.bf16.mxu1 %v1989_v62  ;;  %v1949_v3 = vmul.f32 %v4137_v1, %v4835_v47  ;;  %v1966_v4 = vmul.f32 %v1958_v49, %v1947_v39  ;;  %v1948_v5 = vmul.f32 %v4137_v1, %v4832_v54 }
 0x688   : > { %2430 = vmatmul.mubr.bf16.vlgmr.msra.gmra.mrb[16].mxu0 %v1988_v38  ;;  %2483 = vmatmul.mubr.bf16.vlgmr.msra.gmra.mrb[32].mxu1 %v1988_v38  ;;  %v1965_v6 = vmul.f32 %v1954_v17, %v1946_v63 }
 0x689   : > { %v1968_v7 = vmul.f32 %v1958_v49, %v1949_v3  ;;  %v1967_v8 = vmul.f32 %v1954_v17, %v1948_v5  ;;  %2923 = vmatpush1.bf16.msra.mxu0 %v4002_v0  ;;  %v4875_v22 = vadd.f32 %v1977_v56, %v1966_v4  ;;  %v4040_v17 = vld [vmem:[#allocation10 + $0xc4] ss:$8 sps:$4 sm:$0xff]   ;;  %v4038_v49 = vld [vmem:[#allocation10 + $0xc0] ss:$8 sps:$4 sm:$0xff]  }
 0x68a   : > { %2924 = vmatprep.subr.bf16.mxu0 %v4007_v2  ;;  %v4879_v11 = vadd.f32 %v1973_v55, %v1965_v6 }
 0x68b   : > { %v4877_v10 = vadd.f32 %v1977_v56, %v1968_v7  ;;  %v4881_v12 = vadd.f32 %v1973_v55, %v1967_v8  ;;  %v4049_v55 = vld [vmem:[#allocation10 + $0xf4] ss:$8 sps:$4 sm:$0xff]   ;;  %v4047_v56 = vld [vmem:[#allocation10 + $0xf0] ss:$8 sps:$4 sm:$0xff]  }
 0x68d   : > { %v1991_v54 = vpack.c.bf16 %v4877_v10, %v4875_v22  ;;  %v1990_v47 = vpack.c.bf16 %v4881_v12, %v4879_v11  ;;  %2925 = vmatpush1.bf16.msra.mxu0 %v4005_v9 }
 0x68e   : > { %2926 = vmatprep.subr.bf16.mxu0 %v4010_v52 }
 0x68f   : > { %2439 = vmatprep.mubr.bf16.mxu0 %v1991_v54  ;;  %2492 = vmatprep.mubr.bf16.mxu1 %v1991_v54 }
 0x690   : > { %2440 = vmatmul.mubr.bf16.gmra.mrb[20].mxu0 %v1990_v47  ;;  %2493 = vmatmul.mubr.bf16.gmra.mrb[36].mxu1 %v1990_v47 }
 0x691   : > { %2927 = vmatpush1.bf16.msra.mxu0 %v4008_v14 }
 0x692   : > { %2928 = vmatprep.subr.bf16.mxu0 %v4013_v16 }
 0x695   : > { %2929 = vmatpush1.bf16.msra.mxu0 %v4011_v15 }
 0x696   : > { %2930 = vmatprep.subr.bf16.mxu0 %v4016_v18 }
 0x699   : > { %2931 = vmatpush1.bf16.msra.mxu0 %v4014_v19 }
 0x69a   : > { %2932 = vmatprep.subr.bf16.mxu0 %v4019_v21 }
 0x69d   : > { %2933 = vmatpush1.bf16.msra.mxu0 %v4017_v23 }
 0x69e   : > { %2934 = vmatprep.subr.bf16.mxu0 %v4022_v24 }
 0x6a1   : > { %2935 = vmatpush1.bf16.msra.mxu0 %v4020_v25 }
 0x6a2   : > { %2936 = vmatprep.subr.bf16.mxu0 %v4025_v26  ;;  %v4050_v26 = vld [vmem:[#allocation10 + $0x100] ss:$8 sps:$4 sm:$0xff]  }
 0x6a5   : > { %2937 = vmatpush1.bf16.msra.mxu0 %v4023_v27 }
 0x6a6   : > { %2938 = vmatprep.subr.bf16.mxu0 %v4028_v28 }
 0x6a9   : > { %2939 = vmatpush1.bf16.msra.mxu0 %v4026_v30 }
 0x6aa   : > { %2940 = vmatprep.subr.bf16.mxu0 %v4031_v32 }
 0x6ad   : > { %2941 = vmatpush1.bf16.msra.mxu0 %v4029_v36  ;;  %v4055_v36 = vld [vmem:[#allocation10 + $0x114] ss:$8 sps:$4 sm:$0xff]  }
 0x6ae   : > { %2942 = vmatprep.subr.bf16.mxu0 %v4034_v41 }
 0x6b1   : > { %2943 = vmatpush1.bf16.msra.mxu0 %v4032_v43 }
 0x6b2   : > { %2944 = vmatprep.subr.bf16.mxu0 %v4037_v44 }
 0x6b5   : > { %2945 = vmatpush1.bf16.msra.mxu0 %v4035_v13 }
 0x6b6   : > { %2946 = vmatprep.subr.bf16.mxu0 %v4040_v17 }
 0x6b9   : > { %2947 = vmatpush1.bf16.msra.mxu0 %v4038_v49 }
 0x6ba   : > { %2948 = vmatprep.subr.bf16.mxu0 %v4043_v50 }
 0x6bd   : > { %2949 = vmatpush1.bf16.msra.mxu0 %v4041_v20 }
 0x6be   : > { %2950 = vmatprep.subr.bf16.mxu0 %v4046_v51 }
 0x6c1   : > { %2951 = vmatpush1.bf16.msra.mxu0 %v4044_v53 }
 0x6c2   : > { %2952 = vmatprep.subr.bf16.mxu0 %v4049_v55  ;;  %v4053_v55 = vld [vmem:[#allocation10 + $0x110] ss:$8 sps:$4 sm:$0xff]  }
 0x6c5   : > { %2953 = vmatpush1.bf16.msra.mxu0 %v4047_v56 }
 0x6c6   : > { %2975 = vmatprep.subr.bf16.mxu0 %v4052_v57 }
 0x75b   : > { %v2431_v61 = vpop.f32.mrb[16].mxu0  ;;  %v2484_v62 = vpop.f32.mrb[32].mxu1 }
 0x75c   : > { %v2432_v38 = vadd.f32 %v2431_v61, %v2060_v37  ;;  %v2485_v39 = vadd.f32 %v2484_v62, %v2068_v58  ;;  %v2433_v63 = vpop.f32.mrb[17].mxu0  ;;  %v2486_v0 = vpop.f32.mrb[33].mxu1  ;;  %v4058_v62 = vld [vmem:[#allocation10 + $0x124] ss:$8 sps:$4 sm:$0xff]  }
 0x75d   : > { %v2434_v1 = vadd.f32 %v2433_v63, %v2064_v40  ;;  %v2487_v2 = vadd.f32 %v2486_v0, %v2072_v59  ;;  %v2435_v3 = vpop.f32.mrb[18].mxu0  ;;  %v2488_v4 = vpop.f32.mrb[34].mxu1 }
 0x75e   : > { %v2436_v5 = vadd.f32 %v2435_v3, %v2060_v37  ;;  %v2489_v6 = vadd.f32 %v2488_v4, %v2068_v58  ;;  %v2437_v7 = vpop.f32.mrb[19].mxu0  ;;  %v2490_v8 = vpop.f32.mrb[35].mxu1  ;;  %v2503_v52 = vmax.f32 %v2432_v38, 0.0  ;;  %v2505_v54 = vmax.f32 %v2485_v39, 0.0  ;;  %v4059_v3 = vld [vmem:[#allocation10 + $0x130] ss:$8 sps:$4 sm:$0xff]  }
 0x75f   : > { %v2438_v29 = vadd.f32 %v2437_v7, %v2064_v40  ;;  %v2491_v9 = vadd.f32 %v2490_v8, %v2072_v59  ;;  %v2504_v47 = vmax.f32 %v2434_v1, 0.0  ;;  %v2506_v14 = vmax.f32 %v2487_v2, 0.0  ;;  %v4064_v4 = vld [vmem:[#allocation10 + $0x144] ss:$8 sps:$4 sm:$0xff]   ;;  %v4065_v7 = vld [vmem:[#allocation10 + $0x150] ss:$8 sps:$4 sm:$0xff]  }
 0x760   : > { %v2507_v45 = vmax.f32 %v2436_v5, 0.0  ;;  %v2509_v31 = vmax.f32 %v2489_v6, 0.0  ;;  %v4062_v5 = vld [vmem:[#allocation10 + $0x140] ss:$8 sps:$4 sm:$0xff]   ;;  %v4067_v6 = vld [vmem:[#allocation10 + $0x154] ss:$8 sps:$4 sm:$0xff]  }
 0x761   : > { %v2508_v16 = vmax.f32 %v2438_v29, 0.0  ;;  %v2510_v15 = vmax.f32 %v2491_v9, 0.0  ;;  %v4070_v8 = vld [vmem:[#allocation10 + $0x164] ss:$8 sps:$4 sm:$0xff]   ;;  %v4068_v29 = vld [vmem:[#allocation10 + $0x160] ss:$8 sps:$4 sm:$0xff]  }
 0x762   : > { %v2519_v18 = vpack.c.bf16 %v2507_v45, %v2503_v52  ;;  %v4896_v19 = vpack.c.bf16 %v2509_v31, %v2505_v54  ;;  %v4073_v9 = vld [vmem:[#allocation10 + $0x174] ss:$8 sps:$4 sm:$0xff]   ;;  %v4071_v52 = vld [vmem:[#allocation10 + $0x170] ss:$8 sps:$4 sm:$0xff]   ;;  %v4076_v54 = vld [vmem:[#allocation10 + $0x184] ss:$8 sps:$4 sm:$0xff]  }
 0x763   : > { %v2520_v21 = vpack.c.bf16 %v2508_v16, %v2504_v47  ;;  %v2522_v23 = vpack.c.bf16 %v2510_v15, %v2506_v14  ;;  %v2441_v24 = vpop.f32.mrb[20].mxu0  ;;  %v2494_v25 = vpop.f32.mrb[36].mxu1  ;;  %v4074_v45 = vld [vmem:[#allocation10 + $0x180] ss:$8 sps:$4 sm:$0xff]   ;;  %v4079_v31 = vld [vmem:[#allocation10 + $0x194] ss:$8 sps:$4 sm:$0xff]  }
 0x764   : > { %v2442_v27 = vadd.f32 %v2441_v24, %v2060_v37  ;;  %v2495_v28 = vadd.f32 %v2494_v25, %v2068_v58  ;;  %v2443_v30 = vpop.f32.mrb[21].mxu0  ;;  %v2496_v32 = vpop.f32.mrb[37].mxu1  ;;  %v4077_v47 = vld [vmem:[#allocation10 + $0x190] ss:$8 sps:$4 sm:$0xff]   ;;  %v4082_v14 = vld [vmem:[#allocation10 + $0x1a4] ss:$8 sps:$4 sm:$0xff]  }
 0x765   : > { %v2444_v41 = vadd.f32 %v2443_v30, %v2064_v40  ;;  %v2497_v43 = vadd.f32 %v2496_v32, %v2072_v59  ;;  %v2445_v44 = vpop.f32.mrb[22].mxu0  ;;  %v2498_v13 = vpop.f32.mrb[38].mxu1  ;;  %2954 = vmatprep.mubr.bf16.mxu0 %v2520_v21  ;;  %v4080_v16 = vld [vmem:[#allocation10 + $0x1a0] ss:$8 sps:$4 sm:$0xff]   ;;  %v4085_v15 = vld [vmem:[#allocation10 + $0x1b4] ss:$8 sps:$4 sm:$0xff]  }
 0x766   : > { %v2446_v17 = vadd.f32 %v2445_v44, %v2060_v37  ;;  %v2499_v49 = vadd.f32 %v2498_v13, %v2068_v58  ;;  %v2447_v50 = vpop.f32.mrb[23].mxu0  ;;  %v2500_v20 = vpop.f32.mrb[39].mxu1  ;;  %2955 = vmatmul.mubr.bf16.vlgmr.msra.gmra.mrb[24].mxu0 %v2519_v18  ;;  %v2511_v56 = vmax.f32 %v2442_v27, 0.0  ;;  %v2513_v57 = vmax.f32 %v2495_v28, 0.0  ;;  %v4083_v18 = vld [vmem:[#allocation10 + $0x1b0] ss:$8 sps:$4 sm:$0xff]  }
 0x767   : > { %v2448_v51 = vadd.f32 %v2447_v50, %v2064_v40  ;;  %v2501_v53 = vadd.f32 %v2500_v20, %v2072_v59  ;;  %2976 = vmatpush1.bf16.msra.mxu0 %v4050_v26  ;;  %v2512_v38 = vmax.f32 %v2444_v41, 0.0  ;;  %v2514_v39 = vmax.f32 %v2497_v43, 0.0  ;;  %v4056_v40 = vld [vmem:[#allocation10 + $0x120] ss:$8 sps:$4 sm:$0xff]   ;;  %v4061_v59 = vld [vmem:[#allocation10 + $0x134] ss:$8 sps:$4 sm:$0xff]  }
 0x768   : > { %v2515_v33 = vmax.f32 %v2446_v17, 0.0  ;;  %v2517_v61 = vmax.f32 %v2499_v49, 0.0  ;;  %2977 = vmatprep.subr.bf16.mxu0 %v4055_v36  ;;  %v4088_v21 = vld [vmem:[#allocation10 + $0x1c4] ss:$8 sps:$4 sm:$0xff]   ;;  %v4091_v24 = vld [vmem:[#allocation10 + $0x1d4] ss:$8 sps:$4 sm:$0xff]  }
 0x769   : > { %v2516_v63 = vmax.f32 %v2448_v51, 0.0  ;;  %v2518_v0 = vmax.f32 %v2501_v53, 0.0  ;;  %v4089_v25 = vld [vmem:[#allocation10 + $0x1d0] ss:$8 sps:$4 sm:$0xff]   ;;  %v4094_v26 = vld [vmem:[#allocation10 + $0x1e4] ss:$8 sps:$4 sm:$0xff]  }
 0x76a   : > { %v2523_v1 = vpack.c.bf16 %v2515_v33, %v2511_v56  ;;  %v4898_v37 = vpack.c.bf16 %v2517_v61, %v2513_v57  ;;  %v4092_v27 = vld [vmem:[#allocation10 + $0x1e0] ss:$8 sps:$4 sm:$0xff]   ;;  %v4097_v28 = vld [vmem:[#allocation10 + $0x1f4] ss:$8 sps:$4 sm:$0xff]   ;;  %v4095_v30 = vld [vmem:[#allocation10 + $0x1f0] ss:$8 sps:$4 sm:$0xff]  }
 0x76b   : > { %v2524_v58 = vpack.c.bf16 %v2516_v63, %v2512_v38  ;;  %v2526_v2 = vpack.c.bf16 %v2518_v0, %v2514_v39  ;;  %2978 = vmatpush1.bf16.msra.mxu0 %v4053_v55  ;;  %v533_v32 = vld [vmem:[%s5023_s25] sm:$0x3]  ;;  %s4296_s25 = scalar_lea.vmem %s4933_s11, 1024 }
 0x76c   : > { %2979 = vmatprep.subr.bf16.mxu0 %v4058_v62  ;;  %v2595_v36 = vrot.slane %v533_v32, %v4721_v46  ;;  %v2599_v41 = vrot.slane %v533_v32, %v4727_v48  ;;  %p4297_p3 = scmp.ne.s32.totalorder %s4933_s11, %s4296_s25 }
 0x76d   : > { %2964 = vmatprep.mubr.bf16.mxu0 %v2524_v58 }
 0x76e   : > { %2965 = vmatmul.mubr.bf16.gmra.mrb[28].mxu0 %v2523_v1  ;;  %p4298_p5 = pnand %p4297_p3, %p4615_p10 }
 0x76f   : > { %2980 = vmatpush1.bf16.msra.mxu0 %v4056_v40  ;;  %3007 = vmatprep.mubr.bf16.mxu0 %v2522_v23  ;;  %v4086_v23 = vld [vmem:[#allocation10 + $0x1c0] ss:$8 sps:$4 sm:$0xff]  }
 0x770   : > { %2981 = vmatprep.subr.bf16.mxu0 %v4061_v59  ;;  %p4299_p7 = pneg %p4298_p5 }
 0x773   : > { %2982 = vmatpush1.bf16.msra.mxu0 %v4059_v3 }
 0x774   : > { %2983 = vmatprep.subr.bf16.mxu0 %v4064_v4 }
 0x777   : > { %2984 = vmatpush1.bf16.msra.mxu0 %v4062_v5 }
 0x778   : > { %2985 = vmatprep.subr.bf16.mxu0 %v4067_v6 }
 0x77b   : > { %2986 = vmatpush1.bf16.msra.mxu0 %v4065_v7 }
 0x77c   : > { %2987 = vmatprep.subr.bf16.mxu0 %v4070_v8 }
 0x77f   : > { %2988 = vmatpush1.bf16.msra.mxu0 %v4068_v29 }
 0x780   : > { %2989 = vmatprep.subr.bf16.mxu0 %v4073_v9 }
 0x783   : > { %2990 = vmatpush1.bf16.msra.mxu0 %v4071_v52 }
 0x784   : > { %2991 = vmatprep.subr.bf16.mxu0 %v4076_v54 }
 0x787   : > { %2992 = vmatpush1.bf16.msra.mxu0 %v4074_v45 }
 0x788   : > { %2993 = vmatprep.subr.bf16.mxu0 %v4079_v31 }
 0x78b   : > { %2994 = vmatpush1.bf16.msra.mxu0 %v4077_v47 }
 0x78c   : > { %2995 = vmatprep.subr.bf16.mxu0 %v4082_v14 }
 0x78f   : > { %2996 = vmatpush1.bf16.msra.mxu0 %v4080_v16 }
 0x790   : > { %2997 = vmatprep.subr.bf16.mxu0 %v4085_v15 }
 0x793   : > { %2998 = vmatpush1.bf16.msra.mxu0 %v4083_v18 }
 0x794   : > { %2999 = vmatprep.subr.bf16.mxu0 %v4088_v21 }
 0x797   : > { %3000 = vmatpush1.bf16.msra.mxu0 %v4086_v23 }
 0x798   : > { %3001 = vmatprep.subr.bf16.mxu0 %v4091_v24 }
 0x79b   : > { %3002 = vmatpush1.bf16.msra.mxu0 %v4089_v25 }
 0x79c   : > { %3003 = vmatprep.subr.bf16.mxu0 %v4094_v26 }
 0x79f   : > { %3004 = vmatpush1.bf16.msra.mxu0 %v4092_v27 }
 0x7a0   : > { %3005 = vmatprep.subr.bf16.mxu0 %v4097_v28 }
 0x7a3   : > { %3006 = vmatpush1.bf16.msra.mxu0 %v4095_v30 }
 0x7a6   : > { %3008 = vmatmul.mubr.bf16.vlgmr.msra.gmra.mrb[24].mxu0 %v4896_v19 }
 0x7a7   : > { %3017 = vmatprep.mubr.bf16.mxu0 %v2526_v2 }
 0x7ae   : > { %3018 = vmatmul.mubr.bf16.gmra.mrb[28].mxu0 %v4898_v37 }
 0x879   : > { %v3009_v43 = vpop.f32.mrb[24].mxu0 }
 0x87a   : > { %v3603_v44 = vadd.f32 %v3009_v43, %v2595_v36  ;;  %v3011_v13 = vpop.f32.mrb[25].mxu0 }
 0x87b   : > { %v3604_v17 = vadd.f32 %v3011_v13, %v2599_v41  ;;  %v3013_v49 = vpop.f32.mrb[26].mxu0 }
 0x87c   : > { %v3028_v50 = vadd.f32 %v3603_v44, %v4863_v34  ;;  %v3605_v20 = vadd.f32 %v3013_v49, %v2595_v36  ;;  %v3015_v19 = vpop.f32.mrb[27].mxu0 }
 0x87d   : > { %v3029_v51 = vadd.f32 %v3604_v17, %v4859_v42  ;;  %v3606_v53 = vadd.f32 %v3015_v19, %v2599_v41  ;;  %v536_v17 = vld [vmem:[%s5024_s22] sm:$0x3]  ;;  %s4302_s22 = scalar_lea.vmem %s4301_s16, 2048 }
 0x87e   : > { %v3030_v55 = vadd.f32 %v3605_v20, %v4865_v35  ;;  %v537_v20 = vld [vmem:[%s5025_s17] sm:$0x3]  ;;  %p4304_p2 = scmp.lt.s32.totalorder %s4302_s22, %s4296_s25 }
 0x87f   : > { %v3031_v56 = vadd.f32 %v3606_v53, %v4861_v60  ;;  %v3036_v57 = vadd.f32 %v3029_v51, %v3028_v50  ;;  %v3108_v53 = vrot.slane %v536_v17, %v4727_v48 }
 0x880   : > { %p4305_p1 = por %p4304_p2, %p4303_p12 }
 0x881   : > { %v3019_v33 = vpop.f32.mrb[28].mxu0  ;;  %3037 = vadd.xlane.f32.xlu0 %v3036_v57  ;;  %v3039_v61 = vadd.f32 %v3031_v56, %v3030_v55  ;;  %v3127_v57 = vrot.slane %v537_v20, %v4727_v48 }
 0x882   : > { %v3607_v62 = vadd.f32 %v3019_v33, %v2595_v36  ;;  %v3021_v38 = vpop.f32.mrb[29].mxu0  ;;  %p4306_p13 = pnand %p4305_p1, %p4299_p7 }
 0x883   : > { %v3608_v39 = vadd.f32 %v3021_v38, %v2599_v41  ;;  %v3023_v63 = vpop.f32.mrb[30].mxu0  ;;  %3040 = vadd.xlane.f32.xlu1 %v3039_v61 }
 0x884   : > { %v3032_v34 = vadd.f32 %v3607_v62, %v4879_v11  ;;  %v3609_v0 = vadd.f32 %v3023_v63, %v2595_v36  ;;  %v3025_v1 = vpop.f32.mrb[31].mxu0 }
 0x885   : > { %v3033_v42 = vadd.f32 %v3608_v39, %v4875_v22  ;;  %v3610_v37 = vadd.f32 %v3025_v1, %v2599_v41 }
 0x886   : > { %v3034_v35 = vadd.f32 %v3609_v0, %v4881_v12 }
 0x887   : > { %v3035_v60 = vadd.f32 %v3610_v37, %v4877_v10  ;;  %v3042_v58 = vadd.f32 %v3033_v42, %v3032_v34 }
 0x889   : > { %3043 = vadd.xlane.f32.xlu0 %v3042_v58  ;;  %v3045_v2 = vadd.f32 %v3035_v60, %v3034_v35 }
 0x88b   : > { %3046 = vadd.xlane.f32.xlu1 %v3045_v2 }
 0x90e   : > { %v3038_v40 = vpop.xlane.xlu0 %3037 }
 0x90f   : > { %v3048_v59 = vmul.f32 0.00390625, %v3038_v40 }
 0x910   : > { %v3041_v3 = vpop.xlane.xlu1 %3040 }
 0x911   : > { %v3052_v4 = vsub.f32 %v3028_v50, %v3048_v59  ;;  %v3053_v5 = vsub.f32 %v3029_v51, %v3048_v59  ;;  %v3049_v6 = vmul.f32 0.00390625, %v3041_v3  ;;  %v3104_v51 = vrot.slane %v536_v17, %v4721_v46 }
 0x913   : > { %v3054_v11 = vsub.f32 %v3030_v55, %v3049_v6  ;;  %v3055_v7 = vsub.f32 %v3031_v56, %v3049_v6  ;;  %v3060_v8 = vmul.f32 %v3052_v4, %v3052_v4  ;;  %v3061_v29 = vmul.f32 %v3053_v5, %v3053_v5 }
 0x914   : > { %v3123_v56 = vrot.slane %v537_v20, %v4721_v46 }
 0x915   : > { %v3068_v22 = vadd.f32 %v3061_v29, %v3060_v8  ;;  %v3062_v9 = vmul.f32 %v3054_v11, %v3054_v11  ;;  %v3063_v52 = vmul.f32 %v3055_v7, %v3055_v7 }
 0x916   : > { %v3044_v12 = vpop.xlane.xlu0 %3043 }
 0x917   : > { %v3050_v54 = vmul.f32 0.00390625, %v3044_v12  ;;  %3069 = vadd.xlane.f32.xlu0 %v3068_v22  ;;  %v3071_v10 = vadd.f32 %v3063_v52, %v3062_v9 }
 0x918   : > { %v3047_v45 = vpop.xlane.xlu1 %3046 }
 0x919   : > { %v3056_v31 = vsub.f32 %v3032_v34, %v3050_v54  ;;  %v3057_v47 = vsub.f32 %v3033_v42, %v3050_v54  ;;  %v3051_v14 = vmul.f32 0.00390625, %v3047_v45  ;;  %3072 = vadd.xlane.f32.xlu1 %v3071_v10 }
 0x91b   : > { %v3058_v16 = vsub.f32 %v3034_v35, %v3051_v14  ;;  %v3059_v15 = vsub.f32 %v3035_v60, %v3051_v14  ;;  %v3064_v18 = vmul.f32 %v3056_v31, %v3056_v31  ;;  %v3065_v21 = vmul.f32 %v3057_v47, %v3057_v47 }
 0x91d   : > { %v3074_v23 = vadd.f32 %v3065_v21, %v3064_v18  ;;  %v3066_v24 = vmul.f32 %v3058_v16, %v3058_v16  ;;  %v3067_v25 = vmul.f32 %v3059_v15, %v3059_v15 }
 0x91f   : > { %3075 = vadd.xlane.f32.xlu0 %v3074_v23  ;;  %v3077_v26 = vadd.f32 %v3067_v25, %v3066_v24 }
 0x921   : > { %3078 = vadd.xlane.f32.xlu1 %v3077_v26 }
 0x9a4   : > { %v3070_v27 = vpop.xlane.xlu0 %3069 }
 0x9a5   : > { %v3080_v28 = vmul.f32 0.00390625, %v3070_v27 }
 0x9a6   : > { %v3073_v30 = vpop.xlane.xlu1 %3072 }
 0x9a7   : > { %v3084_v32 = vadd.f32 1e-05, %v3080_v28  ;;  %v3081_v36 = vmul.f32 0.00390625, %v3073_v30 }
 0x9a9   : > { %4138 = vrsqrt.f32 %v3084_v32  ;;  %v3085_v41 = vadd.f32 1e-05, %v3081_v36 }
 0x9ab   : > { %4140 = vrsqrt.f32 %v3085_v41 }
 0x9ac   : > { %v3076_v43 = vpop.xlane.xlu0 %3075 }
 0x9ad   : > { %v3082_v44 = vmul.f32 0.00390625, %v3076_v43 }
 0x9ae   : > { %v3079_v13 = vpop.xlane.xlu1 %3078 }
 0x9af   : > { %v3086_v49 = vadd.f32 1e-05, %v3082_v44  ;;  %v3083_v50 = vmul.f32 0.00390625, %v3079_v13 }
 0x9b1   : > { %4142 = vrsqrt.f32 %v3086_v49  ;;  %v3087_v19 = vadd.f32 1e-05, %v3083_v50 }
 0x9b3   : > { %v4139_v55 = vpop.eup %4138  ;;  %4144 = vrsqrt.f32 %v3087_v19 }
 0x9b4   : > { %v3092_v33 = vmul.f32 %v4139_v55, %v3052_v4  ;;  %v3093_v61 = vmul.f32 %v4139_v55, %v3053_v5 }
 0x9b5   : > { %v4141_v62 = vpop.eup %4140 }
 0x9b6   : > { %v3111_v38 = vmul.f32 %v3104_v51, %v3092_v33  ;;  %v3112_v39 = vmul.f32 %v3108_v53, %v3093_v61  ;;  %v3094_v63 = vmul.f32 %v4141_v62, %v3054_v11  ;;  %v3095_v34 = vmul.f32 %v4141_v62, %v3055_v7 }
 0x9b8   : > { %v3130_v0 = vadd.f32 %v3123_v56, %v3111_v38  ;;  %v3131_v1 = vadd.f32 %v3127_v57, %v3112_v39  ;;  %v3113_v42 = vmul.f32 %v3104_v51, %v3094_v63  ;;  %v3114_v37 = vmul.f32 %v3108_v53, %v3095_v34 }
 0x9ba   : > { %3138 = vst [vmem:[%s516_s30] sm:$0xff] %v3130_v0  ;;  %3139 = vst [vmem:[%s516_s30 + $0x8] sm:$0xff] %v3131_v1  ;;  %v3132_v35 = vadd.f32 %v3123_v56, %v3113_v42  ;;  %v3133_v46 = vadd.f32 %v3127_v57, %v3114_v37 }
 0x9bb   : > { %v4143_v60 = vpop.eup %4142 }
 0x9bc   : > { %3140 = vst [vmem:[%s516_s30 + $0x10] sm:$0xff] %v3132_v35  ;;  %3141 = vst [vmem:[%s516_s30 + $0x18] sm:$0xff] %v3133_v46  ;;  %v3096_v48 = vmul.f32 %v4143_v60, %v3056_v31  ;;  %v3097_v58 = vmul.f32 %v4143_v60, %v3057_v47 }
 0x9bd   : > { %v4145_v2 = vpop.eup %4144 }
 0x9be   : > { %v3115_v40 = vmul.f32 %v3104_v51, %v3096_v48  ;;  %v3116_v59 = vmul.f32 %v3108_v53, %v3097_v58  ;;  %v3098_v3 = vmul.f32 %v4145_v2, %v3058_v16  ;;  %v3099_v4 = vmul.f32 %v4145_v2, %v3059_v15 }
 0x9c0   : > { %v3134_v5 = vadd.f32 %v3123_v56, %v3115_v40  ;;  %v3135_v6 = vadd.f32 %v3127_v57, %v3116_v59  ;;  %v3117_v11 = vmul.f32 %v3104_v51, %v3098_v3  ;;  %v3118_v7 = vmul.f32 %v3108_v53, %v3099_v4 }
 0x9c2   : > { %3142 = vst [vmem:[%s516_s30 + $0x20] sm:$0xff] %v3134_v5  ;;  %3143 = vst [vmem:[%s516_s30 + $0x28] sm:$0xff] %v3135_v6  ;;  %v3136_v8 = vadd.f32 %v3123_v56, %v3117_v11  ;;  %v3137_v29 = vadd.f32 %v3127_v57, %v3118_v7 }
 0x9c4   : > { %3144 = vst [vmem:[%s516_s30 + $0x30] sm:$0xff] %v3136_v8  ;;  %3145 = vst [vmem:[%s516_s30 + $0x38] sm:$0xff] %v3137_v29 }
 0x9c5   : > { %4309 = shalt.err (!%p4306_p13)
}
 0x9c6   : > { %s4310_s21 = scalar_lea.hbm %s4931_s13, 1024  ;;  %s4314_s30 = scalar_lea.hbm %s5026_s19, 2048 }
 0x9c7   : > { %p4311_p9 = scmp.ne.s32.totalorder %s4931_s13, %s4310_s21  ;;  %p4315_p4 = scmp.lt.u32.totalorder %s4931_s13, %s5026_s19 }
 0x9c8   : > { %p4316_p8 = scmp.lt.u32.totalorder %s4314_s30, %s4310_s21  ;;  %p4318_p3 = scmp.lt.u32.totalorder %s4310_s21, %s4931_s13 }
 0x9c9   : > { %p4312_p0 = pnand %p4311_p9, %p4615_p10 }
 0x9ca   : > { %p4317_p6 = por %p4316_p8, %p4315_p4 }
 0x9cb   : > { %p4313_p11 = pneg %p4312_p0 }
 0x9cc   : > { %p4319_p5 = por %p4318_p3, %p4317_p6 }
 0x9ce   : > { %p4320_p7 = pnand %p4319_p5, %p4313_p11 }
 0x9d0   : > { %4323 = shalt.err (!%p4320_p7)
}
 0x9d1   : > { %s4384_s23 = smov 256   ;;  %s4385_s25 = smov 16  }
 0x9d2   : > { %3637 = dma.vmem_to_hbm [thread:$0]  (%p4615_p10), %s4933_s11, 1024, %s4931_s13, %s3147_s29, %s4384_s23, %s4384_s23, %s4385_s25  }
 0x9d3 PF: > { %s5027_s14 = sld [smem:[#allocation16_spill]]  ;;  %s5028_s16 = sld [smem:[#allocation17_spill]] }
 0x9d4   : > { %p5030_p2 = scmp.ge.s32.totalorder %s4370_s28, 2 }
 0x9d9   : > { %s3175_s22 = sand.u32 1, %s5027_s14   ;;  %p5029_p12 = scmp.ne.s32.totalorder %s5028_s16, 0 }
 0x9da   : > { %s3176_s21 = scalar_lea.sflag [#allocation4], %s3175_s22 }
 0x9db   : > { %p3657_p1 = pnand %p5030_p2, %p5029_p12 }
 0x9dd   : > { %4353 = dma.done.wait (!%p3657_p1), %s3176_s21, 1024  }
 0x9de   : > { %4355 = vsyncadd (!%p3657_p1), %s3176_s21, 4294966272  ;;  %p28_p13 = scmp.ge.s32.totalorder %s4605_s15, 4   ;;  %s5031_s25 = smov %s4362_s26 }
 0x9df   : > { %s5032_s26 = smov %s4366_s27  ;;  %s5033_s27 = smov %s4621_s24 }
 0x9e0   : > { %s5034_s28 = smov %s4605_s15  ;;  %30 = sbr.rel (!%p28_p13) target bundleno = 13 (0xd), region = 133 }
 0x9e7   :  { %3181 = vsyncpa [#allocation3], 1 }
 0x9e8   :  { %3183 = vsyncpa [#allocation3 + $0x1], 1 }
 0x9e9   :  { %3184 = vsyncpa [#allocation6], 1 }
 0x9ea   :  { %3185 = vsyncpa [#allocation9], 1 }
 0x9eb   :  { %3186 = vsyncpa [#allocation4], 1 }
 0x9ec   :  { %3188 = vsyncpa [#allocation4 + $0x1], 1 }

</bundles_post_ra>
